<compile_context>
chip_gen: v6e
topology: v6e:2x2x1
jax: 0.10.0
libtpu: 0.0.40
codegen_flags: <defaults>
</compile_context>

<pallas_src>
import functools

import jax
import jax.numpy as jnp
from jax import lax
from jax.experimental import pallas as pl
from jax.experimental.pallas import tpu as pltpu


def _round_up(x, m):
    return ((x + m - 1) // m) * m


def _pick_unroll(chunk):
    for u in (8, 4, 2):
        if chunk % u == 0:
            return u
    return 1


# ----------------------------------------------------------------------------
# Shared LSTM gate math (gate layout [i | f | o | g], reordered once in glue)
# ----------------------------------------------------------------------------
def _lstm_activation(gates, c, H):
    sig = jax.nn.sigmoid(gates[:, :3 * H])    # one contiguous EUP pass for i,f,o
    g = jnp.tanh(gates[:, 3 * H:])
    i = sig[:, :H]
    f = sig[:, H:2 * H]
    o = sig[:, 2 * H:3 * H]
    c_new = f * c + i * g
    h_new = o * jnp.tanh(c_new)
    return h_new, c_new


# ----------------------------------------------------------------------------
# Kernel 1: text encoder LSTM recurrence + fused mean-pool -> context [B, H]
#   xproj = emb @ Wih^T + b is precomputed in glue for all T (one GEMM).
#   Grid = (batch_blocks, T_chunks); state + mean accumulator live in VMEM scratch.
# ----------------------------------------------------------------------------
def text_encoder_kernel(xproj_ref, whh_ref, ctx_ref, h_ref, c_ref, acc_ref,
                        *, t_real, t_chunk, masked, unroll):
    chunk = pl.program_id(1)

    @pl.when(chunk == 0)
    def _init():
        h_ref[...] = jnp.zeros_like(h_ref)
        c_ref[...] = jnp.zeros_like(c_ref)
        acc_ref[...] = jnp.zeros_like(acc_ref)

    H = whh_ref.shape[0]
    whh = whh_ref[...]                                      # [H, 4H], resident
    base = chunk * t_chunk

    def body(t, carry):
        h, c, acc = carry
        gates = xproj_ref[t] + jnp.dot(h, whh, preferred_element_type=jnp.float32)
        h, c = _lstm_activation(gates, c, H)
        if masked:   # static flag: only traced when T was padded
            acc = acc + jnp.where(base + t < t_real, h, jnp.zeros_like(h))
        else:
            acc = acc + h
        return h, c, acc

    h, c, acc = lax.fori_loop(
        0, t_chunk, body,
        (h_ref[...], c_ref[...], acc_ref[...]),
        unroll=unroll)
    h_ref[...] = h
    c_ref[...] = c
    acc_ref[...] = acc

    @pl.when(chunk == pl.num_programs(1) - 1)
    def _emit():
        ctx_ref[...] = acc * (1.0 / t_real)                 # fused mean over time


def run_text_encoder(xproj, whh_t, *, t_real, t_chunk, b_block=None):
    T_pad, B_pad, H4 = xproj.shape
    H = H4 // 4
    if b_block is None:
        b_block = B_pad
    n_b = B_pad // b_block
    n_t = T_pad // t_chunk
    kernel = functools.partial(
        text_encoder_kernel, t_real=t_real, t_chunk=t_chunk,
        masked=(T_pad != t_real), unroll=_pick_unroll(t_chunk))
    return pl.pallas_call(
        kernel,
        out_shape=jax.ShapeDtypeStruct((B_pad, H), jnp.float32),
        grid_spec=pltpu.PrefetchScalarGridSpec(
            num_scalar_prefetch=0,
            grid=(n_b, n_t),
            in_specs=[
                pl.BlockSpec((t_chunk, b_block, H4), lambda b, t: (t, b, 0)),
                pl.BlockSpec((H, H4), lambda b, t: (0, 0)),
            ],
            out_specs=pl.BlockSpec((b_block, H), lambda b, t: (b, 0)),
            scratch_shapes=[pltpu.VMEM((b_block, H), jnp.float32)] * 3,  # h, c, acc
        ),
        compiler_params=pltpu.CompilerParams(
            dimension_semantics=("parallel", "arbitrary")),
    )(xproj, whh_t)


# ----------------------------------------------------------------------------
# Kernel 2: decoder 2-layer LSTM recurrence + merged mel/stop projection.
#   pre1 = prenet(mel_in) @ Wih1_p + ctx @ Wih1_ctx + b1 is precomputed in glue
#   for all S.  Layer-2 input/recurrent matmuls are fused: [h1|h2] @ [wih2;whh2].
#   Grid = (batch_blocks, S_chunks); LSTM state lives in VMEM scratch.
# ----------------------------------------------------------------------------
def decoder_kernel(pre1_ref, whh1_ref, w2_ref, b2_ref, wproj_ref, bproj_ref,
                   out_ref, h1_ref, c1_ref, h2_ref, c2_ref,
                   *, s_chunk, unroll):
    chunk = pl.program_id(1)

    @pl.when(chunk == 0)
    def _init():
        h1_ref[...] = jnp.zeros_like(h1_ref)
        c1_ref[...] = jnp.zeros_like(c1_ref)
        h2_ref[...] = jnp.zeros_like(h2_ref)
        c2_ref[...] = jnp.zeros_like(c2_ref)

    B = pre1_ref.shape[1]
    H4 = pre1_ref.shape[2]
    H = H4 // 4
    P = wproj_ref.shape[1]

    whh1 = whh1_ref[...]                                    # [H, 4H]
    w2 = w2_ref[...]                                        # [2H, 4H]  (wih2 ; whh2)
    wproj = wproj_ref[...]                                  # [H, P]
    # bias broadcasts hoisted out of the loop (JAX does not CSE broadcast_in_dim)
    b2 = jnp.broadcast_to(b2_ref[...], (B, H4))
    bproj = jnp.broadcast_to(bproj_ref[...], (B, P))

    def body(s, carry):
        h1, c1, h2, c2 = carry
        g1 = pre1_ref[s] + jnp.dot(h1, whh1, preferred_element_type=jnp.float32)
        h1, c1 = _lstm_activation(g1, c1, H)
        x2 = jnp.concatenate([h1, h2], axis=1)              # [B, 2H] lane concat
        g2 = jnp.dot(x2, w2, preferred_element_type=jnp.float32) + b2
        h2, c2 = _lstm_activation(g2, c2, H)
        # merged mel+stop projection, lane-dense (P is a multiple of 128)
        out_ref[s] = jnp.dot(h2, wproj, preferred_element_type=jnp.float32) + bproj
        return h1, c1, h2, c2

    h1, c1, h2, c2 = lax.fori_loop(
        0, s_chunk, body,
        (h1_ref[...], c1_ref[...], h2_ref[...], c2_ref[...]),
        unroll=unroll)
    h1_ref[...] = h1
    c1_ref[...] = c1
    h2_ref[...] = h2
    c2_ref[...] = c2


def run_decoder(pre1, whh1_t, w2_cat, b2, wproj, bproj, *, s_chunk, b_block=None):
    S_pad, B_pad, H4 = pre1.shape
    H = H4 // 4
    P = wproj.shape[1]
    if b_block is None:
        b_block = B_pad
    n_b = B_pad // b_block
    n_s = S_pad // s_chunk
    kernel = functools.partial(decoder_kernel, s_chunk=s_chunk,
                               unroll=_pick_unroll(s_chunk))
    wfull = lambda b, s: (0, 0)
    return pl.pallas_call(
        kernel,
        out_shape=jax.ShapeDtypeStruct((S_pad, B_pad, P), jnp.float32),
        grid_spec=pltpu.PrefetchScalarGridSpec(
            num_scalar_prefetch=0,
            grid=(n_b, n_s),
            in_specs=[
                pl.BlockSpec((s_chunk, b_block, H4), lambda b, s: (s, b, 0)),
                pl.BlockSpec((H, H4), wfull),       # whh1
                pl.BlockSpec((2 * H, H4), wfull),   # [wih2 ; whh2]
                pl.BlockSpec((1, H4), wfull),       # b2
                pl.BlockSpec((H, P), wfull),        # merged mel/stop weight
                pl.BlockSpec((1, P), wfull),        # merged mel/stop bias
            ],
            out_specs=pl.BlockSpec((s_chunk, b_block, P), lambda b, s: (s, b, 0)),
            scratch_shapes=[pltpu.VMEM((b_block, H), jnp.float32)] * 4,  # h1,c1,h2,c2
        ),
        compiler_params=pltpu.CompilerParams(
            dimension_semantics=("parallel", "arbitrary")),
    )(pre1, whh1_t, w2_cat, b2, wproj, bproj)


# ----------------------------------------------------------------------------
# Parameter init (PyTorch layout) and one-time preparation (transpose/reorder)
# ----------------------------------------------------------------------------
def init_params(key, vocab_size, E, H, M):
    ks = jax.random.split(key, 24)
    n = lambda k, shape: (0.1 * jax.random.normal(k, shape)).astype(jnp.float32)
    return {
        "emb": n(ks[0], (vocab_size, E)),
        # text LSTM (PyTorch layout: w_ih [4H,E], w_hh [4H,H], gates [i|f|g|o])
        "t_wih": n(ks[1], (4 * H, E)), "t_whh": n(ks[2], (4 * H, H)),
        "t_bih": n(ks[3], (4 * H,)),   "t_bhh": n(ks[4], (4 * H,)),
        # prenet
        "p_w1": n(ks[5], (H, M)), "p_b1": n(ks[6], (H,)),
        "p_w2": n(ks[7], (H, H)), "p_b2": n(ks[8], (H,)),
        # decoder LSTM layer 1 (input 2H) and layer 2 (input H)
        "d1_wih": n(ks[9], (4 * H, 2 * H)), "d1_whh": n(ks[10], (4 * H, H)),
        "d1_bih": n(ks[11], (4 * H,)),      "d1_bhh": n(ks[12], (4 * H,)),
        "d2_wih": n(ks[13], (4 * H, H)),    "d2_whh": n(ks[14], (4 * H, H)),
        "d2_bih": n(ks[15], (4 * H,)),      "d2_bhh": n(ks[16], (4 * H,)),
        # projections
        "mel_w": n(ks[17], (M, H)), "mel_b": n(ks[18], (M,)),
        "stop_w": n(ks[19], (1, H)), "stop_b": n(ks[20], (1,)),
    }


def _reorder_gate_rows(w, H):
    """PyTorch gate order along the leading 4H dim is [i|f|g|o]; reorder to [i|f|o|g]."""
    return jnp.concatenate([w[:2 * H], w[3 * H:4 * H], w[2 * H:3 * H]], axis=0)


def prepare_params(p):
    """One-time: transpose to [in, 4H] layouts, reorder gates, merge/concat weights."""
    H = p["t_whh"].shape[1]
    M = p["mel_w"].shape[0]
    P = max(128, _round_up(M + 1, 128))       # lane-dense merged projection width
    r = lambda w: _reorder_gate_rows(w, H)

    wproj = jnp.zeros((H, P), jnp.float32)
    wproj = wproj.at[:, :M].set(p["mel_w"].T)
    wproj = wproj.at[:, M].set(p["stop_w"][0])
    bproj = jnp.zeros((1, P), jnp.float32)
    bproj = bproj.at[0, :M].set(p["mel_b"])
    bproj = bproj.at[0, M].set(p["stop_b"][0])

    d1_wih_r = r(p["d1_wih"])                        # [4H, 2H]
    return {
        "emb": p["emb"],
        "t_wih_t": r(p["t_wih"]).T,                            # [E, 4H]
        "t_whh_t": r(p["t_whh"]).T,                            # [H, 4H]
        "t_bias": r(p["t_bih"] + p["t_bhh"]).reshape(1, -1),   # [1, 4H]
        "p_w1_t": p["p_w1"].T, "p_b1": p["p_b1"].reshape(1, -1),
        "p_w2_t": p["p_w2"].T, "p_b2": p["p_b2"].reshape(1, -1),
        "d1_wih_p_t": d1_wih_r[:, :H].T,                       # [H, 4H] (prenet part)
        "d1_wih_c_t": d1_wih_r[:, H:].T,                       # [H, 4H] (context part)
        "d1_whh_t": r(p["d1_whh"]).T,                          # [H, 4H]
        "d1_bias": r(p["d1_bih"] + p["d1_bhh"]).reshape(1, -1),
        # fused layer-2 weight: [h1|h2] @ [wih2 ; whh2]  -> [2H, 4H]
        "d2_w_cat": jnp.concatenate([r(p["d2_wih"]).T, r(p["d2_whh"]).T], axis=0),
        "d2_bias": r(p["d2_bih"] + p["d2_bhh"]).reshape(1, -1),
        "wproj": wproj, "bproj": bproj,
    }


# ----------------------------------------------------------------------------
# Forward (glue: embedding gather, batched non-recurrent GEMMs, Pallas recurrences)
# ----------------------------------------------------------------------------
def voice_clone_forward(prep, text, target_mels, *, t_chunk=64, s_chunk=64,
                        b_block=None):
    """text: [B, T] int32; target_mels: [B, S, M] f32.
    Returns (mel_outputs [B, S, M], stop_outputs [B, S, 1]).
    b_block: batch-block size for the 'parallel' grid axis (set B_pad//2 on v7x
    to shard the recurrence across both TensorCores); None = single block."""
    B, T = text.shape
    S, M = target_mels.shape[1], target_mels.shape[2]

    # Pad batch to a multiple of 8 sublanes (padded rows sliced off at the end).
    B_pad = max(8, _round_up(B, 8))
    if B_pad != B:
        text = jnp.pad(text, ((0, B_pad - B), (0, 0)))
        target_mels = jnp.pad(target_mels, ((0, B_pad - B), (0, 0), (0, 0)))

    # Chunk sizes: multiples of 8, capped by the sequence lengths; sequences padded
    # up to a chunk multiple (padded decoder steps produce garbage rows that are
    # sliced off; padded encoder steps are masked out of the mean accumulator).
    t_chunk = min(t_chunk, _round_up(T, 8))
    s_chunk = min(s_chunk, _round_up(S, 8))
    T_pad = _round_up(T, t_chunk)
    S_pad = _round_up(S, s_chunk)

    # ---- encoder: batched input projection (one GEMM) + chunked Pallas recurrence
    emb_tbe = jnp.transpose(prep["emb"][text], (1, 0, 2))          # [T, Bp, E]
    xproj = jnp.dot(emb_tbe, prep["t_wih_t"]) + prep["t_bias"]     # [T, Bp, 4H]
    if T_pad != T:
        xproj = jnp.pad(xproj, ((0, T_pad - T), (0, 0), (0, 0)))
    ctx = run_text_encoder(xproj, prep["t_whh_t"], t_real=T, t_chunk=t_chunk,
                           b_block=b_block)                        # [Bp, H]

    # ---- decoder precompute: prenet + layer-1 input projection for all S ----
    # TODO(synk): Dropout(0.5) inside the prenet uses eval-mode identity semantics.
    mel_input = jnp.concatenate(
        [jnp.zeros((B_pad, 1, M), jnp.float32), target_mels[:, :-1]], axis=1)
    mel_sbm = jnp.transpose(mel_input, (1, 0, 2))                  # [S, Bp, M]
    pre = jnp.maximum(jnp.dot(mel_sbm, prep["p_w1_t"]) + prep["p_b1"], 0.0)
    pre = jnp.maximum(jnp.dot(pre, prep["p_w2_t"]) + prep["p_b2"], 0.0)   # [S, Bp, H]
    ctx_gate = jnp.dot(ctx, prep["d1_wih_c_t"]) + prep["d1_bias"]  # [Bp, 4H] (constant)
    pre1 = jnp.dot(pre, prep["d1_wih_p_t"]) + ctx_gate[None]       # [S, Bp, 4H]
    if S_pad != S:
        pre1 = jnp.pad(pre1, ((0, S_pad - S), (0, 0), (0, 0)))

    # ---- chunked decoder recurrence + merged lane-dense projection ----
    proj = run_decoder(pre1, prep["d1_whh_t"], prep["d2_w_cat"], prep["d2_bias"],
                       prep["wproj"], prep["bproj"],
                       s_chunk=s_chunk, b_block=b_block)           # [S_pad, Bp, P]
    proj = jnp.transpose(proj, (1, 0, 2))[:B, :S]                  # [B, S, P]
    mel_out = proj[..., :M]
    stop_out = jax.nn.sigmoid(proj[..., M:M + 1])
    return mel_out, stop_out


# ----------------------------------------------------------------------------
# Pure-JAX reference (mirrors the PyTorch forward, eval-mode dropout)
# ----------------------------------------------------------------------------
def _lstm_cell(x, h, c, wih, whh, bih, bhh):
    H = h.shape[-1]
    g = x @ wih.T + bih + h @ whh.T + bhh
    i = jax.nn.sigmoid(g[:, :H]); f = jax.nn.sigmoid(g[:, H:2 * H])
    gg = jnp.tanh(g[:, 2 * H:3 * H]); o = jax.nn.sigmoid(g[:, 3 * H:])
    c = f * c + i * gg
    return o * jnp.tanh(c), c


def reference_forward(p, text, target_mels):
    B, T = text.shape
    S, M = target_mels.shape[1], target_mels.shape[2]
    H = p["t_whh"].shape[1]
    emb = p["emb"][text]
    h = jnp.zeros((B, H)); c = jnp.zeros((B, H)); outs = []
    for t in range(T):
        h, c = _lstm_cell(emb[:, t], h, c, p["t_wih"], p["t_whh"], p["t_bih"], p["t_bhh"])
        outs.append(h)
    text_out = jnp.stack(outs, axis=1)
    context = jnp.mean(text_out, axis=1)
    mel_input = jnp.concatenate([jnp.zeros((B, 1, M)), target_mels[:, :-1]], axis=1)
    h1 = jnp.zeros((B, H)); c1 = jnp.zeros((B, H))
    h2 = jnp.zeros((B, H)); c2 = jnp.zeros((B, H))
    mels, stops = [], []
    for s in range(S):
        x = mel_input[:, s]
        pr = jnp.maximum(x @ p["p_w1"].T + p["p_b1"], 0.0)
        pr = jnp.maximum(pr @ p["p_w2"].T + p["p_b2"], 0.0)
        din = jnp.concatenate([pr, context], axis=-1)
        h1, c1 = _lstm_cell(din, h1, c1, p["d1_wih"], p["d1_whh"], p["d1_bih"], p["d1_bhh"])
        h2, c2 = _lstm_cell(h1, h2, c2, p["d2_wih"], p["d2_whh"], p["d2_bih"], p["d2_bhh"])
        mels.append(h2 @ p["mel_w"].T + p["mel_b"])
        stops.append(jax.nn.sigmoid(h2 @ p["stop_w"].T + p["stop_b"]))
    return jnp.stack(mels, axis=1), jnp.stack(stops, axis=1)


if __name__ == "__main__":
    vocab_size, E, H, M = 50, 32, 32, 16
    B, T, S = 2, 8, 6

    key = jax.random.PRNGKey(0)
    kp, kt, km = jax.random.split(key, 3)
    params = init_params(kp, vocab_size, E, H, M)
    prep = prepare_params(params)

    text = jax.random.randint(kt, (B, T), 0, vocab_size, dtype=jnp.int32)
    text_lengths = jnp.full((B,), T, dtype=jnp.int32)  # unused by forward (parity with module)
    target_mels = jax.random.normal(km, (B, S, M), dtype=jnp.float32)

    fwd = jax.jit(voice_clone_forward)
    mel_out, stop_out = fwd(prep, text, target_mels)
    jax.block_until_ready((mel_out, stop_out))

    mel_ref, stop_ref = reference_forward(params, text, target_mels)
    assert mel_out.shape == (B, S, M) and stop_out.shape == (B, S, 1)
    assert jnp.allclose(mel_out, mel_ref, atol=1e-3, rtol=1e-3)
    assert jnp.allclose(stop_out, stop_ref, atol=1e-3, rtol=1e-3)

    print("KERNEL_OK")
</pallas_src>

<mosaic_0001>
module attributes {stable_mosaic.version = 11 : i64} {
  func.func @text_encoder_kernel(%arg0: i32, %arg1: i32, %arg2: memref<8x8x128xf32, #tpu.memory_space<vmem>>, %arg3: memref<32x128xf32, #tpu.memory_space<vmem>>, %arg4: memref<8x32xf32, #tpu.memory_space<vmem>>, %arg5: memref<8x32xf32, #tpu.memory_space<vmem>>, %arg6: memref<8x32xf32, #tpu.memory_space<vmem>>, %arg7: memref<8x32xf32, #tpu.memory_space<vmem>>) attributes {dimension_semantics = [#tpu.dimension_semantics<parallel>, #tpu.dimension_semantics<arbitrary>], iteration_bounds = array<i64: 1, 1>, scalar_prefetch = 0 : i64, scratch_operands = 3 : i64, tpu.core_type = #tpu.core_type<tc>, window_params = [{transform_indices = @transform_0, window_bounds = array<i64: 8, 8, 128>}, {pipeline_mode = #tpu.pipeline_mode<synchronous>, transform_indices = @transform_1, window_bounds = array<i64: 32, 128>}, {transform_indices = @transform_2, window_bounds = array<i64: 8, 32>}]} {
    %c0_i32 = arith.constant 0 : i32
    %0 = arith.cmpi eq, %arg1, %c0_i32 : i32
    %1 = arith.extui %0 : i1 to i32
    %c0_i32_0 = arith.constant 0 : i32
    %2 = arith.cmpi ne, %1, %c0_i32_0 : i32
    scf.if %2 {
      %cst_48 = arith.constant 0.000000e+00 : f32
      %189 = vector.broadcast %cst_48 : f32 to vector<8x32xf32>
      %c0_49 = arith.constant 0 : index
      %c0_50 = arith.constant 0 : index
      %190 = vector.load %arg5[%c0_49, %c0_50] : memref<8x32xf32, #tpu.memory_space<vmem>>, vector<8x32xf32>
      tpu.vector_store %arg5[%c0_49, %c0_50], %189 {strides = array<i32>} : memref<8x32xf32, #tpu.memory_space<vmem>>, vector<8x32xf32>,
      %cst_51 = arith.constant 0.000000e+00 : f32
      %191 = vector.broadcast %cst_51 : f32 to vector<8x32xf32>
      %c0_52 = arith.constant 0 : index
      %c0_53 = arith.constant 0 : index
      %192 = vector.load %arg6[%c0_52, %c0_53] : memref<8x32xf32, #tpu.memory_space<vmem>>, vector<8x32xf32>
      tpu.vector_store %arg6[%c0_52, %c0_53], %191 {strides = array<i32>} : memref<8x32xf32, #tpu.memory_space<vmem>>, vector<8x32xf32>,
      %cst_54 = arith.constant 0.000000e+00 : f32
      %193 = vector.broadcast %cst_54 : f32 to vector<8x32xf32>
      %c0_55 = arith.constant 0 : index
      %c0_56 = arith.constant 0 : index
      %194 = vector.load %arg7[%c0_55, %c0_56] : memref<8x32xf32, #tpu.memory_space<vmem>>, vector<8x32xf32>
      tpu.vector_store %arg7[%c0_55, %c0_56], %193 {strides = array<i32>} : memref<8x32xf32, #tpu.memory_space<vmem>>, vector<8x32xf32>,
    } else {
    }
    %c0 = arith.constant 0 : index
    %c0_1 = arith.constant 0 : index
    %3 = vector.load %arg3[%c0, %c0_1] : memref<32x128xf32, #tpu.memory_space<vmem>>, vector<32x128xf32>
    %c0_2 = arith.constant 0 : index
    %c0_3 = arith.constant 0 : index
    %4 = vector.load %arg5[%c0_2, %c0_3] : memref<8x32xf32, #tpu.memory_space<vmem>>, vector<8x32xf32>
    %c0_4 = arith.constant 0 : index
    %c0_5 = arith.constant 0 : index
    %5 = vector.load %arg6[%c0_4, %c0_5] : memref<8x32xf32, #tpu.memory_space<vmem>>, vector<8x32xf32>
    %c0_6 = arith.constant 0 : index
    %c0_7 = arith.constant 0 : index
    %6 = vector.load %arg7[%c0_6, %c0_7] : memref<8x32xf32, #tpu.memory_space<vmem>>, vector<8x32xf32>
    %c0_i32_8 = arith.constant 0 : i32
    %7 = arith.index_cast %c0_i32_8 : i32 to index
    %c0_9 = arith.constant 0 : index
    %c0_10 = arith.constant 0 : index
    %8 = vector.load %arg2[%7, %c0_9, %c0_10] : memref<8x8x128xf32, #tpu.memory_space<vmem>>, vector<1x8x128xf32>
    %9 = vector.shape_cast %8 : vector<1x8x128xf32> to vector<8x128xf32>
    %cst = arith.constant dense<0.000000e+00> : vector<8x128xf32>
    %10 = tpu.matmul %4, %3, %cst {dimension_numbers = #tpu.dot_dimension_numbers<[1], [0], [0], [1], [0, 0, 1, 1], [], []>} : vector<8x32xf32>, vector<32x128xf32>, vector<8x128xf32> -> vector<8x128xf32>
    %11 = arith.addf %9, %10 : vector<8x128xf32>
    %12 = vector.extract_strided_slice %11 {offsets = [0, 0], sizes = [8, 96], strides = [1, 1]} : vector<8x128xf32> to vector<8x96xf32>
    %13 = arith.negf %12 : vector<8x96xf32>
    %14 = math.exp %13 : vector<8x96xf32>
    %cst_11 = arith.constant 1.000000e+00 : f32
    %15 = vector.broadcast %cst_11 : f32 to vector<8x96xf32>
    %16 = arith.addf %15, %14 : vector<8x96xf32>
    %17 = arith.divf %15, %16 : vector<8x96xf32>
    %18 = vector.extract_strided_slice %11 {offsets = [0, 96], sizes = [8, 32], strides = [1, 1]} : vector<8x128xf32> to vector<8x32xf32>
    %19 = math.tanh %18 : vector<8x32xf32>
    %20 = vector.extract_strided_slice %17 {offsets = [0, 0], sizes = [8, 32], strides = [1, 1]} : vector<8x96xf32> to vector<8x32xf32>
    %21 = vector.extract_strided_slice %17 {offsets = [0, 32], sizes = [8, 32], strides = [1, 1]} : vector<8x96xf32> to vector<8x32xf32>
    %22 = vector.extract_strided_slice %17 {offsets = [0, 64], sizes = [8, 32], strides = [1, 1]} : vector<8x96xf32> to vector<8x32xf32>
    %23 = arith.mulf %21, %5 : vector<8x32xf32>
    %24 = arith.mulf %20, %19 : vector<8x32xf32>
    %25 = arith.addf %23, %24 : vector<8x32xf32>
    %26 = math.tanh %25 : vector<8x32xf32>
    %27 = arith.mulf %22, %26 : vector<8x32xf32>
    %28 = arith.addf %6, %27 : vector<8x32xf32>
    %c1_i32 = arith.constant 1 : i32
    %29 = arith.index_cast %c1_i32 : i32 to index
    %c0_12 = arith.constant 0 : index
    %c0_13 = arith.constant 0 : index
    %30 = vector.load %arg2[%29, %c0_12, %c0_13] : memref<8x8x128xf32, #tpu.memory_space<vmem>>, vector<1x8x128xf32>
    %31 = vector.shape_cast %30 : vector<1x8x128xf32> to vector<8x128xf32>
    %cst_14 = arith.constant dense<0.000000e+00> : vector<8x128xf32>
    %32 = tpu.matmul %27, %3, %cst_14 {dimension_numbers = #tpu.dot_dimension_numbers<[1], [0], [0], [1], [0, 0, 1, 1], [], []>} : vector<8x32xf32>, vector<32x128xf32>, vector<8x128xf32> -> vector<8x128xf32>
    %33 = arith.addf %31, %32 : vector<8x128xf32>
    %34 = vector.extract_strided_slice %33 {offsets = [0, 0], sizes = [8, 96], strides = [1, 1]} : vector<8x128xf32> to vector<8x96xf32>
    %35 = arith.negf %34 : vector<8x96xf32>
    %36 = math.exp %35 : vector<8x96xf32>
    %cst_15 = arith.constant 1.000000e+00 : f32
    %37 = vector.broadcast %cst_15 : f32 to vector<8x96xf32>
    %38 = arith.addf %37, %36 : vector<8x96xf32>
    %39 = arith.divf %37, %38 : vector<8x96xf32>
    %40 = vector.extract_strided_slice %33 {offsets = [0, 96], sizes = [8, 32], strides = [1, 1]} : vector<8x128xf32> to vector<8x32xf32>
    %41 = math.tanh %40 : vector<8x32xf32>
    %42 = vector.extract_strided_slice %39 {offsets = [0, 0], sizes = [8, 32], strides = [1, 1]} : vector<8x96xf32> to vector<8x32xf32>
    %43 = vector.extract_strided_slice %39 {offsets = [0, 32], sizes = [8, 32], strides = [1, 1]} : vector<8x96xf32> to vector<8x32xf32>
    %44 = vector.extract_strided_slice %39 {offsets = [0, 64], sizes = [8, 32], strides = [1, 1]} : vector<8x96xf32> to vector<8x32xf32>
    %45 = arith.mulf %43, %25 : vector<8x32xf32>
    %46 = arith.mulf %42, %41 : vector<8x32xf32>
    %47 = arith.addf %45, %46 : vector<8x32xf32>
    %48 = math.tanh %47 : vector<8x32xf32>
    %49 = arith.mulf %44, %48 : vector<8x32xf32>
    %50 = arith.addf %28, %49 : vector<8x32xf32>
    %c2_i32 = arith.constant 2 : i32
    %51 = arith.index_cast %c2_i32 : i32 to index
    %c0_16 = arith.constant 0 : index
    %c0_17 = arith.constant 0 : index
    %52 = vector.load %arg2[%51, %c0_16, %c0_17] : memref<8x8x128xf32, #tpu.memory_space<vmem>>, vector<1x8x128xf32>
    %53 = vector.shape_cast %52 : vector<1x8x128xf32> to vector<8x128xf32>
    %cst_18 = arith.constant dense<0.000000e+00> : vector<8x128xf32>
    %54 = tpu.matmul %49, %3, %cst_18 {dimension_numbers = #tpu.dot_dimension_numbers<[1], [0], [0], [1], [0, 0, 1, 1], [], []>} : vector<8x32xf32>, vector<32x128xf32>, vector<8x128xf32> -> vector<8x128xf32>
    %55 = arith.addf %53, %54 : vector<8x128xf32>
    %56 = vector.extract_strided_slice %55 {offsets = [0, 0], sizes = [8, 96], strides = [1, 1]} : vector<8x128xf32> to vector<8x96xf32>
    %57 = arith.negf %56 : vector<8x96xf32>
    %58 = math.exp %57 : vector<8x96xf32>
    %cst_19 = arith.constant 1.000000e+00 : f32
    %59 = vector.broadcast %cst_19 : f32 to vector<8x96xf32>
    %60 = arith.addf %59, %58 : vector<8x96xf32>
    %61 = arith.divf %59, %60 : vector<8x96xf32>
    %62 = vector.extract_strided_slice %55 {offsets = [0, 96], sizes = [8, 32], strides = [1, 1]} : vector<8x128xf32> to vector<8x32xf32>
    %63 = math.tanh %62 : vector<8x32xf32>
    %64 = vector.extract_strided_slice %61 {offsets = [0, 0], sizes = [8, 32], strides = [1, 1]} : vector<8x96xf32> to vector<8x32xf32>
    %65 = vector.extract_strided_slice %61 {offsets = [0, 32], sizes = [8, 32], strides = [1, 1]} : vector<8x96xf32> to vector<8x32xf32>
    %66 = vector.extract_strided_slice %61 {offsets = [0, 64], sizes = [8, 32], strides = [1, 1]} : vector<8x96xf32> to vector<8x32xf32>
    %67 = arith.mulf %65, %47 : vector<8x32xf32>
    %68 = arith.mulf %64, %63 : vector<8x32xf32>
    %69 = arith.addf %67, %68 : vector<8x32xf32>
    %70 = math.tanh %69 : vector<8x32xf32>
    %71 = arith.mulf %66, %70 : vector<8x32xf32>
    %72 = arith.addf %50, %71 : vector<8x32xf32>
    %c3_i32 = arith.constant 3 : i32
    %73 = arith.index_cast %c3_i32 : i32 to index
    %c0_20 = arith.constant 0 : index
    %c0_21 = arith.constant 0 : index
    %74 = vector.load %arg2[%73, %c0_20, %c0_21] : memref<8x8x128xf32, #tpu.memory_space<vmem>>, vector<1x8x128xf32>
    %75 = vector.shape_cast %74 : vector<1x8x128xf32> to vector<8x128xf32>
    %cst_22 = arith.constant dense<0.000000e+00> : vector<8x128xf32>
    %76 = tpu.matmul %71, %3, %cst_22 {dimension_numbers = #tpu.dot_dimension_numbers<[1], [0], [0], [1], [0, 0, 1, 1], [], []>} : vector<8x32xf32>, vector<32x128xf32>, vector<8x128xf32> -> vector<8x128xf32>
    %77 = arith.addf %75, %76 : vector<8x128xf32>
    %78 = vector.extract_strided_slice %77 {offsets = [0, 0], sizes = [8, 96], strides = [1, 1]} : vector<8x128xf32> to vector<8x96xf32>
    %79 = arith.negf %78 : vector<8x96xf32>
    %80 = math.exp %79 : vector<8x96xf32>
    %cst_23 = arith.constant 1.000000e+00 : f32
    %81 = vector.broadcast %cst_23 : f32 to vector<8x96xf32>
    %82 = arith.addf %81, %80 : vector<8x96xf32>
    %83 = arith.divf %81, %82 : vector<8x96xf32>
    %84 = vector.extract_strided_slice %77 {offsets = [0, 96], sizes = [8, 32], strides = [1, 1]} : vector<8x128xf32> to vector<8x32xf32>
    %85 = math.tanh %84 : vector<8x32xf32>
    %86 = vector.extract_strided_slice %83 {offsets = [0, 0], sizes = [8, 32], strides = [1, 1]} : vector<8x96xf32> to vector<8x32xf32>
    %87 = vector.extract_strided_slice %83 {offsets = [0, 32], sizes = [8, 32], strides = [1, 1]} : vector<8x96xf32> to vector<8x32xf32>
    %88 = vector.extract_strided_slice %83 {offsets = [0, 64], sizes = [8, 32], strides = [1, 1]} : vector<8x96xf32> to vector<8x32xf32>
    %89 = arith.mulf %87, %69 : vector<8x32xf32>
    %90 = arith.mulf %86, %85 : vector<8x32xf32>
    %91 = arith.addf %89, %90 : vector<8x32xf32>
    %92 = math.tanh %91 : vector<8x32xf32>
    %93 = arith.mulf %88, %92 : vector<8x32xf32>
    %94 = arith.addf %72, %93 : vector<8x32xf32>
    %c4_i32 = arith.constant 4 : i32
    %95 = arith.index_cast %c4_i32 : i32 to index
    %c0_24 = arith.constant 0 : index
    %c0_25 = arith.constant 0 : index
    %96 = vector.load %arg2[%95, %c0_24, %c0_25] : memref<8x8x128xf32, #tpu.memory_space<vmem>>, vector<1x8x128xf32>
    %97 = vector.shape_cast %96 : vector<1x8x128xf32> to vector<8x128xf32>
    %cst_26 = arith.constant dense<0.000000e+00> : vector<8x128xf32>
    %98 = tpu.matmul %93, %3, %cst_26 {dimension_numbers = #tpu.dot_dimension_numbers<[1], [0], [0], [1], [0, 0, 1, 1], [], []>} : vector<8x32xf32>, vector<32x128xf32>, vector<8x128xf32> -> vector<8x128xf32>
    %99 = arith.addf %97, %98 : vector<8x128xf32>
    %100 = vector.extract_strided_slice %99 {offsets = [0, 0], sizes = [8, 96], strides = [1, 1]} : vector<8x128xf32> to vector<8x96xf32>
    %101 = arith.negf %100 : vector<8x96xf32>
    %102 = math.exp %101 : vector<8x96xf32>
    %cst_27 = arith.constant 1.000000e+00 : f32
    %103 = vector.broadcast %cst_27 : f32 to vector<8x96xf32>
    %104 = arith.addf %103, %102 : vector<8x96xf32>
    %105 = arith.divf %103, %104 : vector<8x96xf32>
    %106 = vector.extract_strided_slice %99 {offsets = [0, 96], sizes = [8, 32], strides = [1, 1]} : vector<8x128xf32> to vector<8x32xf32>
    %107 = math.tanh %106 : vector<8x32xf32>
    %108 = vector.extract_strided_slice %105 {offsets = [0, 0], sizes = [8, 32], strides = [1, 1]} : vector<8x96xf32> to vector<8x32xf32>
    %109 = vector.extract_strided_slice %105 {offsets = [0, 32], sizes = [8, 32], strides = [1, 1]} : vector<8x96xf32> to vector<8x32xf32>
    %110 = vector.extract_strided_slice %105 {offsets = [0, 64], sizes = [8, 32], strides = [1, 1]} : vector<8x96xf32> to vector<8x32xf32>
    %111 = arith.mulf %109, %91 : vector<8x32xf32>
    %112 = arith.mulf %108, %107 : vector<8x32xf32>
    %113 = arith.addf %111, %112 : vector<8x32xf32>
    %114 = math.tanh %113 : vector<8x32xf32>
    %115 = arith.mulf %110, %114 : vector<8x32xf32>
    %116 = arith.addf %94, %115 : vector<8x32xf32>
    %c5_i32 = arith.constant 5 : i32
    %117 = arith.index_cast %c5_i32 : i32 to index
    %c0_28 = arith.constant 0 : index
    %c0_29 = arith.constant 0 : index
    %118 = vector.load %arg2[%117, %c0_28, %c0_29] : memref<8x8x128xf32, #tpu.memory_space<vmem>>, vector<1x8x128xf32>
    %119 = vector.shape_cast %118 : vector<1x8x128xf32> to vector<8x128xf32>
    %cst_30 = arith.constant dense<0.000000e+00> : vector<8x128xf32>
    %120 = tpu.matmul %115, %3, %cst_30 {dimension_numbers = #tpu.dot_dimension_numbers<[1], [0], [0], [1], [0, 0, 1, 1], [], []>} : vector<8x32xf32>, vector<32x128xf32>, vector<8x128xf32> -> vector<8x128xf32>
    %121 = arith.addf %119, %120 : vector<8x128xf32>
    %122 = vector.extract_strided_slice %121 {offsets = [0, 0], sizes = [8, 96], strides = [1, 1]} : vector<8x128xf32> to vector<8x96xf32>
    %123 = arith.negf %122 : vector<8x96xf32>
    %124 = math.exp %123 : vector<8x96xf32>
    %cst_31 = arith.constant 1.000000e+00 : f32
    %125 = vector.broadcast %cst_31 : f32 to vector<8x96xf32>
    %126 = arith.addf %125, %124 : vector<8x96xf32>
    %127 = arith.divf %125, %126 : vector<8x96xf32>
    %128 = vector.extract_strided_slice %121 {offsets = [0, 96], sizes = [8, 32], strides = [1, 1]} : vector<8x128xf32> to vector<8x32xf32>
    %129 = math.tanh %128 : vector<8x32xf32>
    %130 = vector.extract_strided_slice %127 {offsets = [0, 0], sizes = [8, 32], strides = [1, 1]} : vector<8x96xf32> to vector<8x32xf32>
    %131 = vector.extract_strided_slice %127 {offsets = [0, 32], sizes = [8, 32], strides = [1, 1]} : vector<8x96xf32> to vector<8x32xf32>
    %132 = vector.extract_strided_slice %127 {offsets = [0, 64], sizes = [8, 32], strides = [1, 1]} : vector<8x96xf32> to vector<8x32xf32>
    %133 = arith.mulf %131, %113 : vector<8x32xf32>
    %134 = arith.mulf %130, %129 : vector<8x32xf32>
    %135 = arith.addf %133, %134 : vector<8x32xf32>
    %136 = math.tanh %135 : vector<8x32xf32>
    %137 = arith.mulf %132, %136 : vector<8x32xf32>
    %138 = arith.addf %116, %137 : vector<8x32xf32>
    %c6_i32 = arith.constant 6 : i32
    %139 = arith.index_cast %c6_i32 : i32 to index
    %c0_32 = arith.constant 0 : index
    %c0_33 = arith.constant 0 : index
    %140 = vector.load %arg2[%139, %c0_32, %c0_33] : memref<8x8x128xf32, #tpu.memory_space<vmem>>, vector<1x8x128xf32>
    %141 = vector.shape_cast %140 : vector<1x8x128xf32> to vector<8x128xf32>
    %cst_34 = arith.constant dense<0.000000e+00> : vector<8x128xf32>
    %142 = tpu.matmul %137, %3, %cst_34 {dimension_numbers = #tpu.dot_dimension_numbers<[1], [0], [0], [1], [0, 0, 1, 1], [], []>} : vector<8x32xf32>, vector<32x128xf32>, vector<8x128xf32> -> vector<8x128xf32>
    %143 = arith.addf %141, %142 : vector<8x128xf32>
    %144 = vector.extract_strided_slice %143 {offsets = [0, 0], sizes = [8, 96], strides = [1, 1]} : vector<8x128xf32> to vector<8x96xf32>
    %145 = arith.negf %144 : vector<8x96xf32>
    %146 = math.exp %145 : vector<8x96xf32>
    %cst_35 = arith.constant 1.000000e+00 : f32
    %147 = vector.broadcast %cst_35 : f32 to vector<8x96xf32>
    %148 = arith.addf %147, %146 : vector<8x96xf32>
    %149 = arith.divf %147, %148 : vector<8x96xf32>
    %150 = vector.extract_strided_slice %143 {offsets = [0, 96], sizes = [8, 32], strides = [1, 1]} : vector<8x128xf32> to vector<8x32xf32>
    %151 = math.tanh %150 : vector<8x32xf32>
    %152 = vector.extract_strided_slice %149 {offsets = [0, 0], sizes = [8, 32], strides = [1, 1]} : vector<8x96xf32> to vector<8x32xf32>
    %153 = vector.extract_strided_slice %149 {offsets = [0, 32], sizes = [8, 32], strides = [1, 1]} : vector<8x96xf32> to vector<8x32xf32>
    %154 = vector.extract_strided_slice %149 {offsets = [0, 64], sizes = [8, 32], strides = [1, 1]} : vector<8x96xf32> to vector<8x32xf32>
    %155 = arith.mulf %153, %135 : vector<8x32xf32>
    %156 = arith.mulf %152, %151 : vector<8x32xf32>
    %157 = arith.addf %155, %156 : vector<8x32xf32>
    %158 = math.tanh %157 : vector<8x32xf32>
    %159 = arith.mulf %154, %158 : vector<8x32xf32>
    %160 = arith.addf %138, %159 : vector<8x32xf32>
    %c7_i32 = arith.constant 7 : i32
    %161 = arith.index_cast %c7_i32 : i32 to index
    %c0_36 = arith.constant 0 : index
    %c0_37 = arith.constant 0 : index
    %162 = vector.load %arg2[%161, %c0_36, %c0_37] : memref<8x8x128xf32, #tpu.memory_space<vmem>>, vector<1x8x128xf32>
    %163 = vector.shape_cast %162 : vector<1x8x128xf32> to vector<8x128xf32>
    %cst_38 = arith.constant dense<0.000000e+00> : vector<8x128xf32>
    %164 = tpu.matmul %159, %3, %cst_38 {dimension_numbers = #tpu.dot_dimension_numbers<[1], [0], [0], [1], [0, 0, 1, 1], [], []>} : vector<8x32xf32>, vector<32x128xf32>, vector<8x128xf32> -> vector<8x128xf32>
    %165 = arith.addf %163, %164 : vector<8x128xf32>
    %166 = vector.extract_strided_slice %165 {offsets = [0, 0], sizes = [8, 96], strides = [1, 1]} : vector<8x128xf32> to vector<8x96xf32>
    %167 = arith.negf %166 : vector<8x96xf32>
    %168 = math.exp %167 : vector<8x96xf32>
    %cst_39 = arith.constant 1.000000e+00 : f32
    %169 = vector.broadcast %cst_39 : f32 to vector<8x96xf32>
    %170 = arith.addf %169, %168 : vector<8x96xf32>
    %171 = arith.divf %169, %170 : vector<8x96xf32>
    %172 = vector.extract_strided_slice %165 {offsets = [0, 96], sizes = [8, 32], strides = [1, 1]} : vector<8x128xf32> to vector<8x32xf32>
    %173 = math.tanh %172 : vector<8x32xf32>
    %174 = vector.extract_strided_slice %171 {offsets = [0, 0], sizes = [8, 32], strides = [1, 1]} : vector<8x96xf32> to vector<8x32xf32>
    %175 = vector.extract_strided_slice %171 {offsets = [0, 32], sizes = [8, 32], strides = [1, 1]} : vector<8x96xf32> to vector<8x32xf32>
    %176 = vector.extract_strided_slice %171 {offsets = [0, 64], sizes = [8, 32], strides = [1, 1]} : vector<8x96xf32> to vector<8x32xf32>
    %177 = arith.mulf %175, %157 : vector<8x32xf32>
    %178 = arith.mulf %174, %173 : vector<8x32xf32>
    %179 = arith.addf %177, %178 : vector<8x32xf32>
    %180 = math.tanh %179 : vector<8x32xf32>
    %181 = arith.mulf %176, %180 : vector<8x32xf32>
    %182 = arith.addf %160, %181 : vector<8x32xf32>
    %c8_i32 = arith.constant 8 : i32
    %c0_40 = arith.constant 0 : index
    %c0_41 = arith.constant 0 : index
    %183 = vector.load %arg5[%c0_40, %c0_41] : memref<8x32xf32, #tpu.memory_space<vmem>>, vector<8x32xf32>
    tpu.vector_store %arg5[%c0_40, %c0_41], %181 {strides = array<i32>} : memref<8x32xf32, #tpu.memory_space<vmem>>, vector<8x32xf32>,
    %c0_42 = arith.constant 0 : index
    %c0_43 = arith.constant 0 : index
    %184 = vector.load %arg6[%c0_42, %c0_43] : memref<8x32xf32, #tpu.memory_space<vmem>>, vector<8x32xf32>
    tpu.vector_store %arg6[%c0_42, %c0_43], %179 {strides = array<i32>} : memref<8x32xf32, #tpu.memory_space<vmem>>, vector<8x32xf32>,
    %c0_44 = arith.constant 0 : index
    %c0_45 = arith.constant 0 : index
    %185 = vector.load %arg7[%c0_44, %c0_45] : memref<8x32xf32, #tpu.memory_space<vmem>>, vector<8x32xf32>
    tpu.vector_store %arg7[%c0_44, %c0_45], %182 {strides = array<i32>} : memref<8x32xf32, #tpu.memory_space<vmem>>, vector<8x32xf32>,
    %c0_i32_46 = arith.constant 0 : i32
    %186 = arith.cmpi eq, %arg1, %c0_i32_46 : i32
    %187 = arith.extui %186 : i1 to i32
    %c0_i32_47 = arith.constant 0 : i32
    %188 = arith.cmpi ne, %187, %c0_i32_47 : i32
    scf.if %188 {
      %cst_48 = arith.constant 1.250000e-01 : f32
      %189 = vector.broadcast %cst_48 : f32 to vector<8x32xf32>
      %190 = arith.mulf %182, %189 : vector<8x32xf32>
      %c0_49 = arith.constant 0 : index
      %c0_50 = arith.constant 0 : index
      %191 = vector.load %arg4[%c0_49, %c0_50] : memref<8x32xf32, #tpu.memory_space<vmem>>, vector<8x32xf32>
      tpu.vector_store %arg4[%c0_49, %c0_50], %190 {strides = array<i32>} : memref<8x32xf32, #tpu.memory_space<vmem>>, vector<8x32xf32>,
    } else {
    }
    return
  }
  func.func @transform_0(%arg0: i32, %arg1: i32) -> (i32, i32, i32) {
    %c0_i32 = arith.constant 0 : i32
    %c0_i32_0 = arith.constant 0 : i32
    return %arg1, %arg0, %c0_i32 : i32, i32, i32
  }
  func.func @transform_1(%arg0: i32, %arg1: i32) -> (i32, i32) {
    %c0_i32 = arith.constant 0 : i32
    %c0_i32_0 = arith.constant 0 : i32
    %c0_i32_1 = arith.constant 0 : i32
    return %c0_i32, %c0_i32_0 : i32, i32
  }
  func.func @transform_2(%arg0: i32, %arg1: i32) -> (i32, i32) {
    %c0_i32 = arith.constant 0 : i32
    %c0_i32_0 = arith.constant 0 : i32
    return %arg0, %c0_i32 : i32, i32
  }
}

module attributes {stable_mosaic.version = 11 : i64} {
  func.func @decoder_kernel(%arg0: i32, %arg1: i32, %arg2: memref<8x8x128xf32, #tpu.memory_space<vmem>>, %arg3: memref<32x128xf32, #tpu.memory_space<vmem>>, %arg4: memref<64x128xf32, #tpu.memory_space<vmem>>, %arg5: memref<1x128xf32, #tpu.memory_space<vmem>>, %arg6: memref<32x128xf32, #tpu.memory_space<vmem>>, %arg7: memref<1x128xf32, #tpu.memory_space<vmem>>, %arg8: memref<8x8x128xf32, #tpu.memory_space<vmem>>, %arg9: memref<8x32xf32, #tpu.memory_space<vmem>>, %arg10: memref<8x32xf32, #tpu.memory_space<vmem>>, %arg11: memref<8x32xf32, #tpu.memory_space<vmem>>, %arg12: memref<8x32xf32, #tpu.memory_space<vmem>>) attributes {dimension_semantics = [#tpu.dimension_semantics<parallel>, #tpu.dimension_semantics<arbitrary>], iteration_bounds = array<i64: 1, 1>, scalar_prefetch = 0 : i64, scratch_operands = 4 : i64, tpu.core_type = #tpu.core_type<tc>, window_params = [{transform_indices = @transform_0, window_bounds = array<i64: 8, 8, 128>}, {pipeline_mode = #tpu.pipeline_mode<synchronous>, transform_indices = @transform_1, window_bounds = array<i64: 32, 128>}, {pipeline_mode = #tpu.pipeline_mode<synchronous>, transform_indices = @transform_2, window_bounds = array<i64: 64, 128>}, {pipeline_mode = #tpu.pipeline_mode<synchronous>, transform_indices = @transform_3, window_bounds = array<i64: 1, 128>}, {pipeline_mode = #tpu.pipeline_mode<synchronous>, transform_indices = @transform_4, window_bounds = array<i64: 32, 128>}, {pipeline_mode = #tpu.pipeline_mode<synchronous>, transform_indices = @transform_5, window_bounds = array<i64: 1, 128>}, {transform_indices = @transform_6, window_bounds = array<i64: 8, 8, 128>}]} {
    %c0_i32 = arith.constant 0 : i32
    %0 = arith.cmpi eq, %arg1, %c0_i32 : i32
    %1 = arith.extui %0 : i1 to i32
    %c0_i32_0 = arith.constant 0 : i32
    %2 = arith.cmpi ne, %1, %c0_i32_0 : i32
    scf.if %2 {
      %cst_98 = arith.constant 0.000000e+00 : f32
      %388 = vector.broadcast %cst_98 : f32 to vector<8x32xf32>
      %c0_99 = arith.constant 0 : index
      %c0_100 = arith.constant 0 : index
      %389 = vector.load %arg9[%c0_99, %c0_100] : memref<8x32xf32, #tpu.memory_space<vmem>>, vector<8x32xf32>
      tpu.vector_store %arg9[%c0_99, %c0_100], %388 {strides = array<i32>} : memref<8x32xf32, #tpu.memory_space<vmem>>, vector<8x32xf32>,
      %cst_101 = arith.constant 0.000000e+00 : f32
      %390 = vector.broadcast %cst_101 : f32 to vector<8x32xf32>
      %c0_102 = arith.constant 0 : index
      %c0_103 = arith.constant 0 : index
      %391 = vector.load %arg10[%c0_102, %c0_103] : memref<8x32xf32, #tpu.memory_space<vmem>>, vector<8x32xf32>
      tpu.vector_store %arg10[%c0_102, %c0_103], %390 {strides = array<i32>} : memref<8x32xf32, #tpu.memory_space<vmem>>, vector<8x32xf32>,
      %cst_104 = arith.constant 0.000000e+00 : f32
      %392 = vector.broadcast %cst_104 : f32 to vector<8x32xf32>
      %c0_105 = arith.constant 0 : index
      %c0_106 = arith.constant 0 : index
      %393 = vector.load %arg11[%c0_105, %c0_106] : memref<8x32xf32, #tpu.memory_space<vmem>>, vector<8x32xf32>
      tpu.vector_store %arg11[%c0_105, %c0_106], %392 {strides = array<i32>} : memref<8x32xf32, #tpu.memory_space<vmem>>, vector<8x32xf32>,
      %cst_107 = arith.constant 0.000000e+00 : f32
      %394 = vector.broadcast %cst_107 : f32 to vector<8x32xf32>
      %c0_108 = arith.constant 0 : index
      %c0_109 = arith.constant 0 : index
      %395 = vector.load %arg12[%c0_108, %c0_109] : memref<8x32xf32, #tpu.memory_space<vmem>>, vector<8x32xf32>
      tpu.vector_store %arg12[%c0_108, %c0_109], %394 {strides = array<i32>} : memref<8x32xf32, #tpu.memory_space<vmem>>, vector<8x32xf32>,
    } else {
    }
    %c0 = arith.constant 0 : index
    %c0_1 = arith.constant 0 : index
    %3 = vector.load %arg3[%c0, %c0_1] : memref<32x128xf32, #tpu.memory_space<vmem>>, vector<32x128xf32>
    %c0_2 = arith.constant 0 : index
    %c0_3 = arith.constant 0 : index
    %4 = vector.load %arg4[%c0_2, %c0_3] : memref<64x128xf32, #tpu.memory_space<vmem>>, vector<64x128xf32>
    %c0_4 = arith.constant 0 : index
    %c0_5 = arith.constant 0 : index
    %5 = vector.load %arg6[%c0_4, %c0_5] : memref<32x128xf32, #tpu.memory_space<vmem>>, vector<32x128xf32>
    %c0_6 = arith.constant 0 : index
    %c0_7 = arith.constant 0 : index
    %6 = vector.load %arg5[%c0_6, %c0_7] : memref<1x128xf32, #tpu.memory_space<vmem>>, vector<1x128xf32>
    %7 = vector.shape_cast %6 : vector<1x128xf32> to vector<1x128xf32>
    %8 = vector.broadcast %7 : vector<1x128xf32> to vector<8x128xf32>
    %c0_8 = arith.constant 0 : index
    %c0_9 = arith.constant 0 : index
    %9 = vector.load %arg7[%c0_8, %c0_9] : memref<1x128xf32, #tpu.memory_space<vmem>>, vector<1x128xf32>
    %10 = vector.shape_cast %9 : vector<1x128xf32> to vector<1x128xf32>
    %11 = vector.broadcast %10 : vector<1x128xf32> to vector<8x128xf32>
    %c0_10 = arith.constant 0 : index
    %c0_11 = arith.constant 0 : index
    %12 = vector.load %arg9[%c0_10, %c0_11] : memref<8x32xf32, #tpu.memory_space<vmem>>, vector<8x32xf32>
    %c0_12 = arith.constant 0 : index
    %c0_13 = arith.constant 0 : index
    %13 = vector.load %arg10[%c0_12, %c0_13] : memref<8x32xf32, #tpu.memory_space<vmem>>, vector<8x32xf32>
    %c0_14 = arith.constant 0 : index
    %c0_15 = arith.constant 0 : index
    %14 = vector.load %arg11[%c0_14, %c0_15] : memref<8x32xf32, #tpu.memory_space<vmem>>, vector<8x32xf32>
    %c0_16 = arith.constant 0 : index
    %c0_17 = arith.constant 0 : index
    %15 = vector.load %arg12[%c0_16, %c0_17] : memref<8x32xf32, #tpu.memory_space<vmem>>, vector<8x32xf32>
    %c0_i32_18 = arith.constant 0 : i32
    %16 = arith.index_cast %c0_i32_18 : i32 to index
    %c0_19 = arith.constant 0 : index
    %c0_20 = arith.constant 0 : index
    %17 = vector.load %arg2[%16, %c0_19, %c0_20] : memref<8x8x128xf32, #tpu.memory_space<vmem>>, vector<1x8x128xf32>
    %18 = vector.shape_cast %17 : vector<1x8x128xf32> to vector<8x128xf32>
    %cst = arith.constant dense<0.000000e+00> : vector<8x128xf32>
    %19 = tpu.matmul %12, %3, %cst {dimension_numbers = #tpu.dot_dimension_numbers<[1], [0], [0], [1], [0, 0, 1, 1], [], []>} : vector<8x32xf32>, vector<32x128xf32>, vector<8x128xf32> -> vector<8x128xf32>
    %20 = arith.addf %18, %19 : vector<8x128xf32>
    %21 = vector.extract_strided_slice %20 {offsets = [0, 0], sizes = [8, 96], strides = [1, 1]} : vector<8x128xf32> to vector<8x96xf32>
    %22 = arith.negf %21 : vector<8x96xf32>
    %23 = math.exp %22 : vector<8x96xf32>
    %cst_21 = arith.constant 1.000000e+00 : f32
    %24 = vector.broadcast %cst_21 : f32 to vector<8x96xf32>
    %25 = arith.addf %24, %23 : vector<8x96xf32>
    %26 = arith.divf %24, %25 : vector<8x96xf32>
    %27 = vector.extract_strided_slice %20 {offsets = [0, 96], sizes = [8, 32], strides = [1, 1]} : vector<8x128xf32> to vector<8x32xf32>
    %28 = math.tanh %27 : vector<8x32xf32>
    %29 = vector.extract_strided_slice %26 {offsets = [0, 0], sizes = [8, 32], strides = [1, 1]} : vector<8x96xf32> to vector<8x32xf32>
    %30 = vector.extract_strided_slice %26 {offsets = [0, 32], sizes = [8, 32], strides = [1, 1]} : vector<8x96xf32> to vector<8x32xf32>
    %31 = vector.extract_strided_slice %26 {offsets = [0, 64], sizes = [8, 32], strides = [1, 1]} : vector<8x96xf32> to vector<8x32xf32>
    %32 = arith.mulf %30, %13 : vector<8x32xf32>
    %33 = arith.mulf %29, %28 : vector<8x32xf32>
    %34 = arith.addf %32, %33 : vector<8x32xf32>
    %35 = math.tanh %34 : vector<8x32xf32>
    %36 = arith.mulf %31, %35 : vector<8x32xf32>
    %37 = tpu.concatenate %36, %14 in 1 : vector<8x32xf32>, vector<8x32xf32> -> vector<8x64xf32>
    %cst_22 = arith.constant dense<0.000000e+00> : vector<8x128xf32>
    %38 = tpu.matmul %37, %4, %cst_22 {dimension_numbers = #tpu.dot_dimension_numbers<[1], [0], [0], [1], [0, 0, 1, 1], [], []>} : vector<8x64xf32>, vector<64x128xf32>, vector<8x128xf32> -> vector<8x128xf32>
    %39 = arith.addf %38, %8 : vector<8x128xf32>
    %40 = vector.extract_strided_slice %39 {offsets = [0, 0], sizes = [8, 96], strides = [1, 1]} : vector<8x128xf32> to vector<8x96xf32>
    %41 = arith.negf %40 : vector<8x96xf32>
    %42 = math.exp %41 : vector<8x96xf32>
    %cst_23 = arith.constant 1.000000e+00 : f32
    %43 = vector.broadcast %cst_23 : f32 to vector<8x96xf32>
    %44 = arith.addf %43, %42 : vector<8x96xf32>
    %45 = arith.divf %43, %44 : vector<8x96xf32>
    %46 = vector.extract_strided_slice %39 {offsets = [0, 96], sizes = [8, 32], strides = [1, 1]} : vector<8x128xf32> to vector<8x32xf32>
    %47 = math.tanh %46 : vector<8x32xf32>
    %48 = vector.extract_strided_slice %45 {offsets = [0, 0], sizes = [8, 32], strides = [1, 1]} : vector<8x96xf32> to vector<8x32xf32>
    %49 = vector.extract_strided_slice %45 {offsets = [0, 32], sizes = [8, 32], strides = [1, 1]} : vector<8x96xf32> to vector<8x32xf32>
    %50 = vector.extract_strided_slice %45 {offsets = [0, 64], sizes = [8, 32], strides = [1, 1]} : vector<8x96xf32> to vector<8x32xf32>
    %51 = arith.mulf %49, %15 : vector<8x32xf32>
    %52 = arith.mulf %48, %47 : vector<8x32xf32>
    %53 = arith.addf %51, %52 : vector<8x32xf32>
    %54 = math.tanh %53 : vector<8x32xf32>
    %55 = arith.mulf %50, %54 : vector<8x32xf32>
    %cst_24 = arith.constant dense<0.000000e+00> : vector<8x128xf32>
    %56 = tpu.matmul %55, %5, %cst_24 {dimension_numbers = #tpu.dot_dimension_numbers<[1], [0], [0], [1], [0, 0, 1, 1], [], []>} : vector<8x32xf32>, vector<32x128xf32>, vector<8x128xf32> -> vector<8x128xf32>
    %57 = arith.addf %56, %11 : vector<8x128xf32>
    %58 = arith.index_cast %c0_i32_18 : i32 to index
    %c0_25 = arith.constant 0 : index
    %c0_26 = arith.constant 0 : index
    %59 = vector.load %arg8[%58, %c0_25, %c0_26] : memref<8x8x128xf32, #tpu.memory_space<vmem>>, vector<1x8x128xf32>
    %60 = vector.shape_cast %59 : vector<1x8x128xf32> to vector<8x128xf32>
    %61 = vector.shape_cast %57 : vector<8x128xf32> to vector<1x8x128xf32>
    tpu.vector_store %arg8[%58, %c0_25, %c0_26], %61 {strides = array<i32>} : memref<8x8x128xf32, #tpu.memory_space<vmem>>, vector<1x8x128xf32>,
    %c1_i32 = arith.constant 1 : i32
    %62 = arith.index_cast %c1_i32 : i32 to index
    %c0_27 = arith.constant 0 : index
    %c0_28 = arith.constant 0 : index
    %63 = vector.load %arg2[%62, %c0_27, %c0_28] : memref<8x8x128xf32, #tpu.memory_space<vmem>>, vector<1x8x128xf32>
    %64 = vector.shape_cast %63 : vector<1x8x128xf32> to vector<8x128xf32>
    %cst_29 = arith.constant dense<0.000000e+00> : vector<8x128xf32>
    %65 = tpu.matmul %36, %3, %cst_29 {dimension_numbers = #tpu.dot_dimension_numbers<[1], [0], [0], [1], [0, 0, 1, 1], [], []>} : vector<8x32xf32>, vector<32x128xf32>, vector<8x128xf32> -> vector<8x128xf32>
    %66 = arith.addf %64, %65 : vector<8x128xf32>
    %67 = vector.extract_strided_slice %66 {offsets = [0, 0], sizes = [8, 96], strides = [1, 1]} : vector<8x128xf32> to vector<8x96xf32>
    %68 = arith.negf %67 : vector<8x96xf32>
    %69 = math.exp %68 : vector<8x96xf32>
    %cst_30 = arith.constant 1.000000e+00 : f32
    %70 = vector.broadcast %cst_30 : f32 to vector<8x96xf32>
    %71 = arith.addf %70, %69 : vector<8x96xf32>
    %72 = arith.divf %70, %71 : vector<8x96xf32>
    %73 = vector.extract_strided_slice %66 {offsets = [0, 96], sizes = [8, 32], strides = [1, 1]} : vector<8x128xf32> to vector<8x32xf32>
    %74 = math.tanh %73 : vector<8x32xf32>
    %75 = vector.extract_strided_slice %72 {offsets = [0, 0], sizes = [8, 32], strides = [1, 1]} : vector<8x96xf32> to vector<8x32xf32>
    %76 = vector.extract_strided_slice %72 {offsets = [0, 32], sizes = [8, 32], strides = [1, 1]} : vector<8x96xf32> to vector<8x32xf32>
    %77 = vector.extract_strided_slice %72 {offsets = [0, 64], sizes = [8, 32], strides = [1, 1]} : vector<8x96xf32> to vector<8x32xf32>
    %78 = arith.mulf %76, %34 : vector<8x32xf32>
    %79 = arith.mulf %75, %74 : vector<8x32xf32>
    %80 = arith.addf %78, %79 : vector<8x32xf32>
    %81 = math.tanh %80 : vector<8x32xf32>
    %82 = arith.mulf %77, %81 : vector<8x32xf32>
    %83 = tpu.concatenate %82, %55 in 1 : vector<8x32xf32>, vector<8x32xf32> -> vector<8x64xf32>
    %cst_31 = arith.constant dense<0.000000e+00> : vector<8x128xf32>
    %84 = tpu.matmul %83, %4, %cst_31 {dimension_numbers = #tpu.dot_dimension_numbers<[1], [0], [0], [1], [0, 0, 1, 1], [], []>} : vector<8x64xf32>, vector<64x128xf32>, vector<8x128xf32> -> vector<8x128xf32>
    %85 = arith.addf %84, %8 : vector<8x128xf32>
    %86 = vector.extract_strided_slice %85 {offsets = [0, 0], sizes = [8, 96], strides = [1, 1]} : vector<8x128xf32> to vector<8x96xf32>
    %87 = arith.negf %86 : vector<8x96xf32>
    %88 = math.exp %87 : vector<8x96xf32>
    %cst_32 = arith.constant 1.000000e+00 : f32
    %89 = vector.broadcast %cst_32 : f32 to vector<8x96xf32>
    %90 = arith.addf %89, %88 : vector<8x96xf32>
    %91 = arith.divf %89, %90 : vector<8x96xf32>
    %92 = vector.extract_strided_slice %85 {offsets = [0, 96], sizes = [8, 32], strides = [1, 1]} : vector<8x128xf32> to vector<8x32xf32>
    %93 = math.tanh %92 : vector<8x32xf32>
    %94 = vector.extract_strided_slice %91 {offsets = [0, 0], sizes = [8, 32], strides = [1, 1]} : vector<8x96xf32> to vector<8x32xf32>
    %95 = vector.extract_strided_slice %91 {offsets = [0, 32], sizes = [8, 32], strides = [1, 1]} : vector<8x96xf32> to vector<8x32xf32>
    %96 = vector.extract_strided_slice %91 {offsets = [0, 64], sizes = [8, 32], strides = [1, 1]} : vector<8x96xf32> to vector<8x32xf32>
    %97 = arith.mulf %95, %53 : vector<8x32xf32>
    %98 = arith.mulf %94, %93 : vector<8x32xf32>
    %99 = arith.addf %97, %98 : vector<8x32xf32>
    %100 = math.tanh %99 : vector<8x32xf32>
    %101 = arith.mulf %96, %100 : vector<8x32xf32>
    %cst_33 = arith.constant dense<0.000000e+00> : vector<8x128xf32>
    %102 = tpu.matmul %101, %5, %cst_33 {dimension_numbers = #tpu.dot_dimension_numbers<[1], [0], [0], [1], [0, 0, 1, 1], [], []>} : vector<8x32xf32>, vector<32x128xf32>, vector<8x128xf32> -> vector<8x128xf32>
    %103 = arith.addf %102, %11 : vector<8x128xf32>
    %104 = arith.index_cast %c1_i32 : i32 to index
    %c0_34 = arith.constant 0 : index
    %c0_35 = arith.constant 0 : index
    %105 = vector.load %arg8[%104, %c0_34, %c0_35] : memref<8x8x128xf32, #tpu.memory_space<vmem>>, vector<1x8x128xf32>
    %106 = vector.shape_cast %105 : vector<1x8x128xf32> to vector<8x128xf32>
    %107 = vector.shape_cast %103 : vector<8x128xf32> to vector<1x8x128xf32>
    tpu.vector_store %arg8[%104, %c0_34, %c0_35], %107 {strides = array<i32>} : memref<8x8x128xf32, #tpu.memory_space<vmem>>, vector<1x8x128xf32>,
    %c2_i32 = arith.constant 2 : i32
    %108 = arith.index_cast %c2_i32 : i32 to index
    %c0_36 = arith.constant 0 : index
    %c0_37 = arith.constant 0 : index
    %109 = vector.load %arg2[%108, %c0_36, %c0_37] : memref<8x8x128xf32, #tpu.memory_space<vmem>>, vector<1x8x128xf32>
    %110 = vector.shape_cast %109 : vector<1x8x128xf32> to vector<8x128xf32>
    %cst_38 = arith.constant dense<0.000000e+00> : vector<8x128xf32>
    %111 = tpu.matmul %82, %3, %cst_38 {dimension_numbers = #tpu.dot_dimension_numbers<[1], [0], [0], [1], [0, 0, 1, 1], [], []>} : vector<8x32xf32>, vector<32x128xf32>, vector<8x128xf32> -> vector<8x128xf32>
    %112 = arith.addf %110, %111 : vector<8x128xf32>
    %113 = vector.extract_strided_slice %112 {offsets = [0, 0], sizes = [8, 96], strides = [1, 1]} : vector<8x128xf32> to vector<8x96xf32>
    %114 = arith.negf %113 : vector<8x96xf32>
    %115 = math.exp %114 : vector<8x96xf32>
    %cst_39 = arith.constant 1.000000e+00 : f32
    %116 = vector.broadcast %cst_39 : f32 to vector<8x96xf32>
    %117 = arith.addf %116, %115 : vector<8x96xf32>
    %118 = arith.divf %116, %117 : vector<8x96xf32>
    %119 = vector.extract_strided_slice %112 {offsets = [0, 96], sizes = [8, 32], strides = [1, 1]} : vector<8x128xf32> to vector<8x32xf32>
    %120 = math.tanh %119 : vector<8x32xf32>
    %121 = vector.extract_strided_slice %118 {offsets = [0, 0], sizes = [8, 32], strides = [1, 1]} : vector<8x96xf32> to vector<8x32xf32>
    %122 = vector.extract_strided_slice %118 {offsets = [0, 32], sizes = [8, 32], strides = [1, 1]} : vector<8x96xf32> to vector<8x32xf32>
    %123 = vector.extract_strided_slice %118 {offsets = [0, 64], sizes = [8, 32], strides = [1, 1]} : vector<8x96xf32> to vector<8x32xf32>
    %124 = arith.mulf %122, %80 : vector<8x32xf32>
    %125 = arith.mulf %121, %120 : vector<8x32xf32>
    %126 = arith.addf %124, %125 : vector<8x32xf32>
    %127 = math.tanh %126 : vector<8x32xf32>
    %128 = arith.mulf %123, %127 : vector<8x32xf32>
    %129 = tpu.concatenate %128, %101 in 1 : vector<8x32xf32>, vector<8x32xf32> -> vector<8x64xf32>
    %cst_40 = arith.constant dense<0.000000e+00> : vector<8x128xf32>
    %130 = tpu.matmul %129, %4, %cst_40 {dimension_numbers = #tpu.dot_dimension_numbers<[1], [0], [0], [1], [0, 0, 1, 1], [], []>} : vector<8x64xf32>, vector<64x128xf32>, vector<8x128xf32> -> vector<8x128xf32>
    %131 = arith.addf %130, %8 : vector<8x128xf32>
    %132 = vector.extract_strided_slice %131 {offsets = [0, 0], sizes = [8, 96], strides = [1, 1]} : vector<8x128xf32> to vector<8x96xf32>
    %133 = arith.negf %132 : vector<8x96xf32>
    %134 = math.exp %133 : vector<8x96xf32>
    %cst_41 = arith.constant 1.000000e+00 : f32
    %135 = vector.broadcast %cst_41 : f32 to vector<8x96xf32>
    %136 = arith.addf %135, %134 : vector<8x96xf32>
    %137 = arith.divf %135, %136 : vector<8x96xf32>
    %138 = vector.extract_strided_slice %131 {offsets = [0, 96], sizes = [8, 32], strides = [1, 1]} : vector<8x128xf32> to vector<8x32xf32>
    %139 = math.tanh %138 : vector<8x32xf32>
    %140 = vector.extract_strided_slice %137 {offsets = [0, 0], sizes = [8, 32], strides = [1, 1]} : vector<8x96xf32> to vector<8x32xf32>
    %141 = vector.extract_strided_slice %137 {offsets = [0, 32], sizes = [8, 32], strides = [1, 1]} : vector<8x96xf32> to vector<8x32xf32>
    %142 = vector.extract_strided_slice %137 {offsets = [0, 64], sizes = [8, 32], strides = [1, 1]} : vector<8x96xf32> to vector<8x32xf32>
    %143 = arith.mulf %141, %99 : vector<8x32xf32>
    %144 = arith.mulf %140, %139 : vector<8x32xf32>
    %145 = arith.addf %143, %144 : vector<8x32xf32>
    %146 = math.tanh %145 : vector<8x32xf32>
    %147 = arith.mulf %142, %146 : vector<8x32xf32>
    %cst_42 = arith.constant dense<0.000000e+00> : vector<8x128xf32>
    %148 = tpu.matmul %147, %5, %cst_42 {dimension_numbers = #tpu.dot_dimension_numbers<[1], [0], [0], [1], [0, 0, 1, 1], [], []>} : vector<8x32xf32>, vector<32x128xf32>, vector<8x128xf32> -> vector<8x128xf32>
    %149 = arith.addf %148, %11 : vector<8x128xf32>
    %150 = arith.index_cast %c2_i32 : i32 to index
    %c0_43 = arith.constant 0 : index
    %c0_44 = arith.constant 0 : index
    %151 = vector.load %arg8[%150, %c0_43, %c0_44] : memref<8x8x128xf32, #tpu.memory_space<vmem>>, vector<1x8x128xf32>
    %152 = vector.shape_cast %151 : vector<1x8x128xf32> to vector<8x128xf32>
    %153 = vector.shape_cast %149 : vector<8x128xf32> to vector<1x8x128xf32>
    tpu.vector_store %arg8[%150, %c0_43, %c0_44], %153 {strides = array<i32>} : memref<8x8x128xf32, #tpu.memory_space<vmem>>, vector<1x8x128xf32>,
    %c3_i32 = arith.constant 3 : i32
    %154 = arith.index_cast %c3_i32 : i32 to index
    %c0_45 = arith.constant 0 : index
    %c0_46 = arith.constant 0 : index
    %155 = vector.load %arg2[%154, %c0_45, %c0_46] : memref<8x8x128xf32, #tpu.memory_space<vmem>>, vector<1x8x128xf32>
    %156 = vector.shape_cast %155 : vector<1x8x128xf32> to vector<8x128xf32>
    %cst_47 = arith.constant dense<0.000000e+00> : vector<8x128xf32>
    %157 = tpu.matmul %128, %3, %cst_47 {dimension_numbers = #tpu.dot_dimension_numbers<[1], [0], [0], [1], [0, 0, 1, 1], [], []>} : vector<8x32xf32>, vector<32x128xf32>, vector<8x128xf32> -> vector<8x128xf32>
    %158 = arith.addf %156, %157 : vector<8x128xf32>
    %159 = vector.extract_strided_slice %158 {offsets = [0, 0], sizes = [8, 96], strides = [1, 1]} : vector<8x128xf32> to vector<8x96xf32>
    %160 = arith.negf %159 : vector<8x96xf32>
    %161 = math.exp %160 : vector<8x96xf32>
    %cst_48 = arith.constant 1.000000e+00 : f32
    %162 = vector.broadcast %cst_48 : f32 to vector<8x96xf32>
    %163 = arith.addf %162, %161 : vector<8x96xf32>
    %164 = arith.divf %162, %163 : vector<8x96xf32>
    %165 = vector.extract_strided_slice %158 {offsets = [0, 96], sizes = [8, 32], strides = [1, 1]} : vector<8x128xf32> to vector<8x32xf32>
    %166 = math.tanh %165 : vector<8x32xf32>
    %167 = vector.extract_strided_slice %164 {offsets = [0, 0], sizes = [8, 32], strides = [1, 1]} : vector<8x96xf32> to vector<8x32xf32>
    %168 = vector.extract_strided_slice %164 {offsets = [0, 32], sizes = [8, 32], strides = [1, 1]} : vector<8x96xf32> to vector<8x32xf32>
    %169 = vector.extract_strided_slice %164 {offsets = [0, 64], sizes = [8, 32], strides = [1, 1]} : vector<8x96xf32> to vector<8x32xf32>
    %170 = arith.mulf %168, %126 : vector<8x32xf32>
    %171 = arith.mulf %167, %166 : vector<8x32xf32>
    %172 = arith.addf %170, %171 : vector<8x32xf32>
    %173 = math.tanh %172 : vector<8x32xf32>
    %174 = arith.mulf %169, %173 : vector<8x32xf32>
    %175 = tpu.concatenate %174, %147 in 1 : vector<8x32xf32>, vector<8x32xf32> -> vector<8x64xf32>
    %cst_49 = arith.constant dense<0.000000e+00> : vector<8x128xf32>
    %176 = tpu.matmul %175, %4, %cst_49 {dimension_numbers = #tpu.dot_dimension_numbers<[1], [0], [0], [1], [0, 0, 1, 1], [], []>} : vector<8x64xf32>, vector<64x128xf32>, vector<8x128xf32> -> vector<8x128xf32>
    %177 = arith.addf %176, %8 : vector<8x128xf32>
    %178 = vector.extract_strided_slice %177 {offsets = [0, 0], sizes = [8, 96], strides = [1, 1]} : vector<8x128xf32> to vector<8x96xf32>
    %179 = arith.negf %178 : vector<8x96xf32>
    %180 = math.exp %179 : vector<8x96xf32>
    %cst_50 = arith.constant 1.000000e+00 : f32
    %181 = vector.broadcast %cst_50 : f32 to vector<8x96xf32>
    %182 = arith.addf %181, %180 : vector<8x96xf32>
    %183 = arith.divf %181, %182 : vector<8x96xf32>
    %184 = vector.extract_strided_slice %177 {offsets = [0, 96], sizes = [8, 32], strides = [1, 1]} : vector<8x128xf32> to vector<8x32xf32>
    %185 = math.tanh %184 : vector<8x32xf32>
    %186 = vector.extract_strided_slice %183 {offsets = [0, 0], sizes = [8, 32], strides = [1, 1]} : vector<8x96xf32> to vector<8x32xf32>
    %187 = vector.extract_strided_slice %183 {offsets = [0, 32], sizes = [8, 32], strides = [1, 1]} : vector<8x96xf32> to vector<8x32xf32>
    %188 = vector.extract_strided_slice %183 {offsets = [0, 64], sizes = [8, 32], strides = [1, 1]} : vector<8x96xf32> to vector<8x32xf32>
    %189 = arith.mulf %187, %145 : vector<8x32xf32>
    %190 = arith.mulf %186, %185 : vector<8x32xf32>
    %191 = arith.addf %189, %190 : vector<8x32xf32>
    %192 = math.tanh %191 : vector<8x32xf32>
    %193 = arith.mulf %188, %192 : vector<8x32xf32>
    %cst_51 = arith.constant dense<0.000000e+00> : vector<8x128xf32>
    %194 = tpu.matmul %193, %5, %cst_51 {dimension_numbers = #tpu.dot_dimension_numbers<[1], [0], [0], [1], [0, 0, 1, 1], [], []>} : vector<8x32xf32>, vector<32x128xf32>, vector<8x128xf32> -> vector<8x128xf32>
    %195 = arith.addf %194, %11 : vector<8x128xf32>
    %196 = arith.index_cast %c3_i32 : i32 to index
    %c0_52 = arith.constant 0 : index
    %c0_53 = arith.constant 0 : index
    %197 = vector.load %arg8[%196, %c0_52, %c0_53] : memref<8x8x128xf32, #tpu.memory_space<vmem>>, vector<1x8x128xf32>
    %198 = vector.shape_cast %197 : vector<1x8x128xf32> to vector<8x128xf32>
    %199 = vector.shape_cast %195 : vector<8x128xf32> to vector<1x8x128xf32>
    tpu.vector_store %arg8[%196, %c0_52, %c0_53], %199 {strides = array<i32>} : memref<8x8x128xf32, #tpu.memory_space<vmem>>, vector<1x8x128xf32>,
    %c4_i32 = arith.constant 4 : i32
    %200 = arith.index_cast %c4_i32 : i32 to index
    %c0_54 = arith.constant 0 : index
    %c0_55 = arith.constant 0 : index
    %201 = vector.load %arg2[%200, %c0_54, %c0_55] : memref<8x8x128xf32, #tpu.memory_space<vmem>>, vector<1x8x128xf32>
    %202 = vector.shape_cast %201 : vector<1x8x128xf32> to vector<8x128xf32>
    %cst_56 = arith.constant dense<0.000000e+00> : vector<8x128xf32>
    %203 = tpu.matmul %174, %3, %cst_56 {dimension_numbers = #tpu.dot_dimension_numbers<[1], [0], [0], [1], [0, 0, 1, 1], [], []>} : vector<8x32xf32>, vector<32x128xf32>, vector<8x128xf32> -> vector<8x128xf32>
    %204 = arith.addf %202, %203 : vector<8x128xf32>
    %205 = vector.extract_strided_slice %204 {offsets = [0, 0], sizes = [8, 96], strides = [1, 1]} : vector<8x128xf32> to vector<8x96xf32>
    %206 = arith.negf %205 : vector<8x96xf32>
    %207 = math.exp %206 : vector<8x96xf32>
    %cst_57 = arith.constant 1.000000e+00 : f32
    %208 = vector.broadcast %cst_57 : f32 to vector<8x96xf32>
    %209 = arith.addf %208, %207 : vector<8x96xf32>
    %210 = arith.divf %208, %209 : vector<8x96xf32>
    %211 = vector.extract_strided_slice %204 {offsets = [0, 96], sizes = [8, 32], strides = [1, 1]} : vector<8x128xf32> to vector<8x32xf32>
    %212 = math.tanh %211 : vector<8x32xf32>
    %213 = vector.extract_strided_slice %210 {offsets = [0, 0], sizes = [8, 32], strides = [1, 1]} : vector<8x96xf32> to vector<8x32xf32>
    %214 = vector.extract_strided_slice %210 {offsets = [0, 32], sizes = [8, 32], strides = [1, 1]} : vector<8x96xf32> to vector<8x32xf32>
    %215 = vector.extract_strided_slice %210 {offsets = [0, 64], sizes = [8, 32], strides = [1, 1]} : vector<8x96xf32> to vector<8x32xf32>
    %216 = arith.mulf %214, %172 : vector<8x32xf32>
    %217 = arith.mulf %213, %212 : vector<8x32xf32>
    %218 = arith.addf %216, %217 : vector<8x32xf32>
    %219 = math.tanh %218 : vector<8x32xf32>
    %220 = arith.mulf %215, %219 : vector<8x32xf32>
    %221 = tpu.concatenate %220, %193 in 1 : vector<8x32xf32>, vector<8x32xf32> -> vector<8x64xf32>
    %cst_58 = arith.constant dense<0.000000e+00> : vector<8x128xf32>
    %222 = tpu.matmul %221, %4, %cst_58 {dimension_numbers = #tpu.dot_dimension_numbers<[1], [0], [0], [1], [0, 0, 1, 1], [], []>} : vector<8x64xf32>, vector<64x128xf32>, vector<8x128xf32> -> vector<8x128xf32>
    %223 = arith.addf %222, %8 : vector<8x128xf32>
    %224 = vector.extract_strided_slice %223 {offsets = [0, 0], sizes = [8, 96], strides = [1, 1]} : vector<8x128xf32> to vector<8x96xf32>
    %225 = arith.negf %224 : vector<8x96xf32>
    %226 = math.exp %225 : vector<8x96xf32>
    %cst_59 = arith.constant 1.000000e+00 : f32
    %227 = vector.broadcast %cst_59 : f32 to vector<8x96xf32>
    %228 = arith.addf %227, %226 : vector<8x96xf32>
    %229 = arith.divf %227, %228 : vector<8x96xf32>
    %230 = vector.extract_strided_slice %223 {offsets = [0, 96], sizes = [8, 32], strides = [1, 1]} : vector<8x128xf32> to vector<8x32xf32>
    %231 = math.tanh %230 : vector<8x32xf32>
    %232 = vector.extract_strided_slice %229 {offsets = [0, 0], sizes = [8, 32], strides = [1, 1]} : vector<8x96xf32> to vector<8x32xf32>
    %233 = vector.extract_strided_slice %229 {offsets = [0, 32], sizes = [8, 32], strides = [1, 1]} : vector<8x96xf32> to vector<8x32xf32>
    %234 = vector.extract_strided_slice %229 {offsets = [0, 64], sizes = [8, 32], strides = [1, 1]} : vector<8x96xf32> to vector<8x32xf32>
    %235 = arith.mulf %233, %191 : vector<8x32xf32>
    %236 = arith.mulf %232, %231 : vector<8x32xf32>
    %237 = arith.addf %235, %236 : vector<8x32xf32>
    %238 = math.tanh %237 : vector<8x32xf32>
    %239 = arith.mulf %234, %238 : vector<8x32xf32>
    %cst_60 = arith.constant dense<0.000000e+00> : vector<8x128xf32>
    %240 = tpu.matmul %239, %5, %cst_60 {dimension_numbers = #tpu.dot_dimension_numbers<[1], [0], [0], [1], [0, 0, 1, 1], [], []>} : vector<8x32xf32>, vector<32x128xf32>, vector<8x128xf32> -> vector<8x128xf32>
    %241 = arith.addf %240, %11 : vector<8x128xf32>
    %242 = arith.index_cast %c4_i32 : i32 to index
    %c0_61 = arith.constant 0 : index
    %c0_62 = arith.constant 0 : index
    %243 = vector.load %arg8[%242, %c0_61, %c0_62] : memref<8x8x128xf32, #tpu.memory_space<vmem>>, vector<1x8x128xf32>
    %244 = vector.shape_cast %243 : vector<1x8x128xf32> to vector<8x128xf32>
    %245 = vector.shape_cast %241 : vector<8x128xf32> to vector<1x8x128xf32>
    tpu.vector_store %arg8[%242, %c0_61, %c0_62], %245 {strides = array<i32>} : memref<8x8x128xf32, #tpu.memory_space<vmem>>, vector<1x8x128xf32>,
    %c5_i32 = arith.constant 5 : i32
    %246 = arith.index_cast %c5_i32 : i32 to index
    %c0_63 = arith.constant 0 : index
    %c0_64 = arith.constant 0 : index
    %247 = vector.load %arg2[%246, %c0_63, %c0_64] : memref<8x8x128xf32, #tpu.memory_space<vmem>>, vector<1x8x128xf32>
    %248 = vector.shape_cast %247 : vector<1x8x128xf32> to vector<8x128xf32>
    %cst_65 = arith.constant dense<0.000000e+00> : vector<8x128xf32>
    %249 = tpu.matmul %220, %3, %cst_65 {dimension_numbers = #tpu.dot_dimension_numbers<[1], [0], [0], [1], [0, 0, 1, 1], [], []>} : vector<8x32xf32>, vector<32x128xf32>, vector<8x128xf32> -> vector<8x128xf32>
    %250 = arith.addf %248, %249 : vector<8x128xf32>
    %251 = vector.extract_strided_slice %250 {offsets = [0, 0], sizes = [8, 96], strides = [1, 1]} : vector<8x128xf32> to vector<8x96xf32>
    %252 = arith.negf %251 : vector<8x96xf32>
    %253 = math.exp %252 : vector<8x96xf32>
    %cst_66 = arith.constant 1.000000e+00 : f32
    %254 = vector.broadcast %cst_66 : f32 to vector<8x96xf32>
    %255 = arith.addf %254, %253 : vector<8x96xf32>
    %256 = arith.divf %254, %255 : vector<8x96xf32>
    %257 = vector.extract_strided_slice %250 {offsets = [0, 96], sizes = [8, 32], strides = [1, 1]} : vector<8x128xf32> to vector<8x32xf32>
    %258 = math.tanh %257 : vector<8x32xf32>
    %259 = vector.extract_strided_slice %256 {offsets = [0, 0], sizes = [8, 32], strides = [1, 1]} : vector<8x96xf32> to vector<8x32xf32>
    %260 = vector.extract_strided_slice %256 {offsets = [0, 32], sizes = [8, 32], strides = [1, 1]} : vector<8x96xf32> to vector<8x32xf32>
    %261 = vector.extract_strided_slice %256 {offsets = [0, 64], sizes = [8, 32], strides = [1, 1]} : vector<8x96xf32> to vector<8x32xf32>
    %262 = arith.mulf %260, %218 : vector<8x32xf32>
    %263 = arith.mulf %259, %258 : vector<8x32xf32>
    %264 = arith.addf %262, %263 : vector<8x32xf32>
    %265 = math.tanh %264 : vector<8x32xf32>
    %266 = arith.mulf %261, %265 : vector<8x32xf32>
    %267 = tpu.concatenate %266, %239 in 1 : vector<8x32xf32>, vector<8x32xf32> -> vector<8x64xf32>
    %cst_67 = arith.constant dense<0.000000e+00> : vector<8x128xf32>
    %268 = tpu.matmul %267, %4, %cst_67 {dimension_numbers = #tpu.dot_dimension_numbers<[1], [0], [0], [1], [0, 0, 1, 1], [], []>} : vector<8x64xf32>, vector<64x128xf32>, vector<8x128xf32> -> vector<8x128xf32>
    %269 = arith.addf %268, %8 : vector<8x128xf32>
    %270 = vector.extract_strided_slice %269 {offsets = [0, 0], sizes = [8, 96], strides = [1, 1]} : vector<8x128xf32> to vector<8x96xf32>
    %271 = arith.negf %270 : vector<8x96xf32>
    %272 = math.exp %271 : vector<8x96xf32>
    %cst_68 = arith.constant 1.000000e+00 : f32
    %273 = vector.broadcast %cst_68 : f32 to vector<8x96xf32>
    %274 = arith.addf %273, %272 : vector<8x96xf32>
    %275 = arith.divf %273, %274 : vector<8x96xf32>
    %276 = vector.extract_strided_slice %269 {offsets = [0, 96], sizes = [8, 32], strides = [1, 1]} : vector<8x128xf32> to vector<8x32xf32>
    %277 = math.tanh %276 : vector<8x32xf32>
    %278 = vector.extract_strided_slice %275 {offsets = [0, 0], sizes = [8, 32], strides = [1, 1]} : vector<8x96xf32> to vector<8x32xf32>
    %279 = vector.extract_strided_slice %275 {offsets = [0, 32], sizes = [8, 32], strides = [1, 1]} : vector<8x96xf32> to vector<8x32xf32>
    %280 = vector.extract_strided_slice %275 {offsets = [0, 64], sizes = [8, 32], strides = [1, 1]} : vector<8x96xf32> to vector<8x32xf32>
    %281 = arith.mulf %279, %237 : vector<8x32xf32>
    %282 = arith.mulf %278, %277 : vector<8x32xf32>
    %283 = arith.addf %281, %282 : vector<8x32xf32>
    %284 = math.tanh %283 : vector<8x32xf32>
    %285 = arith.mulf %280, %284 : vector<8x32xf32>
    %cst_69 = arith.constant dense<0.000000e+00> : vector<8x128xf32>
    %286 = tpu.matmul %285, %5, %cst_69 {dimension_numbers = #tpu.dot_dimension_numbers<[1], [0], [0], [1], [0, 0, 1, 1], [], []>} : vector<8x32xf32>, vector<32x128xf32>, vector<8x128xf32> -> vector<8x128xf32>
    %287 = arith.addf %286, %11 : vector<8x128xf32>
    %288 = arith.index_cast %c5_i32 : i32 to index
    %c0_70 = arith.constant 0 : index
    %c0_71 = arith.constant 0 : index
    %289 = vector.load %arg8[%288, %c0_70, %c0_71] : memref<8x8x128xf32, #tpu.memory_space<vmem>>, vector<1x8x128xf32>
    %290 = vector.shape_cast %289 : vector<1x8x128xf32> to vector<8x128xf32>
    %291 = vector.shape_cast %287 : vector<8x128xf32> to vector<1x8x128xf32>
    tpu.vector_store %arg8[%288, %c0_70, %c0_71], %291 {strides = array<i32>} : memref<8x8x128xf32, #tpu.memory_space<vmem>>, vector<1x8x128xf32>,
    %c6_i32 = arith.constant 6 : i32
    %292 = arith.index_cast %c6_i32 : i32 to index
    %c0_72 = arith.constant 0 : index
    %c0_73 = arith.constant 0 : index
    %293 = vector.load %arg2[%292, %c0_72, %c0_73] : memref<8x8x128xf32, #tpu.memory_space<vmem>>, vector<1x8x128xf32>
    %294 = vector.shape_cast %293 : vector<1x8x128xf32> to vector<8x128xf32>
    %cst_74 = arith.constant dense<0.000000e+00> : vector<8x128xf32>
    %295 = tpu.matmul %266, %3, %cst_74 {dimension_numbers = #tpu.dot_dimension_numbers<[1], [0], [0], [1], [0, 0, 1, 1], [], []>} : vector<8x32xf32>, vector<32x128xf32>, vector<8x128xf32> -> vector<8x128xf32>
    %296 = arith.addf %294, %295 : vector<8x128xf32>
    %297 = vector.extract_strided_slice %296 {offsets = [0, 0], sizes = [8, 96], strides = [1, 1]} : vector<8x128xf32> to vector<8x96xf32>
    %298 = arith.negf %297 : vector<8x96xf32>
    %299 = math.exp %298 : vector<8x96xf32>
    %cst_75 = arith.constant 1.000000e+00 : f32
    %300 = vector.broadcast %cst_75 : f32 to vector<8x96xf32>
    %301 = arith.addf %300, %299 : vector<8x96xf32>
    %302 = arith.divf %300, %301 : vector<8x96xf32>
    %303 = vector.extract_strided_slice %296 {offsets = [0, 96], sizes = [8, 32], strides = [1, 1]} : vector<8x128xf32> to vector<8x32xf32>
    %304 = math.tanh %303 : vector<8x32xf32>
    %305 = vector.extract_strided_slice %302 {offsets = [0, 0], sizes = [8, 32], strides = [1, 1]} : vector<8x96xf32> to vector<8x32xf32>
    %306 = vector.extract_strided_slice %302 {offsets = [0, 32], sizes = [8, 32], strides = [1, 1]} : vector<8x96xf32> to vector<8x32xf32>
    %307 = vector.extract_strided_slice %302 {offsets = [0, 64], sizes = [8, 32], strides = [1, 1]} : vector<8x96xf32> to vector<8x32xf32>
    %308 = arith.mulf %306, %264 : vector<8x32xf32>
    %309 = arith.mulf %305, %304 : vector<8x32xf32>
    %310 = arith.addf %308, %309 : vector<8x32xf32>
    %311 = math.tanh %310 : vector<8x32xf32>
    %312 = arith.mulf %307, %311 : vector<8x32xf32>
    %313 = tpu.concatenate %312, %285 in 1 : vector<8x32xf32>, vector<8x32xf32> -> vector<8x64xf32>
    %cst_76 = arith.constant dense<0.000000e+00> : vector<8x128xf32>
    %314 = tpu.matmul %313, %4, %cst_76 {dimension_numbers = #tpu.dot_dimension_numbers<[1], [0], [0], [1], [0, 0, 1, 1], [], []>} : vector<8x64xf32>, vector<64x128xf32>, vector<8x128xf32> -> vector<8x128xf32>
    %315 = arith.addf %314, %8 : vector<8x128xf32>
    %316 = vector.extract_strided_slice %315 {offsets = [0, 0], sizes = [8, 96], strides = [1, 1]} : vector<8x128xf32> to vector<8x96xf32>
    %317 = arith.negf %316 : vector<8x96xf32>
    %318 = math.exp %317 : vector<8x96xf32>
    %cst_77 = arith.constant 1.000000e+00 : f32
    %319 = vector.broadcast %cst_77 : f32 to vector<8x96xf32>
    %320 = arith.addf %319, %318 : vector<8x96xf32>
    %321 = arith.divf %319, %320 : vector<8x96xf32>
    %322 = vector.extract_strided_slice %315 {offsets = [0, 96], sizes = [8, 32], strides = [1, 1]} : vector<8x128xf32> to vector<8x32xf32>
    %323 = math.tanh %322 : vector<8x32xf32>
    %324 = vector.extract_strided_slice %321 {offsets = [0, 0], sizes = [8, 32], strides = [1, 1]} : vector<8x96xf32> to vector<8x32xf32>
    %325 = vector.extract_strided_slice %321 {offsets = [0, 32], sizes = [8, 32], strides = [1, 1]} : vector<8x96xf32> to vector<8x32xf32>
    %326 = vector.extract_strided_slice %321 {offsets = [0, 64], sizes = [8, 32], strides = [1, 1]} : vector<8x96xf32> to vector<8x32xf32>
    %327 = arith.mulf %325, %283 : vector<8x32xf32>
    %328 = arith.mulf %324, %323 : vector<8x32xf32>
    %329 = arith.addf %327, %328 : vector<8x32xf32>
    %330 = math.tanh %329 : vector<8x32xf32>
    %331 = arith.mulf %326, %330 : vector<8x32xf32>
    %cst_78 = arith.constant dense<0.000000e+00> : vector<8x128xf32>
    %332 = tpu.matmul %331, %5, %cst_78 {dimension_numbers = #tpu.dot_dimension_numbers<[1], [0], [0], [1], [0, 0, 1, 1], [], []>} : vector<8x32xf32>, vector<32x128xf32>, vector<8x128xf32> -> vector<8x128xf32>
    %333 = arith.addf %332, %11 : vector<8x128xf32>
    %334 = arith.index_cast %c6_i32 : i32 to index
    %c0_79 = arith.constant 0 : index
    %c0_80 = arith.constant 0 : index
    %335 = vector.load %arg8[%334, %c0_79, %c0_80] : memref<8x8x128xf32, #tpu.memory_space<vmem>>, vector<1x8x128xf32>
    %336 = vector.shape_cast %335 : vector<1x8x128xf32> to vector<8x128xf32>
    %337 = vector.shape_cast %333 : vector<8x128xf32> to vector<1x8x128xf32>
    tpu.vector_store %arg8[%334, %c0_79, %c0_80], %337 {strides = array<i32>} : memref<8x8x128xf32, #tpu.memory_space<vmem>>, vector<1x8x128xf32>,
    %c7_i32 = arith.constant 7 : i32
    %338 = arith.index_cast %c7_i32 : i32 to index
    %c0_81 = arith.constant 0 : index
    %c0_82 = arith.constant 0 : index
    %339 = vector.load %arg2[%338, %c0_81, %c0_82] : memref<8x8x128xf32, #tpu.memory_space<vmem>>, vector<1x8x128xf32>
    %340 = vector.shape_cast %339 : vector<1x8x128xf32> to vector<8x128xf32>
    %cst_83 = arith.constant dense<0.000000e+00> : vector<8x128xf32>
    %341 = tpu.matmul %312, %3, %cst_83 {dimension_numbers = #tpu.dot_dimension_numbers<[1], [0], [0], [1], [0, 0, 1, 1], [], []>} : vector<8x32xf32>, vector<32x128xf32>, vector<8x128xf32> -> vector<8x128xf32>
    %342 = arith.addf %340, %341 : vector<8x128xf32>
    %343 = vector.extract_strided_slice %342 {offsets = [0, 0], sizes = [8, 96], strides = [1, 1]} : vector<8x128xf32> to vector<8x96xf32>
    %344 = arith.negf %343 : vector<8x96xf32>
    %345 = math.exp %344 : vector<8x96xf32>
    %cst_84 = arith.constant 1.000000e+00 : f32
    %346 = vector.broadcast %cst_84 : f32 to vector<8x96xf32>
    %347 = arith.addf %346, %345 : vector<8x96xf32>
    %348 = arith.divf %346, %347 : vector<8x96xf32>
    %349 = vector.extract_strided_slice %342 {offsets = [0, 96], sizes = [8, 32], strides = [1, 1]} : vector<8x128xf32> to vector<8x32xf32>
    %350 = math.tanh %349 : vector<8x32xf32>
    %351 = vector.extract_strided_slice %348 {offsets = [0, 0], sizes = [8, 32], strides = [1, 1]} : vector<8x96xf32> to vector<8x32xf32>
    %352 = vector.extract_strided_slice %348 {offsets = [0, 32], sizes = [8, 32], strides = [1, 1]} : vector<8x96xf32> to vector<8x32xf32>
    %353 = vector.extract_strided_slice %348 {offsets = [0, 64], sizes = [8, 32], strides = [1, 1]} : vector<8x96xf32> to vector<8x32xf32>
    %354 = arith.mulf %352, %310 : vector<8x32xf32>
    %355 = arith.mulf %351, %350 : vector<8x32xf32>
    %356 = arith.addf %354, %355 : vector<8x32xf32>
    %357 = math.tanh %356 : vector<8x32xf32>
    %358 = arith.mulf %353, %357 : vector<8x32xf32>
    %359 = tpu.concatenate %358, %331 in 1 : vector<8x32xf32>, vector<8x32xf32> -> vector<8x64xf32>
    %cst_85 = arith.constant dense<0.000000e+00> : vector<8x128xf32>
    %360 = tpu.matmul %359, %4, %cst_85 {dimension_numbers = #tpu.dot_dimension_numbers<[1], [0], [0], [1], [0, 0, 1, 1], [], []>} : vector<8x64xf32>, vector<64x128xf32>, vector<8x128xf32> -> vector<8x128xf32>
    %361 = arith.addf %360, %8 : vector<8x128xf32>
    %362 = vector.extract_strided_slice %361 {offsets = [0, 0], sizes = [8, 96], strides = [1, 1]} : vector<8x128xf32> to vector<8x96xf32>
    %363 = arith.negf %362 : vector<8x96xf32>
    %364 = math.exp %363 : vector<8x96xf32>
    %cst_86 = arith.constant 1.000000e+00 : f32
    %365 = vector.broadcast %cst_86 : f32 to vector<8x96xf32>
    %366 = arith.addf %365, %364 : vector<8x96xf32>
    %367 = arith.divf %365, %366 : vector<8x96xf32>
    %368 = vector.extract_strided_slice %361 {offsets = [0, 96], sizes = [8, 32], strides = [1, 1]} : vector<8x128xf32> to vector<8x32xf32>
    %369 = math.tanh %368 : vector<8x32xf32>
    %370 = vector.extract_strided_slice %367 {offsets = [0, 0], sizes = [8, 32], strides = [1, 1]} : vector<8x96xf32> to vector<8x32xf32>
    %371 = vector.extract_strided_slice %367 {offsets = [0, 32], sizes = [8, 32], strides = [1, 1]} : vector<8x96xf32> to vector<8x32xf32>
    %372 = vector.extract_strided_slice %367 {offsets = [0, 64], sizes = [8, 32], strides = [1, 1]} : vector<8x96xf32> to vector<8x32xf32>
    %373 = arith.mulf %371, %329 : vector<8x32xf32>
    %374 = arith.mulf %370, %369 : vector<8x32xf32>
    %375 = arith.addf %373, %374 : vector<8x32xf32>
    %376 = math.tanh %375 : vector<8x32xf32>
    %377 = arith.mulf %372, %376 : vector<8x32xf32>
    %cst_87 = arith.constant dense<0.000000e+00> : vector<8x128xf32>
    %378 = tpu.matmul %377, %5, %cst_87 {dimension_numbers = #tpu.dot_dimension_numbers<[1], [0], [0], [1], [0, 0, 1, 1], [], []>} : vector<8x32xf32>, vector<32x128xf32>, vector<8x128xf32> -> vector<8x128xf32>
    %379 = arith.addf %378, %11 : vector<8x128xf32>
    %380 = arith.index_cast %c7_i32 : i32 to index
    %c0_88 = arith.constant 0 : index
    %c0_89 = arith.constant 0 : index
    %381 = vector.load %arg8[%380, %c0_88, %c0_89] : memref<8x8x128xf32, #tpu.memory_space<vmem>>, vector<1x8x128xf32>
    %382 = vector.shape_cast %381 : vector<1x8x128xf32> to vector<8x128xf32>
    %383 = vector.shape_cast %379 : vector<8x128xf32> to vector<1x8x128xf32>
    tpu.vector_store %arg8[%380, %c0_88, %c0_89], %383 {strides = array<i32>} : memref<8x8x128xf32, #tpu.memory_space<vmem>>, vector<1x8x128xf32>,
    %c8_i32 = arith.constant 8 : i32
    %c0_90 = arith.constant 0 : index
    %c0_91 = arith.constant 0 : index
    %384 = vector.load %arg9[%c0_90, %c0_91] : memref<8x32xf32, #tpu.memory_space<vmem>>, vector<8x32xf32>
    tpu.vector_store %arg9[%c0_90, %c0_91], %358 {strides = array<i32>} : memref<8x32xf32, #tpu.memory_space<vmem>>, vector<8x32xf32>,
    %c0_92 = arith.constant 0 : index
    %c0_93 = arith.constant 0 : index
    %385 = vector.load %arg10[%c0_92, %c0_93] : memref<8x32xf32, #tpu.memory_space<vmem>>, vector<8x32xf32>
    tpu.vector_store %arg10[%c0_92, %c0_93], %356 {strides = array<i32>} : memref<8x32xf32, #tpu.memory_space<vmem>>, vector<8x32xf32>,
    %c0_94 = arith.constant 0 : index
    %c0_95 = arith.constant 0 : index
    %386 = vector.load %arg11[%c0_94, %c0_95] : memref<8x32xf32, #tpu.memory_space<vmem>>, vector<8x32xf32>
    tpu.vector_store %arg11[%c0_94, %c0_95], %377 {strides = array<i32>} : memref<8x32xf32, #tpu.memory_space<vmem>>, vector<8x32xf32>,
    %c0_96 = arith.constant 0 : index
    %c0_97 = arith.constant 0 : index
    %387 = vector.load %arg12[%c0_96, %c0_97] : memref<8x32xf32, #tpu.memory_space<vmem>>, vector<8x32xf32>
    tpu.vector_store %arg12[%c0_96, %c0_97], %375 {strides = array<i32>} : memref<8x32xf32, #tpu.memory_space<vmem>>, vector<8x32xf32>,
    return
  }
  func.func @transform_0(%arg0: i32, %arg1: i32) -> (i32, i32, i32) {
    %c0_i32 = arith.constant 0 : i32
    %c0_i32_0 = arith.constant 0 : i32
    return %arg1, %arg0, %c0_i32 : i32, i32, i32
  }
  func.func @transform_1(%arg0: i32, %arg1: i32) -> (i32, i32) {
    %c0_i32 = arith.constant 0 : i32
    %c0_i32_0 = arith.constant 0 : i32
    %c0_i32_1 = arith.constant 0 : i32
    return %c0_i32, %c0_i32_0 : i32, i32
  }
  func.func @transform_2(%arg0: i32, %arg1: i32) -> (i32, i32) {
    %c0_i32 = arith.constant 0 : i32
    %c0_i32_0 = arith.constant 0 : i32
    %c0_i32_1 = arith.constant 0 : i32
    return %c0_i32, %c0_i32_0 : i32, i32
  }
  func.func @transform_3(%arg0: i32, %arg1: i32) -> (i32, i32) {
    %c0_i32 = arith.constant 0 : i32
    %c0_i32_0 = arith.constant 0 : i32
    %c0_i32_1 = arith.constant 0 : i32
    return %c0_i32, %c0_i32_0 : i32, i32
  }
  func.func @transform_4(%arg0: i32, %arg1: i32) -> (i32, i32) {
    %c0_i32 = arith.constant 0 : i32
    %c0_i32_0 = arith.constant 0 : i32
    %c0_i32_1 = arith.constant 0 : i32
    return %c0_i32, %c0_i32_0 : i32, i32
  }
  func.func @transform_5(%arg0: i32, %arg1: i32) -> (i32, i32) {
    %c0_i32 = arith.constant 0 : i32
    %c0_i32_0 = arith.constant 0 : i32
    %c0_i32_1 = arith.constant 0 : i32
    return %c0_i32, %c0_i32_0 : i32, i32
  }
  func.func @transform_6(%arg0: i32, %arg1: i32) -> (i32, i32, i32) {
    %c0_i32 = arith.constant 0 : i32
    %c0_i32_0 = arith.constant 0 : i32
    return %arg1, %arg0, %c0_i32 : i32, i32, i32
  }
}

</mosaic_0001>

<bundles_post_ra>
// kernel: voice_clone_forward.2
= control target key start
LH: loop header
LB: loop body
LE: loop exit
PB: predicated region body
PF: predicated region fallthrough
CT: control target
= control target key end

     0   :  { %vm15_vm0 = vcmask 261120   ;;  %v1099_v0 = vmov 0.0   ;;  %vm1100_vm1 = vmmov 0   ;;  %s1101_s18 = smov 32   ;;  %s1102_s19 = smov 64   ;;  %s1321_s1 = inlined_call_operand.vmem [shape: f32[32,128], index: 1, kind: input, shape index: {}]   ;;  %s1322_s0 = inlined_call_operand.vmem [shape: f32[8,8,128], index: 0, kind: input, shape index: {}]   ;;  %s1323_s2 = inlined_call_operand.vmem [shape: f32[8,32], index: 2, kind: output, shape index: {}]  }
   0x1   :  { %942 = vmatprep.subr.mxu0 %v1099_v0  ;;  %v1123_v1 = vld [vmem:[%s1321_s1 + $0x18] sm:$0xff]  ;;  %v1128_v2 = vld [vmem:[%s1321_s1 + $0x10] sm:$0xff]  ;;  %950 = vmatprep.mubr.msk.f32.mxu0 %vm1100_vm1, %v1099_v0  ;;  %16 = vst.msk [vmem:[#allocation2] sm:$0xff] %vm15_vm0, %v1099_v0  ;;  %17 = vst.msk [vmem:[#allocation3] sm:$0xff] %vm15_vm0, %v1099_v0 }
   0x2   :  { %18 = vst.msk [vmem:[#allocation4] sm:$0xff] %vm15_vm0, %v1099_v0  ;;  %943 = vmatpush3.msra.mxu0 %v1123_v1  ;;  %953 = vmatprep.subr.mxu1 %v1099_v0  ;;  %v1144_v3 = vld [vmem:[%s1321_s1 + $0x8] sm:$0xff]  ;;  %v1153_v4 = vld [vmem:[%s1321_s1] sm:$0xff]  ;;  %v884_v44 = vld [vmem:[%s1322_s0 + $0x10] sm:$0xff] }
   0x3   :  { %944 = vmatprep.subr.mxu0 %v1099_v0  ;;  %954 = vmatpush3.msra.mxu1 %v1123_v1  ;;  %v26_v6 = vld [vmem:[%s1322_s0] sm:$0xff]  ;;  %v881_v26 = vld [vmem:[%s1322_s0 + $0x8] sm:$0xff]  ;;  %v887_v62 = vld [vmem:[%s1322_s0 + $0x18] sm:$0xff] }
   0x4   :  { %945 = vmatpush3.msra.mxu0 %v1128_v2  ;;  %955 = vmatprep.subr.mxu1 %v1099_v0 }
   0x5   :  { %946 = vmatprep.subr.mxu0 %v1099_v0  ;;  %956 = vmatpush3.msra.mxu1 %v1128_v2 }
   0x6   :  { %947 = vmatpush3.msra.mxu0 %v1144_v3  ;;  %957 = vmatprep.subr.mxu1 %v1099_v0 }
   0x7   :  { %948 = vmatprep.subr.mxu0 %v1099_v0  ;;  %958 = vmatpush3.msra.mxu1 %v1144_v3 }
   0x8   :  { %949 = vmatpush3.msra.mxu0 %v1153_v4  ;;  %v23_v5 = vld [vmem:[#allocation2] sm:$0xff]  ;;  %959 = vmatprep.subr.mxu1 %v1099_v0  ;;  %v24_v11 = vld [vmem:[#allocation3] sm:$0xff] }
   0x9   :  { %951 = vmatmul.mubr.msk.f32.vlgmr.msra.gmra.mxu0 %vm15_vm0, %v23_v5  ;;  %960 = vmatpush3.msra.mxu1 %v1153_v4 }
   0xa   :  { %961 = vmatprep.mubr.msk.f32.mxu1 %vm1100_vm1, %v1099_v0  ;;  %964 = vmatprep.subr.mxu0 %v1099_v0 }
   0xb   :  { %965 = vmatpush3.msra.mxu0 %v1123_v1  ;;  %972 = vmatprep.mubr.msk.f32.mxu0 %vm1100_vm1, %v1099_v0 }
   0xc   :  { %966 = vmatprep.subr.mxu0 %v1099_v0  ;;  %975 = vmatprep.subr.mxu1 %v1099_v0 }
   0xd   :  { %967 = vmatpush3.msra.mxu0 %v1128_v2 }
   0xe   :  { %968 = vmatprep.subr.mxu0 %v1099_v0 }
   0xf   :  { %969 = vmatpush3.msra.mxu0 %v1144_v3 }
  0x10   :  { %970 = vmatprep.subr.mxu0 %v1099_v0 }
  0x11   :  { %971 = vmatpush3.msra.mxu0 %v1153_v4 }
  0x12   :  { %986 = vmatprep.subr.mxu0 %v1099_v0 }
  0xc9   :  { %v97_v7 = vpop.f32.mrf.mxu0 }
  0xca   :  { %v101_v8 = vadd.f32 %v97_v7, %v26_v6 }
  0xcb   :  { %v952_v9 = vpop.f32.mrf.mxu0 }
  0xcc   :  { %1035 = vtanh.f32 %v101_v8  ;;  %v880_v12 = vmul.f32 -1.442695, %v101_v8 }
  0xce   :  { %1037 = vpow2.f32 %v880_v12 }
  0xd9   :  { %v1036_v10 = vpop.eup %1035 }
  0xda   :  { %115 = vrot.lane.b32.xlu0 %v1036_v10, %s1101_s18 }
  0xdb   :  { %v1038_v13 = vpop.eup %1037 }
  0xdc   :  { %v105_v14 = vadd.f32 1.0, %v1038_v13 }
  0xde   :  { %110 = vrot.lane.b32.xlu0 %v24_v11, %s1101_s18  ;;  %1039 = vrcp.f32 %v105_v14 }
  0xeb   :  { %v1040_v15 = vpop.eup %1039 }
 0x14c   :  { %v116_v16 = vpop.permute.xlu0 %115 }
 0x14d   :  { %v118_v17 = vmul.f32 %v1040_v15, %v116_v16 }
 0x14f   :  { %120 = vrot.lane.b32.xlu1 %v118_v17, %s1101_s18 }
 0x150   :  { %v111_v18 = vpop.permute.xlu0 %110 }
 0x151   :  { %v113_v19 = vmul.f32 %v1040_v15, %v111_v18 }
 0x1c1   :  { %v121_v20 = vpop.permute.xlu1 %120 }
 0x1c2   :  { %v123_v21 = vadd.f32 %v121_v20, %v113_v19 }
 0x1c4   :  { %1041 = vtanh.f32 %v123_v21 }
 0x1d1   :  { %v1042_v22 = vpop.eup %1041 }
 0x1d2   :  { %126 = vrot.lane.b32.xlu1 %v1042_v22, %s1101_s18 }
 0x244   :  { %v127_v23 = vpop.permute.xlu1 %126 }
 0x245   :  { %v129_v24 = vmul.f32 %v1040_v15, %v127_v23 }
 0x247   :  { %131 = vrot.lane.b32.xlu0 %v129_v24, %s1102_s19 }
 0x2b9   :  { %v1186_v25 = vpop.permute.xlu0 %131 }
 0x2ba   :  { %962 = vmatmul.mubr.msk.f32.vlgmr.msra.gmra.mxu1 %vm15_vm0, %v1186_v25 }
 0x2bb   :  { %976 = vmatpush3.msra.mxu1 %v1123_v1  ;;  %983 = vmatprep.mubr.msk.f32.mxu1 %vm1100_vm1, %v1099_v0 }
 0x2bc   :  { %977 = vmatprep.subr.mxu1 %v1099_v0 }
 0x2bd   :  { %978 = vmatpush3.msra.mxu1 %v1128_v2 }
 0x2be   :  { %979 = vmatprep.subr.mxu1 %v1099_v0 }
 0x2bf   :  { %980 = vmatpush3.msra.mxu1 %v1144_v3 }
 0x2c0   :  { %981 = vmatprep.subr.mxu1 %v1099_v0 }
 0x2c1   :  { %982 = vmatpush3.msra.mxu1 %v1153_v4 }
 0x2c2   :  { %997 = vmatprep.subr.mxu1 %v1099_v0 }
 0x37a   :  { %v205_v27 = vpop.f32.mrf.mxu1 }
 0x37b   :  { %v209_v28 = vadd.f32 %v881_v26, %v205_v27 }
 0x37c   :  { %v963_v29 = vpop.f32.mrf.mxu1 }
 0x37d   :  { %1043 = vtanh.f32 %v209_v28  ;;  %v883_v31 = vmul.f32 -1.442695, %v209_v28 }
 0x37f   :  { %1045 = vpow2.f32 %v883_v31 }
 0x38a   :  { %v1044_v30 = vpop.eup %1043 }
 0x38b   :  { %219 = vrot.lane.b32.xlu1 %v1044_v30, %s1101_s18 }
 0x38c   :  { %v1046_v32 = vpop.eup %1045 }
 0x38d   :  { %v213_v33 = vadd.f32 1.0, %v1046_v32 }
 0x38f   :  { %1047 = vrcp.f32 %v213_v33 }
 0x39c   :  { %v1048_v34 = vpop.eup %1047 }
 0x39d   :  { %v217_v37 = vmul.f32 %v1048_v34, %v123_v21  ;;  %v890_v21 = vld [vmem:[%s1322_s0 + $0x20] sm:$0xff] }
 0x3fd   :  { %v220_v35 = vpop.permute.xlu1 %219 }
 0x3fe   :  { %v222_v36 = vmul.f32 %v1048_v34, %v220_v35 }
 0x400   :  { %224 = vrot.lane.b32.xlu0 %v222_v36, %s1101_s18 }
 0x472   :  { %v225_v38 = vpop.permute.xlu0 %224 }
 0x473   :  { %v227_v39 = vadd.f32 %v225_v38, %v217_v37 }
 0x475   :  { %1049 = vtanh.f32 %v227_v39 }
 0x482   :  { %v1050_v40 = vpop.eup %1049 }
 0x483   :  { %230 = vrot.lane.b32.xlu1 %v1050_v40, %s1101_s18  ;;  %v893_v40 = vld [vmem:[%s1322_s0 + $0x28] sm:$0xff] }
 0x4f5   :  { %v231_v41 = vpop.permute.xlu1 %230 }
 0x4f6   :  { %v233_v42 = vmul.f32 %v1048_v34, %v231_v41 }
 0x4f8   :  { %235 = vrot.lane.b32.xlu0 %v233_v42, %s1102_s19 }
 0x56a   :  { %v1207_v43 = vpop.permute.xlu0 %235 }
 0x56b   :  { %973 = vmatmul.mubr.msk.f32.vlgmr.msra.gmra.mxu0 %vm15_vm0, %v1207_v43 }
 0x56c   :  { %987 = vmatpush3.msra.mxu0 %v1123_v1  ;;  %994 = vmatprep.mubr.msk.f32.mxu0 %vm1100_vm1, %v1099_v0 }
 0x56d   :  { %988 = vmatprep.subr.mxu0 %v1099_v0 }
 0x56e   :  { %989 = vmatpush3.msra.mxu0 %v1128_v2 }
 0x56f   :  { %990 = vmatprep.subr.mxu0 %v1099_v0 }
 0x570   :  { %991 = vmatpush3.msra.mxu0 %v1144_v3 }
 0x571   :  { %992 = vmatprep.subr.mxu0 %v1099_v0 }
 0x572   :  { %993 = vmatpush3.msra.mxu0 %v1153_v4 }
 0x573   :  { %1008 = vmatprep.subr.mxu0 %v1099_v0 }
 0x62b   :  { %v309_v45 = vpop.f32.mrf.mxu0 }
 0x62c   :  { %v313_v46 = vadd.f32 %v884_v44, %v309_v45 }
 0x62d   :  { %v974_v47 = vpop.f32.mrf.mxu0 }
 0x62e   :  { %1051 = vtanh.f32 %v313_v46  ;;  %v886_v49 = vmul.f32 -1.442695, %v313_v46 }
 0x630   :  { %1053 = vpow2.f32 %v886_v49 }
 0x63b   :  { %v1052_v48 = vpop.eup %1051 }
 0x63c   :  { %323 = vrot.lane.b32.xlu1 %v1052_v48, %s1101_s18 }
 0x63d   :  { %v1054_v50 = vpop.eup %1053 }
 0x63e   :  { %v317_v51 = vadd.f32 1.0, %v1054_v50 }
 0x640   :  { %1055 = vrcp.f32 %v317_v51 }
 0x64d   :  { %v1056_v52 = vpop.eup %1055 }
 0x64e   :  { %v321_v55 = vmul.f32 %v1056_v52, %v227_v39 }
 0x6ae   :  { %v324_v53 = vpop.permute.xlu1 %323 }
 0x6af   :  { %v326_v54 = vmul.f32 %v1056_v52, %v324_v53 }
 0x6b1   :  { %328 = vrot.lane.b32.xlu0 %v326_v54, %s1101_s18  ;;  %v896_v54 = vld [vmem:[%s1322_s0 + $0x30] sm:$0xff] }
 0x723   :  { %v329_v56 = vpop.permute.xlu0 %328 }
 0x724   :  { %v331_v57 = vadd.f32 %v329_v56, %v321_v55 }
 0x726   :  { %1057 = vtanh.f32 %v331_v57 }
 0x733   :  { %v1058_v58 = vpop.eup %1057 }
 0x734   :  { %334 = vrot.lane.b32.xlu1 %v1058_v58, %s1101_s18 }
 0x7a6   :  { %v335_v59 = vpop.permute.xlu1 %334 }
 0x7a7   :  { %v337_v60 = vmul.f32 %v1056_v52, %v335_v59 }
 0x7a9   :  { %339 = vrot.lane.b32.xlu0 %v337_v60, %s1102_s19 }
 0x81b   :  { %v1228_v61 = vpop.permute.xlu0 %339 }
 0x81c   :  { %984 = vmatmul.mubr.msk.f32.vlgmr.msra.gmra.mxu1 %vm15_vm0, %v1228_v61 }
 0x81d   :  { %998 = vmatpush3.msra.mxu1 %v1123_v1  ;;  %1005 = vmatprep.mubr.msk.f32.mxu1 %vm1100_vm1, %v1099_v0 }
 0x81e   :  { %999 = vmatprep.subr.mxu1 %v1099_v0 }
 0x81f   :  { %1000 = vmatpush3.msra.mxu1 %v1128_v2 }
 0x820   :  { %1001 = vmatprep.subr.mxu1 %v1099_v0 }
 0x821   :  { %1002 = vmatpush3.msra.mxu1 %v1144_v3 }
 0x822   :  { %1003 = vmatprep.subr.mxu1 %v1099_v0 }
 0x823   :  { %1004 = vmatpush3.msra.mxu1 %v1153_v4 }
 0x824   :  { %1019 = vmatprep.subr.mxu1 %v1099_v0 }
 0x8dc   :  { %v413_v63 = vpop.f32.mrf.mxu1 }
 0x8dd   :  { %v417_v5 = vadd.f32 %v887_v62, %v413_v63 }
 0x8de   :  { %v985_v6 = vpop.f32.mrf.mxu1 }
 0x8df   :  { %1059 = vtanh.f32 %v417_v5  ;;  %v889_v8 = vmul.f32 -1.442695, %v417_v5 }
 0x8e1   :  { %1061 = vpow2.f32 %v889_v8 }
 0x8ec   :  { %v1060_v7 = vpop.eup %1059 }
 0x8ed   :  { %427 = vrot.lane.b32.xlu1 %v1060_v7, %s1101_s18 }
 0x8ee   :  { %v1062_v9 = vpop.eup %1061 }
 0x8ef   :  { %v421_v10 = vadd.f32 1.0, %v1062_v9 }
 0x8f1   :  { %1063 = vrcp.f32 %v421_v10 }
 0x8fe   :  { %v1064_v11 = vpop.eup %1063 }
 0x8ff   :  { %v425_v14 = vmul.f32 %v1064_v11, %v331_v57 }
 0x95f   :  { %v428_v12 = vpop.permute.xlu1 %427 }
 0x960   :  { %v430_v13 = vmul.f32 %v1064_v11, %v428_v12 }
 0x962   :  { %432 = vrot.lane.b32.xlu0 %v430_v13, %s1101_s18 }
 0x9d4   :  { %v433_v15 = vpop.permute.xlu0 %432 }
 0x9d5   :  { %v435_v16 = vadd.f32 %v433_v15, %v425_v14  ;;  %v899_v14 = vld [vmem:[%s1322_s0 + $0x38] sm:$0xff]  ;;  %s1103_s0 = smov 96  }
 0x9d7   :  { %1065 = vtanh.f32 %v435_v16 }
 0x9e4   :  { %v1066_v17 = vpop.eup %1065 }
 0x9e5   :  { %438 = vrot.lane.b32.xlu1 %v1066_v17, %s1101_s18 }
 0xa57   :  { %v439_v18 = vpop.permute.xlu1 %438 }
 0xa58   :  { %v441_v19 = vmul.f32 %v1064_v11, %v439_v18 }
 0xa5a   :  { %443 = vrot.lane.b32.xlu0 %v441_v19, %s1102_s19 }
 0xacc   :  { %v1249_v20 = vpop.permute.xlu0 %443 }
 0xacd   :  { %995 = vmatmul.mubr.msk.f32.vlgmr.msra.gmra.mxu0 %vm15_vm0, %v1249_v20 }
 0xace   :  { %1009 = vmatpush3.msra.mxu0 %v1123_v1  ;;  %1016 = vmatprep.mubr.msk.f32.mxu0 %vm1100_vm1, %v1099_v0 }
 0xacf   :  { %1010 = vmatprep.subr.mxu0 %v1099_v0 }
 0xad0   :  { %1011 = vmatpush3.msra.mxu0 %v1128_v2 }
 0xad1   :  { %1012 = vmatprep.subr.mxu0 %v1099_v0 }
 0xad2   :  { %1013 = vmatpush3.msra.mxu0 %v1144_v3 }
 0xad3   :  { %1014 = vmatprep.subr.mxu0 %v1099_v0 }
 0xad4   :  { %1015 = vmatpush3.msra.mxu0 %v1153_v4 }
 0xb8d   :  { %v517_v22 = vpop.f32.mrf.mxu0 }
 0xb8e   :  { %v521_v23 = vadd.f32 %v890_v21, %v517_v22 }
 0xb8f   :  { %v996_v24 = vpop.f32.mrf.mxu0 }
 0xb90   :  { %1067 = vtanh.f32 %v521_v23  ;;  %v892_v27 = vmul.f32 -1.442695, %v521_v23 }
 0xb92   :  { %1069 = vpow2.f32 %v892_v27 }
 0xb9d   :  { %v1068_v26 = vpop.eup %1067 }
 0xb9e   :  { %531 = vrot.lane.b32.xlu1 %v1068_v26, %s1101_s18 }
 0xb9f   :  { %v1070_v28 = vpop.eup %1069 }
 0xba0   :  { %v525_v29 = vadd.f32 1.0, %v1070_v28 }
 0xba2   :  { %1071 = vrcp.f32 %v525_v29 }
 0xbaf   :  { %v1072_v30 = vpop.eup %1071 }
 0xbb0   :  { %v529_v33 = vmul.f32 %v1072_v30, %v435_v16 }
 0xc10   :  { %v532_v31 = vpop.permute.xlu1 %531 }
 0xc11   :  { %v534_v32 = vmul.f32 %v1072_v30, %v532_v31 }
 0xc13   :  { %536 = vrot.lane.b32.xlu0 %v534_v32, %s1101_s18 }
 0xc85   :  { %v537_v34 = vpop.permute.xlu0 %536 }
 0xc86   :  { %v539_v35 = vadd.f32 %v537_v34, %v529_v33  ;;  %v25_v34 = vld [vmem:[#allocation4] sm:$0xff] }
 0xc88   :  { %1073 = vtanh.f32 %v539_v35 }
 0xc95   :  { %v1074_v36 = vpop.eup %1073 }
 0xc96   :  { %542 = vrot.lane.b32.xlu1 %v1074_v36, %s1101_s18 }
 0xd08   :  { %v543_v37 = vpop.permute.xlu1 %542 }
 0xd09   :  { %v545_v38 = vmul.f32 %v1072_v30, %v543_v37 }
 0xd0b   :  { %547 = vrot.lane.b32.xlu0 %v545_v38, %s1102_s19 }
 0xd7d   :  { %v1269_v39 = vpop.permute.xlu0 %547 }
 0xd7e   :  { %1006 = vmatmul.mubr.msk.f32.vlgmr.msra.gmra.mxu1 %vm15_vm0, %v1269_v39 }
 0xd7f   :  { %1020 = vmatpush3.msra.mxu1 %v1123_v1  ;;  %1027 = vmatprep.mubr.msk.f32.mxu1 %vm1100_vm1, %v1099_v0 }
 0xd80   :  { %1021 = vmatprep.subr.mxu1 %v1099_v0 }
 0xd81   :  { %1022 = vmatpush3.msra.mxu1 %v1128_v2 }
 0xd82   :  { %1023 = vmatprep.subr.mxu1 %v1099_v0 }
 0xd83   :  { %1024 = vmatpush3.msra.mxu1 %v1144_v3 }
 0xd84   :  { %1025 = vmatprep.subr.mxu1 %v1099_v0 }
 0xd85   :  { %1026 = vmatpush3.msra.mxu1 %v1153_v4 }
 0xe3e   :  { %v621_v1 = vpop.f32.mrf.mxu1 }
 0xe3f   :  { %v625_v41 = vadd.f32 %v893_v40, %v621_v1 }
 0xe40   :  { %v1007_v42 = vpop.f32.mrf.mxu1 }
 0xe41   :  { %1075 = vtanh.f32 %v625_v41  ;;  %v895_v2 = vmul.f32 -1.442695, %v625_v41 }
 0xe43   :  { %1077 = vpow2.f32 %v895_v2 }
 0xe4e   :  { %v1076_v44 = vpop.eup %1075 }
 0xe4f   :  { %635 = vrot.lane.b32.xlu1 %v1076_v44, %s1101_s18 }
 0xe50   :  { %v1078_v45 = vpop.eup %1077 }
 0xe51   :  { %v629_v46 = vadd.f32 1.0, %v1078_v45 }
 0xe53   :  { %1079 = vrcp.f32 %v629_v46 }
 0xe60   :  { %v1080_v3 = vpop.eup %1079 }
 0xe61   :  { %v633_v4 = vmul.f32 %v1080_v3, %v539_v35  ;;  %v134_v35 = vadd.f32 %v1186_v25, %v25_v34 }
 0xe63   :  { %v238_v36 = vadd.f32 %v1207_v43, %v134_v35 }
 0xe65   :  { %v342_v37 = vadd.f32 %v1228_v61, %v238_v36 }
 0xe67   :  { %v446_v38 = vadd.f32 %v1249_v20, %v342_v37 }
 0xe69   :  { %v550_v40 = vadd.f32 %v1269_v39, %v446_v38 }
 0xec1   :  { %v636_v0 = vpop.permute.xlu1 %635 }
 0xec2   :  { %v638_v47 = vmul.f32 %v1080_v3, %v636_v0 }
 0xec4   :  { %640 = vrot.lane.b32.xlu0 %v638_v47, %s1101_s18 }
 0xf36   :  { %v641_v48 = vpop.permute.xlu0 %640 }
 0xf37   :  { %v643_v49 = vadd.f32 %v641_v48, %v633_v4 }
 0xf39   :  { %1081 = vtanh.f32 %v643_v49 }
 0xf46   :  { %v1082_v50 = vpop.eup %1081 }
 0xf47   :  { %646 = vrot.lane.b32.xlu1 %v1082_v50, %s1101_s18 }
 0xfb9   :  { %v647_v51 = vpop.permute.xlu1 %646 }
 0xfba   :  { %v649_v52 = vmul.f32 %v1080_v3, %v647_v51 }
 0xfbc   :  { %651 = vrot.lane.b32.xlu0 %v649_v52, %s1102_s19 }
0x102e   :  { %v1289_v53 = vpop.permute.xlu0 %651 }
0x102f   :  { %1017 = vmatmul.mubr.msk.f32.vlgmr.msra.gmra.mxu0 %vm15_vm0, %v1289_v53  ;;  %v654_v1 = vadd.f32 %v1289_v53, %v550_v40 }
0x10ef   :  { %v725_v55 = vpop.f32.mrf.mxu0 }
0x10f0   :  { %v729_v56 = vadd.f32 %v896_v54, %v725_v55 }
0x10f1   :  { %v1018_v57 = vpop.f32.mrf.mxu0 }
0x10f2   :  { %1083 = vtanh.f32 %v729_v56  ;;  %v898_v59 = vmul.f32 -1.442695, %v729_v56 }
0x10f4   :  { %1085 = vpow2.f32 %v898_v59 }
0x10ff   :  { %v1084_v58 = vpop.eup %1083 }
0x1100   :  { %739 = vrot.lane.b32.xlu1 %v1084_v58, %s1101_s18 }
0x1101   :  { %v1086_v60 = vpop.eup %1085 }
0x1102   :  { %v733_v62 = vadd.f32 1.0, %v1086_v60 }
0x1104   :  { %1087 = vrcp.f32 %v733_v62 }
0x1111   :  { %v1088_v63 = vpop.eup %1087 }
0x1112   :  { %v737_v7 = vmul.f32 %v1088_v63, %v643_v49 }
0x1172   :  { %v740_v5 = vpop.permute.xlu1 %739 }
0x1173   :  { %v742_v6 = vmul.f32 %v1088_v63, %v740_v5 }
0x1175   :  { %744 = vrot.lane.b32.xlu0 %v742_v6, %s1101_s18 }
0x11e7   :  { %v745_v8 = vpop.permute.xlu0 %744 }
0x11e8   :  { %v747_v9 = vadd.f32 %v745_v8, %v737_v7 }
0x11ea   :  { %1089 = vtanh.f32 %v747_v9 }
0x11f7   :  { %v1090_v10 = vpop.eup %1089 }
0x11f8   :  { %750 = vrot.lane.b32.xlu1 %v1090_v10, %s1101_s18 }
0x126a   :  { %v751_v11 = vpop.permute.xlu1 %750 }
0x126b   :  { %v753_v12 = vmul.f32 %v1088_v63, %v751_v11 }
0x126d   :  { %755 = vrot.lane.b32.xlu0 %v753_v12, %s1102_s19 }
0x12df   :  { %v756_v13 = vpop.permute.xlu0 %755 }
0x12e0   :  { %1028 = vmatmul.mubr.msk.f32.vlgmr.msra.gmra.mxu1 %vm15_vm0, %v756_v13  ;;  %v758_v41 = vadd.f32 %v756_v13, %v654_v1 }
0x13a0   :  { %v829_v15 = vpop.f32.mrf.mxu1 }
0x13a1   :  { %v833_v16 = vadd.f32 %v899_v14, %v829_v15 }
0x13a2   :  { %v1029_v17 = vpop.f32.mrf.mxu1 }
0x13a3   :  { %1091 = vtanh.f32 %v833_v16  ;;  %v901_v19 = vmul.f32 -1.442695, %v833_v16 }
0x13a5   :  { %1093 = vpow2.f32 %v901_v19 }
0x13b0   :  { %v1092_v18 = vpop.eup %1091 }
0x13b1   :  { %843 = vrot.lane.b32.xlu1 %v1092_v18, %s1101_s18 }
0x13b2   :  { %v1094_v21 = vpop.eup %1093 }
0x13b3   :  { %v837_v22 = vadd.f32 1.0, %v1094_v21 }
0x13b5   :  { %1095 = vrcp.f32 %v837_v22 }
0x13c2   :  { %v1096_v23 = vpop.eup %1095 }
0x13c3   :  { %v841_v27 = vmul.f32 %v1096_v23, %v747_v9 }
0x1423   :  { %v844_v24 = vpop.permute.xlu1 %843 }
0x1424   :  { %v846_v26 = vmul.f32 %v1096_v23, %v844_v24 }
0x1426   :  { %848 = vrot.lane.b32.xlu0 %v846_v26, %s1101_s18 }
0x1498   :  { %v849_v28 = vpop.permute.xlu0 %848 }
0x1499   :  { %v851_v29 = vadd.f32 %v849_v28, %v841_v27 }
0x149b   :  { %1097 = vtanh.f32 %v851_v29 }
0x14a8   :  { %v1098_v30 = vpop.eup %1097 }
0x14a9   :  { %854 = vrot.lane.b32.xlu1 %v1098_v30, %s1101_s18 }
0x14ad   :  { %865 = vrot.lane.b32.xlu1 %v851_v29, %s1103_s0 }
0x151b   :  { %v855_v31 = vpop.permute.xlu1 %854 }
0x151c   :  { %v857_v32 = vmul.f32 %v1096_v23, %v855_v31 }
0x151e   :  { %859 = vrot.lane.b32.xlu0 %v857_v32, %s1102_s19 }
0x151f   :  { %v866_v33 = vpop.permute.xlu1 %865 }
0x1520   :  { %868 = vst.msk [vmem:[#allocation3] sm:$0xff] %vm15_vm0, %v866_v33 }
0x1590   :  { %v860_v42 = vpop.permute.xlu0 %859 }
0x1591   :  { %v862_v44 = vadd.f32 %v860_v42, %v758_v41  ;;  %863 = vst.msk [vmem:[#allocation2] sm:$0xff] %vm15_vm0, %v860_v42 }
0x1593   :  { %869 = vst.msk [vmem:[#allocation4] sm:$0xff] %vm15_vm0, %v862_v44  ;;  %v873_v2 = vmul.f32 0.125, %v862_v44 }
0x1595   :  { %874 = vst.msk [vmem:[%s1323_s2] sm:$0xff] %vm15_vm0, %v873_v2 }

// kernel: voice_clone_forward.3
= control target key start
LH: loop header
LB: loop body
LE: loop exit
PB: predicated region body
PF: predicated region fallthrough
CT: control target
= control target key end

     0   :  { %vm27_vm0 = vcmask 261120   ;;  %v3028_v0 = vmov 0.0   ;;  %vm3029_vm1 = vmmov 0   ;;  %s3030_s7 = smov 32   ;;  %s3031_s24 = smov 64   ;;  %vm179_vm2 = vcmask 523264   ;;  %s3796_s1 = inlined_call_operand.vmem [shape: f32[32,128], index: 1, kind: input, shape index: {}]   ;;  %s3797_s0 = inlined_call_operand.vmem [shape: f32[8,8,128], index: 0, kind: input, shape index: {}]   ;;  %s3798_s2 = inlined_call_operand.vmem [shape: f32[64,128], index: 2, kind: input, shape index: {}]   ;;  %s3799_s3 = inlined_call_operand.vmem [shape: f32[1,128], index: 3, kind: input, shape index: {}]   ;;  %s3800_s4 = inlined_call_operand.vmem [shape: f32[32,128], index: 4, kind: input, shape index: {}]   ;;  %s3801_s5 = inlined_call_operand.vmem [shape: f32[1,128], index: 5, kind: input, shape index: {}]   ;;  %s3802_s6 = inlined_call_operand.vmem [shape: f32[8,8,128], index: 6, kind: output, shape index: {}]  }
   0x1   :  { %2549 = vmatprep.subr.mxu0 %v3028_v0  ;;  %v3072_v1 = vld [vmem:[%s3796_s1 + $0x18] sm:$0xff]  ;;  %v3077_v2 = vld [vmem:[%s3796_s1 + $0x10] sm:$0xff]  ;;  %2557 = vmatprep.mubr.msk.f32.mxu0 %vm3029_vm1, %v3028_v0  ;;  %28 = vst.msk [vmem:[#allocation2] sm:$0xff] %vm27_vm0, %v3028_v0  ;;  %29 = vst.msk [vmem:[#allocation3] sm:$0xff] %vm27_vm0, %v3028_v0  ;;  %s3032_s18 = smov 96  }
   0x2   :  { %30 = vst.msk [vmem:[#allocation4] sm:$0xff] %vm27_vm0, %v3028_v0  ;;  %31 = vst.msk [vmem:[#allocation5] sm:$0xff] %vm27_vm0, %v3028_v0  ;;  %2550 = vmatpush3.msra.mxu0 %v3072_v1  ;;  %2560 = vmatprep.subr.mxu1 %v3028_v0  ;;  %v3095_v3 = vld [vmem:[%s3796_s1 + $0x8] sm:$0xff]  ;;  %v3104_v4 = vld [vmem:[%s3796_s1] sm:$0xff] }
   0x3   :  { %2551 = vmatprep.subr.mxu0 %v3028_v0  ;;  %2576 = vmatprep.mubr.msk.f32.mxu1 %vm3029_vm1, %v3028_v0  ;;  %v66_v6 = vld [vmem:[%s3797_s0] sm:$0xff]  ;;  %v3125_v22 = vld [vmem:[%s3798_s2 + $0x38] sm:$0xff]  ;;  %v3130_v23 = vld [vmem:[%s3798_s2 + $0x30] sm:$0xff] }
   0x4   :  { %2552 = vmatpush3.msra.mxu0 %v3077_v2  ;;  %2561 = vmatpush3.msra.mxu1 %v3125_v22  ;;  %v3137_v24 = vld [vmem:[%s3798_s2 + $0x28] sm:$0xff]  ;;  %v3144_v25 = vld [vmem:[%s3798_s2 + $0x20] sm:$0xff]  ;;  %v3151_v26 = vld [vmem:[%s3798_s2 + $0x18] sm:$0xff] }
   0x5   :  { %2553 = vmatprep.subr.mxu0 %v3028_v0  ;;  %2562 = vmatprep.subr.mxu1 %v3028_v0  ;;  %v3158_v27 = vld [vmem:[%s3798_s2 + $0x10] sm:$0xff]  ;;  %v3166_v29 = vld [vmem:[%s3798_s2 + $0x8] sm:$0xff]  ;;  %v3176_v31 = vld [vmem:[%s3798_s2] sm:$0xff] }
   0x6   :  { %2554 = vmatpush3.msra.mxu0 %v3095_v3  ;;  %2563 = vmatpush3.msra.mxu1 %v3130_v23  ;;  %v3208_v38 = vld [vmem:[%s3799_s3] ss:$0 sm:$0xff]  ;;  %v3219_v53 = vld [vmem:[%s3800_s4 + $0x18] sm:$0xff]  ;;  %v3224_v54 = vld [vmem:[%s3800_s4 + $0x10] sm:$0xff] }
   0x7   :  { %2555 = vmatprep.subr.mxu0 %v3028_v0  ;;  %2564 = vmatprep.subr.mxu1 %v3028_v0  ;;  %v3231_v55 = vld [vmem:[%s3800_s4 + $0x8] sm:$0xff]  ;;  %v3238_v56 = vld [vmem:[%s3800_s4] sm:$0xff] }
   0x8   :  { %2556 = vmatpush3.msra.mxu0 %v3104_v4  ;;  %v62_v5 = vld [vmem:[#allocation2] sm:$0xff]  ;;  %v63_v11 = vld [vmem:[#allocation3] sm:$0xff]  ;;  %2565 = vmatpush3.msra.mxu1 %v3137_v24 }
   0x9   :  { %2558 = vmatmul.mubr.msk.f32.vlgmr.msra.gmra.mxu0 %vm27_vm0, %v62_v5  ;;  %2579 = vmatprep.subr.mxu0 %v3028_v0  ;;  %v64_v30 = vld [vmem:[#allocation4] sm:$0xff]  ;;  %v65_v32 = vld [vmem:[#allocation5] sm:$0xff]  ;;  %v3272_v61 = vld [vmem:[%s3801_s5] ss:$0 sm:$0xff] }
   0xa   :  { %2587 = vmatprep.mubr.msk.f32.mxu0 %vm3029_vm1, %v3028_v0  ;;  %2566 = vmatprep.subr.mxu1 %v3028_v0 }
   0xb   :  { %2567 = vmatpush3.msra.mxu1 %v3144_v25  ;;  %2580 = vmatpush3.msra.mxu0 %v3219_v53 }
   0xc   :  { %2568 = vmatprep.subr.mxu1 %v3028_v0  ;;  %2581 = vmatprep.subr.mxu0 %v3028_v0 }
   0xd   :  { %2569 = vmatpush3.msra.mxu1 %v3151_v26  ;;  %2582 = vmatpush3.msra.mxu0 %v3224_v54 }
   0xe   :  { %2570 = vmatprep.subr.mxu1 %v3028_v0  ;;  %2583 = vmatprep.subr.mxu0 %v3028_v0 }
   0xf   :  { %2571 = vmatpush3.msra.mxu1 %v3158_v27  ;;  %2584 = vmatpush3.msra.mxu0 %v3231_v55 }
  0x10   :  { %2572 = vmatprep.subr.mxu1 %v3028_v0  ;;  %2585 = vmatprep.subr.mxu0 %v3028_v0 }
  0x11   :  { %2573 = vmatpush3.msra.mxu1 %v3166_v29  ;;  %2586 = vmatpush3.msra.mxu0 %v3238_v56 }
  0x12   :  { %2574 = vmatprep.subr.mxu1 %v3028_v0  ;;  %2590 = vmatprep.subr.mxu0 %v3028_v0 }
  0x13   :  { %2575 = vmatpush3.msra.mxu1 %v3176_v31 }
  0x14   :  { %2601 = vmatprep.subr.mxu1 %v3028_v0 }
  0xc9   :  { %v137_v7 = vpop.f32.mrf.mxu0 }
  0xca   :  { %v141_v8 = vadd.f32 %v137_v7, %v66_v6  ;;  %v2348_v6 = vld [vmem:[%s3797_s0 + $0x8] sm:$0xff] }
  0xcb   :  { %v2559_v9 = vpop.f32.mrf.mxu0 }
  0xcc   :  { %2882 = vtanh.f32 %v141_v8  ;;  %v2344_v12 = vmul.f32 -1.442695, %v141_v8 }
  0xce   :  { %2884 = vpow2.f32 %v2344_v12 }
  0xd9   :  { %v2883_v10 = vpop.eup %2882 }
  0xda   :  { %155 = vrot.lane.b32.xlu0 %v2883_v10, %s3030_s7 }
  0xdb   :  { %v2885_v13 = vpop.eup %2884 }
  0xdc   :  { %v145_v14 = vadd.f32 1.0, %v2885_v13 }
  0xde   :  { %150 = vrot.lane.b32.xlu0 %v63_v11, %s3030_s7  ;;  %2886 = vrcp.f32 %v145_v14 }
  0xeb   :  { %v2887_v15 = vpop.eup %2886 }
 0x14c   :  { %v156_v16 = vpop.permute.xlu0 %155 }
 0x14d   :  { %v158_v17 = vmul.f32 %v2887_v15, %v156_v16 }
 0x14f   :  { %160 = vrot.lane.b32.xlu1 %v158_v17, %s3030_s7 }
 0x150   :  { %v151_v18 = vpop.permute.xlu0 %150 }
 0x151   :  { %v153_v19 = vmul.f32 %v2887_v15, %v151_v18 }
 0x1c1   :  { %v161_v20 = vpop.permute.xlu1 %160 }
 0x1c2   :  { %v3119_v21 = vadd.f32 %v161_v20, %v153_v19 }
 0x1c4   :  { %2888 = vtanh.f32 %v3119_v21 }
 0x1d1   :  { %v2889_v28 = vpop.eup %2888 }
 0x1d2   :  { %166 = vrot.lane.b32.xlu1 %v2889_v28, %s3030_s7 }
 0x1d6   :  { %175 = vrot.lane.b32.xlu1 %v64_v30, %s3030_s7 }
 0x1da   :  { %261 = vrot.lane.b32.xlu1 %v65_v32, %s3030_s7 }
 0x244   :  { %v167_v33 = vpop.permute.xlu1 %166 }
 0x245   :  { %v169_v34 = vmul.f32 %v2887_v15, %v167_v33 }
 0x247   :  { %171 = vrot.lane.b32.xlu0 %v169_v34, %s3031_s24 }
 0x248   :  { %v176_v35 = vpop.permute.xlu1 %175 }
 0x24c   :  { %v262_v49 = vpop.permute.xlu1 %261 }
 0x2b9   :  { %v3182_v36 = vpop.permute.xlu0 %171 }
 0x2ba   :  { %v178_v37 = vsel %vm27_vm0, %v3182_v36, %v176_v35 }
 0x2bb   :  { %2577 = vmatmul.mubr.msk.f32.vlgmr.msra.gmra.mxu1 %vm179_vm2, %v178_v37 }
 0x2bc   :  { %2602 = vmatpush3.msra.mxu1 %v3125_v22  ;;  %2617 = vmatprep.mubr.msk.f32.mxu1 %vm3029_vm1, %v3028_v0 }
 0x2bd   :  { %2603 = vmatprep.subr.mxu1 %v3028_v0 }
 0x2be   :  { %2604 = vmatpush3.msra.mxu1 %v3130_v23 }
 0x2bf   :  { %2605 = vmatprep.subr.mxu1 %v3028_v0 }
 0x2c0   :  { %2606 = vmatpush3.msra.mxu1 %v3137_v24 }
 0x2c1   :  { %2607 = vmatprep.subr.mxu1 %v3028_v0 }
 0x2c2   :  { %2608 = vmatpush3.msra.mxu1 %v3144_v25 }
 0x2c3   :  { %2609 = vmatprep.subr.mxu1 %v3028_v0 }
 0x2c4   :  { %2610 = vmatpush3.msra.mxu1 %v3151_v26 }
 0x2c5   :  { %2611 = vmatprep.subr.mxu1 %v3028_v0 }
 0x2c6   :  { %2612 = vmatpush3.msra.mxu1 %v3158_v27 }
 0x2c7   :  { %2613 = vmatprep.subr.mxu1 %v3028_v0 }
 0x2c8   :  { %2614 = vmatpush3.msra.mxu1 %v3166_v29 }
 0x2c9   :  { %2615 = vmatprep.subr.mxu1 %v3028_v0 }
 0x2ca   :  { %2616 = vmatpush3.msra.mxu1 %v3176_v31 }
 0x2cb   :  { %2642 = vmatprep.subr.mxu1 %v3028_v0 }
 0x37b   :  { %v249_v39 = vpop.f32.mrf.mxu1 }
 0x37c   :  { %v250_v40 = vadd.f32 %v3208_v38, %v249_v39 }
 0x37d   :  { %v2578_v41 = vpop.f32.mrf.mxu1 }
 0x37e   :  { %2890 = vtanh.f32 %v250_v40  ;;  %v2346_v43 = vmul.f32 -1.442695, %v250_v40 }
 0x380   :  { %2892 = vpow2.f32 %v2346_v43 }
 0x38b   :  { %v2891_v42 = vpop.eup %2890 }
 0x38c   :  { %266 = vrot.lane.b32.xlu0 %v2891_v42, %s3030_s7 }
 0x38d   :  { %v2893_v44 = vpop.eup %2892 }
 0x38e   :  { %v256_v45 = vadd.f32 1.0, %v2893_v44 }
 0x390   :  { %2894 = vrcp.f32 %v256_v45 }
 0x39d   :  { %v2895_v46 = vpop.eup %2894 }
 0x39e   :  { %v264_v50 = vmul.f32 %v2895_v46, %v262_v49 }
 0x3fe   :  { %v267_v47 = vpop.permute.xlu0 %266 }
 0x3ff   :  { %v269_v48 = vmul.f32 %v2895_v46, %v267_v47 }
 0x401   :  { %271 = vrot.lane.b32.xlu0 %v269_v48, %s3030_s7 }
 0x473   :  { %v272_v51 = vpop.permute.xlu0 %271 }
 0x474   :  { %v3213_v52 = vadd.f32 %v272_v51, %v264_v50 }
 0x476   :  { %2896 = vtanh.f32 %v3213_v52 }
 0x483   :  { %v2897_v57 = vpop.eup %2896 }
 0x484   :  { %277 = vrot.lane.b32.xlu1 %v2897_v57, %s3030_s7 }
 0x4f6   :  { %v278_v58 = vpop.permute.xlu1 %277 }
 0x4f7   :  { %v280_v59 = vmul.f32 %v2895_v46, %v278_v58 }
 0x4f9   :  { %282 = vrot.lane.b32.xlu0 %v280_v59, %s3031_s24 }
 0x56b   :  { %v283_v60 = vpop.permute.xlu0 %282 }
 0x56c   :  { %2588 = vmatmul.mubr.msk.f32.vlgmr.msra.gmra.mxu0 %vm27_vm0, %v283_v60 }
 0x56d   :  { %2591 = vmatpush3.msra.mxu0 %v3072_v1  ;;  %2598 = vmatprep.mubr.msk.f32.mxu0 %vm3029_vm1, %v3028_v0 }
 0x56e   :  { %2592 = vmatprep.subr.mxu0 %v3028_v0 }
 0x56f   :  { %2593 = vmatpush3.msra.mxu0 %v3077_v2 }
 0x570   :  { %2594 = vmatprep.subr.mxu0 %v3028_v0 }
 0x571   :  { %2595 = vmatpush3.msra.mxu0 %v3095_v3 }
 0x572   :  { %2596 = vmatprep.subr.mxu0 %v3028_v0 }
 0x573   :  { %2597 = vmatpush3.msra.mxu0 %v3104_v4 }
 0x574   :  { %2599 = vmatmul.mubr.msk.f32.vlgmr.msra.gmra.mxu0 %vm27_vm0, %v3182_v36  ;;  %2620 = vmatprep.subr.mxu0 %v3028_v0 }
 0x575   :  { %2621 = vmatpush3.msra.mxu0 %v3219_v53  ;;  %2628 = vmatprep.mubr.msk.f32.mxu0 %vm3029_vm1, %v3028_v0 }
 0x576   :  { %2622 = vmatprep.subr.mxu0 %v3028_v0 }
 0x577   :  { %2623 = vmatpush3.msra.mxu0 %v3224_v54 }
 0x578   :  { %2624 = vmatprep.subr.mxu0 %v3028_v0 }
 0x579   :  { %2625 = vmatpush3.msra.mxu0 %v3231_v55 }
 0x57a   :  { %2626 = vmatprep.subr.mxu0 %v3028_v0 }
 0x57b   :  { %2627 = vmatpush3.msra.mxu0 %v3238_v56 }
 0x57c   :  { %2631 = vmatprep.subr.mxu0 %v3028_v0 }
 0x62c   :  { %v352_v62 = vpop.f32.mrf.mxu0 }
 0x62d   :  { %v353_v63 = vadd.f32 %v3272_v61, %v352_v62 }
 0x62e   :  { %v2589_v5 = vpop.f32.mrf.mxu0 }
 0x62f   :  { %356 = vst [vmem:[%s3802_s6] sm:$0xff] %v353_v63 }
 0x634   :  { %v427_v7 = vpop.f32.mrf.mxu0 }
 0x635   :  { %v431_v8 = vadd.f32 %v2348_v6, %v427_v7 }
 0x636   :  { %v2600_v9 = vpop.f32.mrf.mxu0 }
 0x637   :  { %2898 = vtanh.f32 %v431_v8  ;;  %v2350_v11 = vmul.f32 -1.442695, %v431_v8 }
 0x639   :  { %2900 = vpow2.f32 %v2350_v11 }
 0x644   :  { %v2899_v10 = vpop.eup %2898 }
 0x645   :  { %441 = vrot.lane.b32.xlu1 %v2899_v10, %s3030_s7 }
 0x646   :  { %v2901_v12 = vpop.eup %2900 }
 0x647   :  { %v435_v13 = vadd.f32 1.0, %v2901_v12 }
 0x649   :  { %2902 = vrcp.f32 %v435_v13 }
 0x656   :  { %v2903_v14 = vpop.eup %2902 }
 0x657   :  { %v439_v17 = vmul.f32 %v2903_v14, %v3119_v21 }
 0x6b7   :  { %v442_v15 = vpop.permute.xlu1 %441 }
 0x6b8   :  { %v444_v16 = vmul.f32 %v2903_v14, %v442_v15 }
 0x6ba   :  { %446 = vrot.lane.b32.xlu0 %v444_v16, %s3030_s7 }
 0x72c   :  { %v447_v18 = vpop.permute.xlu0 %446 }
 0x72d   :  { %v3284_v19 = vadd.f32 %v447_v18, %v439_v17 }
 0x72f   :  { %2904 = vtanh.f32 %v3284_v19 }
 0x73c   :  { %v2905_v20 = vpop.eup %2904 }
 0x73d   :  { %452 = vrot.lane.b32.xlu1 %v2905_v20, %s3030_s7 }
 0x741   :  { %460 = vrot.lane.b32.xlu1 %v280_v59, %s3032_s18  ;;  %v2355_v59 = vld [vmem:[%s3797_s0 + $0x10] sm:$0xff] }
 0x7af   :  { %v453_v28 = vpop.permute.xlu1 %452 }
 0x7b0   :  { %v455_v30 = vmul.f32 %v2903_v14, %v453_v28 }
 0x7b2   :  { %457 = vrot.lane.b32.xlu0 %v455_v30, %s3031_s24 }
 0x7b3   :  { %v461_v32 = vpop.permute.xlu1 %460 }
 0x824   :  { %v458_v33 = vpop.permute.xlu0 %457 }
 0x825   :  { %v463_v34 = vsel %vm27_vm0, %v458_v33, %v461_v32 }
 0x826   :  { %2618 = vmatmul.mubr.msk.f32.vlgmr.msra.gmra.mxu1 %vm179_vm2, %v463_v34 }
 0x827   :  { %2643 = vmatpush3.msra.mxu1 %v3125_v22  ;;  %2658 = vmatprep.mubr.msk.f32.mxu1 %vm3029_vm1, %v3028_v0 }
 0x828   :  { %2644 = vmatprep.subr.mxu1 %v3028_v0 }
 0x829   :  { %2645 = vmatpush3.msra.mxu1 %v3130_v23 }
 0x82a   :  { %2646 = vmatprep.subr.mxu1 %v3028_v0 }
 0x82b   :  { %2647 = vmatpush3.msra.mxu1 %v3137_v24 }
 0x82c   :  { %2648 = vmatprep.subr.mxu1 %v3028_v0 }
 0x82d   :  { %2649 = vmatpush3.msra.mxu1 %v3144_v25 }
 0x82e   :  { %2650 = vmatprep.subr.mxu1 %v3028_v0 }
 0x82f   :  { %2651 = vmatpush3.msra.mxu1 %v3151_v26 }
 0x830   :  { %2652 = vmatprep.subr.mxu1 %v3028_v0 }
 0x831   :  { %2653 = vmatpush3.msra.mxu1 %v3158_v27 }
 0x832   :  { %2654 = vmatprep.subr.mxu1 %v3028_v0 }
 0x833   :  { %2655 = vmatpush3.msra.mxu1 %v3166_v29 }
 0x834   :  { %2656 = vmatprep.subr.mxu1 %v3028_v0 }
 0x835   :  { %2657 = vmatpush3.msra.mxu1 %v3176_v31 }
 0x836   :  { %2683 = vmatprep.subr.mxu1 %v3028_v0 }
 0x8e6   :  { %v533_v21 = vpop.f32.mrf.mxu1 }
 0x8e7   :  { %v534_v35 = vadd.f32 %v3208_v38, %v533_v21 }
 0x8e8   :  { %v2619_v36 = vpop.f32.mrf.mxu1 }
 0x8e9   :  { %2906 = vtanh.f32 %v534_v35  ;;  %v2352_v39 = vmul.f32 -1.442695, %v534_v35 }
 0x8eb   :  { %2908 = vpow2.f32 %v2352_v39 }
 0x8f6   :  { %v2907_v37 = vpop.eup %2906 }
 0x8f7   :  { %546 = vrot.lane.b32.xlu0 %v2907_v37, %s3030_s7 }
 0x8f8   :  { %v2909_v40 = vpop.eup %2908 }
 0x8f9   :  { %v540_v41 = vadd.f32 1.0, %v2909_v40 }
 0x8fb   :  { %2910 = vrcp.f32 %v540_v41 }
 0x908   :  { %v2911_v42 = vpop.eup %2910 }
 0x909   :  { %v544_v45 = vmul.f32 %v2911_v42, %v3213_v52 }
 0x969   :  { %v547_v43 = vpop.permute.xlu0 %546 }
 0x96a   :  { %v549_v44 = vmul.f32 %v2911_v42, %v547_v43 }
 0x96c   :  { %551 = vrot.lane.b32.xlu1 %v549_v44, %s3030_s7 }
 0x9de   :  { %v552_v46 = vpop.permute.xlu1 %551 }
 0x9df   :  { %v3314_v47 = vadd.f32 %v552_v46, %v544_v45 }
 0x9e1   :  { %2912 = vtanh.f32 %v3314_v47 }
 0x9ee   :  { %v2913_v48 = vpop.eup %2912 }
 0x9ef   :  { %557 = vrot.lane.b32.xlu0 %v2913_v48, %s3030_s7 }
 0xa61   :  { %v558_v49 = vpop.permute.xlu0 %557 }
 0xa62   :  { %v560_v50 = vmul.f32 %v2911_v42, %v558_v49 }
 0xa64   :  { %562 = vrot.lane.b32.xlu1 %v560_v50, %s3031_s24 }
 0xad6   :  { %v563_v51 = vpop.permute.xlu1 %562 }
 0xad7   :  { %2629 = vmatmul.mubr.msk.f32.vlgmr.msra.gmra.mxu0 %vm27_vm0, %v563_v51 }
 0xad8   :  { %2632 = vmatpush3.msra.mxu0 %v3072_v1  ;;  %2639 = vmatprep.mubr.msk.f32.mxu0 %vm3029_vm1, %v3028_v0 }
 0xad9   :  { %2633 = vmatprep.subr.mxu0 %v3028_v0 }
 0xada   :  { %2634 = vmatpush3.msra.mxu0 %v3077_v2 }
 0xadb   :  { %2635 = vmatprep.subr.mxu0 %v3028_v0 }
 0xadc   :  { %2636 = vmatpush3.msra.mxu0 %v3095_v3 }
 0xadd   :  { %2637 = vmatprep.subr.mxu0 %v3028_v0 }
 0xade   :  { %2638 = vmatpush3.msra.mxu0 %v3104_v4 }
 0xadf   :  { %2640 = vmatmul.mubr.msk.f32.vlgmr.msra.gmra.mxu0 %vm27_vm0, %v458_v33  ;;  %2661 = vmatprep.subr.mxu0 %v3028_v0 }
 0xae0   :  { %2662 = vmatpush3.msra.mxu0 %v3219_v53  ;;  %2669 = vmatprep.mubr.msk.f32.mxu0 %vm3029_vm1, %v3028_v0 }
 0xae1   :  { %2663 = vmatprep.subr.mxu0 %v3028_v0 }
 0xae2   :  { %2664 = vmatpush3.msra.mxu0 %v3224_v54 }
 0xae3   :  { %2665 = vmatprep.subr.mxu0 %v3028_v0 }
 0xae4   :  { %2666 = vmatpush3.msra.mxu0 %v3231_v55 }
 0xae5   :  { %2667 = vmatprep.subr.mxu0 %v3028_v0 }
 0xae6   :  { %2668 = vmatpush3.msra.mxu0 %v3238_v56 }
 0xae7   :  { %2672 = vmatprep.subr.mxu0 %v3028_v0 }
 0xb97   :  { %v632_v52 = vpop.f32.mrf.mxu0 }
 0xb98   :  { %v633_v57 = vadd.f32 %v3272_v61, %v632_v52 }
 0xb99   :  { %v2630_v58 = vpop.f32.mrf.mxu0 }
 0xb9a   :  { %2354 = vst [vmem:[%s3802_s6 + $0x8] sm:$0xff] %v633_v57 }
 0xb9f   :  { %v708_v60 = vpop.f32.mrf.mxu0 }
 0xba0   :  { %v712_v62 = vadd.f32 %v2355_v59, %v708_v60 }
 0xba1   :  { %v2641_v63 = vpop.f32.mrf.mxu0 }
 0xba2   :  { %2914 = vtanh.f32 %v712_v62  ;;  %v2357_v6 = vmul.f32 -1.442695, %v712_v62 }
 0xba4   :  { %2916 = vpow2.f32 %v2357_v6 }
 0xbaf   :  { %v2915_v5 = vpop.eup %2914 }
 0xbb0   :  { %722 = vrot.lane.b32.xlu0 %v2915_v5, %s3030_s7 }
 0xbb1   :  { %v2917_v7 = vpop.eup %2916 }
 0xbb2   :  { %v716_v8 = vadd.f32 1.0, %v2917_v7 }
 0xbb4   :  { %2918 = vrcp.f32 %v716_v8 }
 0xbc1   :  { %v2919_v9 = vpop.eup %2918 }
 0xbc2   :  { %v720_v12 = vmul.f32 %v2919_v9, %v3284_v19 }
 0xc22   :  { %v723_v10 = vpop.permute.xlu0 %722 }
 0xc23   :  { %v725_v11 = vmul.f32 %v2919_v9, %v723_v10 }
 0xc25   :  { %727 = vrot.lane.b32.xlu1 %v725_v11, %s3030_s7 }
 0xc97   :  { %v728_v13 = vpop.permute.xlu1 %727 }
 0xc98   :  { %v3351_v14 = vadd.f32 %v728_v13, %v720_v12 }
 0xc9a   :  { %2920 = vtanh.f32 %v3351_v14 }
 0xca7   :  { %v2921_v15 = vpop.eup %2920 }
 0xca8   :  { %733 = vrot.lane.b32.xlu0 %v2921_v15, %s3030_s7 }
 0xcac   :  { %741 = vrot.lane.b32.xlu0 %v560_v50, %s3032_s18  ;;  %v2362_v50 = vld [vmem:[%s3797_s0 + $0x18] sm:$0xff] }
 0xd1a   :  { %v734_v16 = vpop.permute.xlu0 %733 }
 0xd1b   :  { %v736_v17 = vmul.f32 %v2919_v9, %v734_v16 }
 0xd1d   :  { %738 = vrot.lane.b32.xlu1 %v736_v17, %s3031_s24 }
 0xd1e   :  { %v742_v18 = vpop.permute.xlu0 %741 }
 0xd8f   :  { %v739_v20 = vpop.permute.xlu1 %738 }
 0xd90   :  { %v744_v28 = vsel %vm27_vm0, %v739_v20, %v742_v18 }
 0xd91   :  { %2659 = vmatmul.mubr.msk.f32.vlgmr.msra.gmra.mxu1 %vm179_vm2, %v744_v28 }
 0xd92   :  { %2684 = vmatpush3.msra.mxu1 %v3125_v22  ;;  %2699 = vmatprep.mubr.msk.f32.mxu1 %vm3029_vm1, %v3028_v0 }
 0xd93   :  { %2685 = vmatprep.subr.mxu1 %v3028_v0 }
 0xd94   :  { %2686 = vmatpush3.msra.mxu1 %v3130_v23 }
 0xd95   :  { %2687 = vmatprep.subr.mxu1 %v3028_v0 }
 0xd96   :  { %2688 = vmatpush3.msra.mxu1 %v3137_v24 }
 0xd97   :  { %2689 = vmatprep.subr.mxu1 %v3028_v0 }
 0xd98   :  { %2690 = vmatpush3.msra.mxu1 %v3144_v25 }
 0xd99   :  { %2691 = vmatprep.subr.mxu1 %v3028_v0 }
 0xd9a   :  { %2692 = vmatpush3.msra.mxu1 %v3151_v26 }
 0xd9b   :  { %2693 = vmatprep.subr.mxu1 %v3028_v0 }
 0xd9c   :  { %2694 = vmatpush3.msra.mxu1 %v3158_v27 }
 0xd9d   :  { %2695 = vmatprep.subr.mxu1 %v3028_v0 }
 0xd9e   :  { %2696 = vmatpush3.msra.mxu1 %v3166_v29 }
 0xd9f   :  { %2697 = vmatprep.subr.mxu1 %v3028_v0 }
 0xda0   :  { %2698 = vmatpush3.msra.mxu1 %v3176_v31 }
 0xda1   :  { %2724 = vmatprep.subr.mxu1 %v3028_v0 }
 0xe51   :  { %v814_v19 = vpop.f32.mrf.mxu1 }
 0xe52   :  { %v815_v30 = vadd.f32 %v3208_v38, %v814_v19 }
 0xe53   :  { %v2660_v32 = vpop.f32.mrf.mxu1 }
 0xe54   :  { %2922 = vtanh.f32 %v815_v30  ;;  %v2359_v34 = vmul.f32 -1.442695, %v815_v30 }
 0xe56   :  { %2924 = vpow2.f32 %v2359_v34 }
 0xe61   :  { %v2923_v33 = vpop.eup %2922 }
 0xe62   :  { %827 = vrot.lane.b32.xlu1 %v2923_v33, %s3030_s7 }
 0xe63   :  { %v2925_v21 = vpop.eup %2924 }
 0xe64   :  { %v821_v35 = vadd.f32 1.0, %v2925_v21 }
 0xe66   :  { %2926 = vrcp.f32 %v821_v35 }
 0xe73   :  { %v2927_v36 = vpop.eup %2926 }
 0xe74   :  { %v825_v40 = vmul.f32 %v2927_v36, %v3314_v47 }
 0xed4   :  { %v828_v37 = vpop.permute.xlu1 %827 }
 0xed5   :  { %v830_v39 = vmul.f32 %v2927_v36, %v828_v37 }
 0xed7   :  { %832 = vrot.lane.b32.xlu0 %v830_v39, %s3030_s7 }
 0xf49   :  { %v833_v41 = vpop.permute.xlu0 %832 }
 0xf4a   :  { %v3381_v42 = vadd.f32 %v833_v41, %v825_v40 }
 0xf4c   :  { %2928 = vtanh.f32 %v3381_v42 }
 0xf59   :  { %v2929_v43 = vpop.eup %2928 }
 0xf5a   :  { %838 = vrot.lane.b32.xlu1 %v2929_v43, %s3030_s7 }
 0xfcc   :  { %v839_v44 = vpop.permute.xlu1 %838 }
 0xfcd   :  { %v841_v45 = vmul.f32 %v2927_v36, %v839_v44 }
 0xfcf   :  { %843 = vrot.lane.b32.xlu0 %v841_v45, %s3031_s24 }
0x1041   :  { %v844_v46 = vpop.permute.xlu0 %843 }
0x1042   :  { %2670 = vmatmul.mubr.msk.f32.vlgmr.msra.gmra.mxu0 %vm27_vm0, %v844_v46 }
0x1043   :  { %2673 = vmatpush3.msra.mxu0 %v3072_v1  ;;  %2680 = vmatprep.mubr.msk.f32.mxu0 %vm3029_vm1, %v3028_v0 }
0x1044   :  { %2674 = vmatprep.subr.mxu0 %v3028_v0 }
0x1045   :  { %2675 = vmatpush3.msra.mxu0 %v3077_v2 }
0x1046   :  { %2676 = vmatprep.subr.mxu0 %v3028_v0 }
0x1047   :  { %2677 = vmatpush3.msra.mxu0 %v3095_v3 }
0x1048   :  { %2678 = vmatprep.subr.mxu0 %v3028_v0 }
0x1049   :  { %2679 = vmatpush3.msra.mxu0 %v3104_v4 }
0x104a   :  { %2681 = vmatmul.mubr.msk.f32.vlgmr.msra.gmra.mxu0 %vm27_vm0, %v739_v20  ;;  %2702 = vmatprep.subr.mxu0 %v3028_v0 }
0x104b   :  { %2703 = vmatpush3.msra.mxu0 %v3219_v53  ;;  %2710 = vmatprep.mubr.msk.f32.mxu0 %vm3029_vm1, %v3028_v0 }
0x104c   :  { %2704 = vmatprep.subr.mxu0 %v3028_v0 }
0x104d   :  { %2705 = vmatpush3.msra.mxu0 %v3224_v54 }
0x104e   :  { %2706 = vmatprep.subr.mxu0 %v3028_v0 }
0x104f   :  { %2707 = vmatpush3.msra.mxu0 %v3231_v55 }
0x1050   :  { %2708 = vmatprep.subr.mxu0 %v3028_v0 }
0x1051   :  { %2709 = vmatpush3.msra.mxu0 %v3238_v56 }
0x1052   :  { %2713 = vmatprep.subr.mxu0 %v3028_v0 }
0x1102   :  { %v913_v47 = vpop.f32.mrf.mxu0 }
0x1103   :  { %v914_v48 = vadd.f32 %v3272_v61, %v913_v47 }
0x1104   :  { %v2671_v49 = vpop.f32.mrf.mxu0 }
0x1105   :  { %2361 = vst [vmem:[%s3802_s6 + $0x10] sm:$0xff] %v914_v48 }
0x110a   :  { %v989_v51 = vpop.f32.mrf.mxu0 }
0x110b   :  { %v993_v52 = vadd.f32 %v2362_v50, %v989_v51 }
0x110c   :  { %v2682_v57 = vpop.f32.mrf.mxu0 }
0x110d   :  { %2930 = vtanh.f32 %v993_v52  ;;  %v2364_v59 = vmul.f32 -1.442695, %v993_v52 }
0x110f   :  { %2932 = vpow2.f32 %v2364_v59 }
0x111a   :  { %v2931_v58 = vpop.eup %2930 }
0x111b   :  { %1003 = vrot.lane.b32.xlu1 %v2931_v58, %s3030_s7 }
0x111c   :  { %v2933_v60 = vpop.eup %2932 }
0x111d   :  { %v997_v62 = vadd.f32 1.0, %v2933_v60 }
0x111f   :  { %2934 = vrcp.f32 %v997_v62 }
0x112c   :  { %v2935_v63 = vpop.eup %2934 }
0x112d   :  { %v1001_v7 = vmul.f32 %v2935_v63, %v3351_v14 }
0x118d   :  { %v1004_v5 = vpop.permute.xlu1 %1003 }
0x118e   :  { %v1006_v6 = vmul.f32 %v2935_v63, %v1004_v5 }
0x1190   :  { %1008 = vrot.lane.b32.xlu0 %v1006_v6, %s3030_s7 }
0x1202   :  { %v1009_v8 = vpop.permute.xlu0 %1008 }
0x1203   :  { %v3418_v9 = vadd.f32 %v1009_v8, %v1001_v7 }
0x1205   :  { %2936 = vtanh.f32 %v3418_v9 }
0x1212   :  { %v2937_v10 = vpop.eup %2936 }
0x1213   :  { %1014 = vrot.lane.b32.xlu1 %v2937_v10, %s3030_s7 }
0x1217   :  { %1022 = vrot.lane.b32.xlu1 %v841_v45, %s3032_s18 }
0x1285   :  { %v1015_v11 = vpop.permute.xlu1 %1014 }
0x1286   :  { %v1017_v12 = vmul.f32 %v2935_v63, %v1015_v11 }
0x1288   :  { %1019 = vrot.lane.b32.xlu0 %v1017_v12, %s3031_s24 }
0x1289   :  { %v1023_v13 = vpop.permute.xlu1 %1022 }
0x12fa   :  { %v1020_v15 = vpop.permute.xlu0 %1019 }
0x12fb   :  { %v1025_v16 = vsel %vm27_vm0, %v1020_v15, %v1023_v13 }
0x12fc   :  { %2700 = vmatmul.mubr.msk.f32.vlgmr.msra.gmra.mxu1 %vm179_vm2, %v1025_v16 }
0x12fd   :  { %2725 = vmatpush3.msra.mxu1 %v3125_v22  ;;  %2740 = vmatprep.mubr.msk.f32.mxu1 %vm3029_vm1, %v3028_v0 }
0x12fe   :  { %2726 = vmatprep.subr.mxu1 %v3028_v0 }
0x12ff   :  { %2727 = vmatpush3.msra.mxu1 %v3130_v23 }
0x1300   :  { %2728 = vmatprep.subr.mxu1 %v3028_v0 }
0x1301   :  { %2729 = vmatpush3.msra.mxu1 %v3137_v24 }
0x1302   :  { %2730 = vmatprep.subr.mxu1 %v3028_v0 }
0x1303   :  { %2731 = vmatpush3.msra.mxu1 %v3144_v25 }
0x1304   :  { %2732 = vmatprep.subr.mxu1 %v3028_v0 }
0x1305   :  { %2733 = vmatpush3.msra.mxu1 %v3151_v26 }
0x1306   :  { %2734 = vmatprep.subr.mxu1 %v3028_v0 }
0x1307   :  { %2735 = vmatpush3.msra.mxu1 %v3158_v27 }
0x1308   :  { %2736 = vmatprep.subr.mxu1 %v3028_v0 }
0x1309   :  { %2737 = vmatpush3.msra.mxu1 %v3166_v29 }
0x130a   :  { %2738 = vmatprep.subr.mxu1 %v3028_v0 }
0x130b   :  { %2739 = vmatpush3.msra.mxu1 %v3176_v31 }
0x130c   :  { %2765 = vmatprep.subr.mxu1 %v3028_v0 }
0x13bc   :  { %v1095_v14 = vpop.f32.mrf.mxu1 }
0x13bd   :  { %v1096_v17 = vadd.f32 %v3208_v38, %v1095_v14  ;;  %v3524_v14 = vld [vmem:[%s3796_s1 + $0x18] sm:$0xff] }
0x13be   :  { %v2701_v18 = vpop.f32.mrf.mxu1 }
0x13bf   :  { %2938 = vtanh.f32 %v1096_v17  ;;  %v2366_v28 = vmul.f32 -1.442695, %v1096_v17  ;;  %v3533_v17 = vld [vmem:[%s3796_s1 + $0x10] sm:$0xff]  ;;  %v3540_v18 = vld [vmem:[%s3796_s1 + $0x8] sm:$0xff] }
0x13c1   :  { %2940 = vpow2.f32 %v2366_v28 }
0x13cc   :  { %v2939_v20 = vpop.eup %2938 }
0x13cd   :  { %1108 = vrot.lane.b32.xlu0 %v2939_v20, %s3030_s7  ;;  %v3547_v20 = vld [vmem:[%s3796_s1] sm:$0xff] }
0x13ce   :  { %v2941_v19 = vpop.eup %2940 }
0x13cf   :  { %v1102_v30 = vadd.f32 1.0, %v2941_v19 }
0x13d1   :  { %2942 = vrcp.f32 %v1102_v30 }
0x13de   :  { %v2943_v32 = vpop.eup %2942 }
0x13df   :  { %v1106_v21 = vmul.f32 %v2943_v32, %v3381_v42 }
0x143f   :  { %v1109_v33 = vpop.permute.xlu0 %1108 }
0x1440   :  { %v1111_v34 = vmul.f32 %v2943_v32, %v1109_v33 }
0x1442   :  { %1113 = vrot.lane.b32.xlu1 %v1111_v34, %s3030_s7 }
0x14b4   :  { %v1114_v35 = vpop.permute.xlu1 %1113 }
0x14b5   :  { %v3448_v36 = vadd.f32 %v1114_v35, %v1106_v21 }
0x14b7   :  { %2944 = vtanh.f32 %v3448_v36 }
0x14c4   :  { %v2945_v37 = vpop.eup %2944 }
0x14c5   :  { %1119 = vrot.lane.b32.xlu0 %v2945_v37, %s3030_s7 }
0x1537   :  { %v1120_v39 = vpop.permute.xlu0 %1119 }
0x1538   :  { %v1122_v40 = vmul.f32 %v2943_v32, %v1120_v39 }
0x153a   :  { %1124 = vrot.lane.b32.xlu1 %v1122_v40, %s3031_s24 }
0x15ac   :  { %v1125_v41 = vpop.permute.xlu1 %1124 }
0x15ad   :  { %2711 = vmatmul.mubr.msk.f32.vlgmr.msra.gmra.mxu0 %vm27_vm0, %v1125_v41 }
0x15ae   :  { %2714 = vmatpush3.msra.mxu0 %v3072_v1  ;;  %2721 = vmatprep.mubr.msk.f32.mxu0 %vm3029_vm1, %v3028_v0 }
0x15af   :  { %2715 = vmatprep.subr.mxu0 %v3028_v0 }
0x15b0   :  { %2716 = vmatpush3.msra.mxu0 %v3077_v2 }
0x15b1   :  { %2717 = vmatprep.subr.mxu0 %v3028_v0 }
0x15b2   :  { %2718 = vmatpush3.msra.mxu0 %v3095_v3 }
0x15b3   :  { %2719 = vmatprep.subr.mxu0 %v3028_v0 }
0x15b4   :  { %2720 = vmatpush3.msra.mxu0 %v3104_v4  ;;  %v2369_v4 = vld [vmem:[%s3797_s0 + $0x20] sm:$0xff] }
0x15b5   :  { %2722 = vmatmul.mubr.msk.f32.vlgmr.msra.gmra.mxu0 %vm27_vm0, %v1020_v15  ;;  %2743 = vmatprep.subr.mxu0 %v3028_v0 }
0x15b6   :  { %2744 = vmatpush3.msra.mxu0 %v3219_v53  ;;  %2751 = vmatprep.mubr.msk.f32.mxu0 %vm3029_vm1, %v3028_v0 }
0x15b7   :  { %2745 = vmatprep.subr.mxu0 %v3028_v0 }
0x15b8   :  { %2746 = vmatpush3.msra.mxu0 %v3224_v54 }
0x15b9   :  { %2747 = vmatprep.subr.mxu0 %v3028_v0 }
0x15ba   :  { %2748 = vmatpush3.msra.mxu0 %v3231_v55 }
0x15bb   :  { %2749 = vmatprep.subr.mxu0 %v3028_v0 }
0x15bc   :  { %2750 = vmatpush3.msra.mxu0 %v3238_v56 }
0x15bd   :  { %2754 = vmatprep.subr.mxu0 %v3028_v0 }
0x166d   :  { %v1194_v1 = vpop.f32.mrf.mxu0 }
0x166e   :  { %v1195_v2 = vadd.f32 %v3272_v61, %v1194_v1 }
0x166f   :  { %v2712_v3 = vpop.f32.mrf.mxu0 }
0x1670   :  { %2368 = vst [vmem:[%s3802_s6 + $0x18] sm:$0xff] %v1195_v2 }
0x1675   :  { %v1270_v42 = vpop.f32.mrf.mxu0 }
0x1676   :  { %v1274_v43 = vadd.f32 %v2369_v4, %v1270_v42 }
0x1677   :  { %v2723_v44 = vpop.f32.mrf.mxu0 }
0x1678   :  { %2946 = vtanh.f32 %v1274_v43  ;;  %v2371_v46 = vmul.f32 -1.442695, %v1274_v43  ;;  %v3583_v44 = vld [vmem:[%s3798_s2 + $0x38] sm:$0xff] }
0x167a   :  { %2948 = vpow2.f32 %v2371_v46  ;;  %v3599_v46 = vld [vmem:[%s3798_s2 + $0x28] sm:$0xff] }
0x1685   :  { %v2947_v45 = vpop.eup %2946 }
0x1686   :  { %1284 = vrot.lane.b32.xlu0 %v2947_v45, %s3030_s7  ;;  %v3592_v45 = vld [vmem:[%s3798_s2 + $0x30] sm:$0xff] }
0x1687   :  { %v2949_v47 = vpop.eup %2948 }
0x1688   :  { %v1278_v48 = vadd.f32 1.0, %v2949_v47  ;;  %v3606_v47 = vld [vmem:[%s3798_s2 + $0x20] sm:$0xff] }
0x168a   :  { %2950 = vrcp.f32 %v1278_v48  ;;  %v3613_v48 = vld [vmem:[%s3798_s2 + $0x18] sm:$0xff] }
0x1697   :  { %v2951_v49 = vpop.eup %2950 }
0x1698   :  { %v1282_v52 = vmul.f32 %v2951_v49, %v3418_v9 }
0x16f8   :  { %v1285_v50 = vpop.permute.xlu0 %1284 }
0x16f9   :  { %v1287_v51 = vmul.f32 %v2951_v49, %v1285_v50  ;;  %v3627_v50 = vld [vmem:[%s3798_s2 + $0x8] sm:$0xff] }
0x16fb   :  { %1289 = vrot.lane.b32.xlu1 %v1287_v51, %s3030_s7  ;;  %v3634_v51 = vld [vmem:[%s3798_s2] sm:$0xff] }
0x176d   :  { %v1290_v57 = vpop.permute.xlu1 %1289 }
0x176e   :  { %v3485_v58 = vadd.f32 %v1290_v57, %v1282_v52 }
0x1770   :  { %2952 = vtanh.f32 %v3485_v58 }
0x177d   :  { %v2953_v59 = vpop.eup %2952 }
0x177e   :  { %1295 = vrot.lane.b32.xlu0 %v2953_v59, %s3030_s7 }
0x1782   :  { %1303 = vrot.lane.b32.xlu0 %v1122_v40, %s3032_s18 }
0x17f0   :  { %v1296_v60 = vpop.permute.xlu0 %1295 }
0x17f1   :  { %v1298_v62 = vmul.f32 %v2951_v49, %v1296_v60  ;;  %v3620_v49 = vld [vmem:[%s3798_s2 + $0x10] sm:$0xff] }
0x17f3   :  { %1300 = vrot.lane.b32.xlu1 %v1298_v62, %s3031_s24 }
0x17f4   :  { %v1304_v63 = vpop.permute.xlu0 %1303 }
0x1865   :  { %v1301_v5 = vpop.permute.xlu1 %1300 }
0x1866   :  { %v1306_v6 = vsel %vm27_vm0, %v1301_v5, %v1304_v63 }
0x1867   :  { %2741 = vmatmul.mubr.msk.f32.vlgmr.msra.gmra.mxu1 %vm179_vm2, %v1306_v6 }
0x1868   :  { %2766 = vmatpush3.msra.mxu1 %v3125_v22  ;;  %2781 = vmatprep.mubr.msk.f32.mxu1 %vm3029_vm1, %v3028_v0 }
0x1869   :  { %2767 = vmatprep.subr.mxu1 %v3028_v0 }
0x186a   :  { %2768 = vmatpush3.msra.mxu1 %v3130_v23 }
0x186b   :  { %2769 = vmatprep.subr.mxu1 %v3028_v0 }
0x186c   :  { %2770 = vmatpush3.msra.mxu1 %v3137_v24 }
0x186d   :  { %2771 = vmatprep.subr.mxu1 %v3028_v0 }
0x186e   :  { %2772 = vmatpush3.msra.mxu1 %v3144_v25 }
0x186f   :  { %2773 = vmatprep.subr.mxu1 %v3028_v0 }
0x1870   :  { %2774 = vmatpush3.msra.mxu1 %v3151_v26 }
0x1871   :  { %2775 = vmatprep.subr.mxu1 %v3028_v0 }
0x1872   :  { %2776 = vmatpush3.msra.mxu1 %v3158_v27 }
0x1873   :  { %2777 = vmatprep.subr.mxu1 %v3028_v0 }
0x1874   :  { %2778 = vmatpush3.msra.mxu1 %v3166_v29 }
0x1875   :  { %2779 = vmatprep.subr.mxu1 %v3028_v0 }
0x1876   :  { %2780 = vmatpush3.msra.mxu1 %v3176_v31 }
0x1877   :  { %2806 = vmatprep.subr.mxu1 %v3028_v0 }
0x1927   :  { %v1376_v22 = vpop.f32.mrf.mxu1 }
0x1928   :  { %v1377_v23 = vadd.f32 %v3208_v38, %v1376_v22 }
0x1929   :  { %v2742_v24 = vpop.f32.mrf.mxu1 }
0x192a   :  { %2954 = vtanh.f32 %v1377_v23  ;;  %v2373_v26 = vmul.f32 -1.442695, %v1377_v23 }
0x192c   :  { %2956 = vpow2.f32 %v2373_v26 }
0x1937   :  { %v2955_v25 = vpop.eup %2954 }
0x1938   :  { %1389 = vrot.lane.b32.xlu1 %v2955_v25, %s3030_s7 }
0x1939   :  { %v2957_v27 = vpop.eup %2956 }
0x193a   :  { %v1383_v7 = vadd.f32 1.0, %v2957_v27 }
0x193c   :  { %2958 = vrcp.f32 %v1383_v7 }
0x1949   :  { %v2959_v29 = vpop.eup %2958 }
0x194a   :  { %v1387_v31 = vmul.f32 %v2959_v29, %v3448_v36 }
0x19aa   :  { %v1390_v8 = vpop.permute.xlu1 %1389 }
0x19ab   :  { %v1392_v9 = vmul.f32 %v2959_v29, %v1390_v8  ;;  %v3671_v8 = vld [vmem:[%s3800_s4 + $0x10] sm:$0xff] }
0x19ad   :  { %1394 = vrot.lane.b32.xlu0 %v1392_v9, %s3030_s7  ;;  %v3678_v9 = vld [vmem:[%s3800_s4 + $0x8] sm:$0xff] }
0x1a1f   :  { %v1395_v10 = vpop.permute.xlu0 %1394 }
0x1a20   :  { %v3515_v11 = vadd.f32 %v1395_v10, %v1387_v31  ;;  %v3685_v31 = vld [vmem:[%s3800_s4] sm:$0xff] }
0x1a22   :  { %2960 = vtanh.f32 %v3515_v11 }
0x1a2f   :  { %v2961_v12 = vpop.eup %2960 }
0x1a30   :  { %1400 = vrot.lane.b32.xlu1 %v2961_v12, %s3030_s7 }
0x1aa2   :  { %v1401_v13 = vpop.permute.xlu1 %1400 }
0x1aa3   :  { %v1403_v15 = vmul.f32 %v2959_v29, %v1401_v13  ;;  %v3662_v29 = vld [vmem:[%s3800_s4 + $0x18] sm:$0xff]  ;;  %v2383_v13 = vld [vmem:[%s3797_s0 + $0x30] sm:$0xff] }
0x1aa5   :  { %1405 = vrot.lane.b32.xlu0 %v1403_v15, %s3031_s24 }
0x1b17   :  { %v1406_v16 = vpop.permute.xlu0 %1405 }
0x1b18   :  { %2752 = vmatmul.mubr.msk.f32.vlgmr.msra.gmra.mxu0 %vm27_vm0, %v1406_v16 }
0x1b19   :  { %2755 = vmatpush3.msra.mxu0 %v3524_v14  ;;  %2762 = vmatprep.mubr.msk.f32.mxu0 %vm3029_vm1, %v3028_v0 }
0x1b1a   :  { %2756 = vmatprep.subr.mxu0 %v3028_v0 }
0x1b1b   :  { %2757 = vmatpush3.msra.mxu0 %v3533_v17 }
0x1b1c   :  { %2758 = vmatprep.subr.mxu0 %v3028_v0 }
0x1b1d   :  { %2759 = vmatpush3.msra.mxu0 %v3540_v18 }
0x1b1e   :  { %2760 = vmatprep.subr.mxu0 %v3028_v0 }
0x1b1f   :  { %2761 = vmatpush3.msra.mxu0 %v3547_v20 }
0x1b20   :  { %2763 = vmatmul.mubr.msk.f32.vlgmr.msra.gmra.mxu0 %vm27_vm0, %v1301_v5  ;;  %2784 = vmatprep.subr.mxu0 %v3028_v0 }
0x1b21   :  { %2785 = vmatpush3.msra.mxu0 %v3219_v53  ;;  %2792 = vmatprep.mubr.msk.f32.mxu0 %vm3029_vm1, %v3028_v0 }
0x1b22   :  { %2786 = vmatprep.subr.mxu0 %v3028_v0 }
0x1b23   :  { %2787 = vmatpush3.msra.mxu0 %v3224_v54  ;;  %v2376_v54 = vld [vmem:[%s3797_s0 + $0x28] sm:$0xff] }
0x1b24   :  { %2788 = vmatprep.subr.mxu0 %v3028_v0 }
0x1b25   :  { %2789 = vmatpush3.msra.mxu0 %v3231_v55 }
0x1b26   :  { %2790 = vmatprep.subr.mxu0 %v3028_v0 }
0x1b27   :  { %2791 = vmatpush3.msra.mxu0 %v3238_v56 }
0x1b28   :  { %2795 = vmatprep.subr.mxu0 %v3028_v0 }
0x1bd8   :  { %v1475_v28 = vpop.f32.mrf.mxu0 }
0x1bd9   :  { %v1476_v53 = vadd.f32 %v3272_v61, %v1475_v28 }
0x1bda   :  { %v2753_v19 = vpop.f32.mrf.mxu0 }
0x1bdb   :  { %2375 = vst [vmem:[%s3802_s6 + $0x20] sm:$0xff] %v1476_v53 }
0x1be0   :  { %v1551_v30 = vpop.f32.mrf.mxu0 }
0x1be1   :  { %v1555_v55 = vadd.f32 %v2376_v54, %v1551_v30 }
0x1be2   :  { %v2764_v32 = vpop.f32.mrf.mxu0 }
0x1be3   :  { %2962 = vtanh.f32 %v1555_v55  ;;  %v2378_v56 = vmul.f32 -1.442695, %v1555_v55 }
0x1be5   :  { %2964 = vpow2.f32 %v2378_v56 }
0x1bf0   :  { %v2963_v33 = vpop.eup %2962 }
0x1bf1   :  { %1565 = vrot.lane.b32.xlu1 %v2963_v33, %s3030_s7 }
0x1bf2   :  { %v2965_v34 = vpop.eup %2964 }
0x1bf3   :  { %v1559_v21 = vadd.f32 1.0, %v2965_v34 }
0x1bf5   :  { %2966 = vrcp.f32 %v1559_v21 }
0x1c02   :  { %v2967_v35 = vpop.eup %2966 }
0x1c03   :  { %v1563_v39 = vmul.f32 %v2967_v35, %v3485_v58 }
0x1c63   :  { %v1566_v36 = vpop.permute.xlu1 %1565 }
0x1c64   :  { %v1568_v37 = vmul.f32 %v2967_v35, %v1566_v36 }
0x1c66   :  { %1570 = vrot.lane.b32.xlu0 %v1568_v37, %s3030_s7 }
0x1cd8   :  { %v1571_v40 = vpop.permute.xlu0 %1570 }
0x1cd9   :  { %v3572_v41 = vadd.f32 %v1571_v40, %v1563_v39 }
0x1cdb   :  { %2968 = vtanh.f32 %v3572_v41 }
0x1ce8   :  { %v2969_v1 = vpop.eup %2968 }
0x1ce9   :  { %1576 = vrot.lane.b32.xlu1 %v2969_v1, %s3030_s7  ;;  %v3727_v1 = vld [vmem:[%s3799_s3] ss:$0 sm:$0xff] }
0x1ced   :  { %1584 = vrot.lane.b32.xlu1 %v1403_v15, %s3032_s18 }
0x1d5b   :  { %v1577_v2 = vpop.permute.xlu1 %1576 }
0x1d5c   :  { %v1579_v3 = vmul.f32 %v2967_v35, %v1577_v2 }
0x1d5e   :  { %1581 = vrot.lane.b32.xlu0 %v1579_v3, %s3031_s24 }
0x1d5f   :  { %v1585_v4 = vpop.permute.xlu1 %1584 }
0x1dd0   :  { %v1582_v42 = vpop.permute.xlu0 %1581 }
0x1dd1   :  { %v1587_v43 = vsel %vm27_vm0, %v1582_v42, %v1585_v4 }
0x1dd2   :  { %2782 = vmatmul.mubr.msk.f32.vlgmr.msra.gmra.mxu1 %vm179_vm2, %v1587_v43 }
0x1dd3   :  { %2807 = vmatpush3.msra.mxu1 %v3583_v44  ;;  %2822 = vmatprep.mubr.msk.f32.mxu1 %vm3029_vm1, %v3028_v0 }
0x1dd4   :  { %2808 = vmatprep.subr.mxu1 %v3028_v0 }
0x1dd5   :  { %2809 = vmatpush3.msra.mxu1 %v3592_v45 }
0x1dd6   :  { %2810 = vmatprep.subr.mxu1 %v3028_v0 }
0x1dd7   :  { %2811 = vmatpush3.msra.mxu1 %v3599_v46 }
0x1dd8   :  { %2812 = vmatprep.subr.mxu1 %v3028_v0 }
0x1dd9   :  { %2813 = vmatpush3.msra.mxu1 %v3606_v47 }
0x1dda   :  { %2814 = vmatprep.subr.mxu1 %v3028_v0 }
0x1ddb   :  { %2815 = vmatpush3.msra.mxu1 %v3613_v48 }
0x1ddc   :  { %2816 = vmatprep.subr.mxu1 %v3028_v0 }
0x1ddd   :  { %2817 = vmatpush3.msra.mxu1 %v3620_v49 }
0x1dde   :  { %2818 = vmatprep.subr.mxu1 %v3028_v0 }
0x1ddf   :  { %2819 = vmatpush3.msra.mxu1 %v3627_v50 }
0x1de0   :  { %2820 = vmatprep.subr.mxu1 %v3028_v0 }
0x1de1   :  { %2821 = vmatpush3.msra.mxu1 %v3634_v51 }
0x1de2   :  { %2847 = vmatprep.subr.mxu1 %v3028_v0 }
0x1e92   :  { %v1657_v52 = vpop.f32.mrf.mxu1 }
0x1e93   :  { %v1658_v57 = vadd.f32 %v3208_v38, %v1657_v52 }
0x1e94   :  { %v2783_v58 = vpop.f32.mrf.mxu1 }
0x1e95   :  { %2970 = vtanh.f32 %v1658_v57  ;;  %v2380_v60 = vmul.f32 -1.442695, %v1658_v57 }
0x1e97   :  { %2972 = vpow2.f32 %v2380_v60 }
0x1ea2   :  { %v2971_v59 = vpop.eup %2970 }
0x1ea3   :  { %1670 = vrot.lane.b32.xlu0 %v2971_v59, %s3030_s7  ;;  %v2390_v59 = vld [vmem:[%s3797_s0 + $0x38] sm:$0xff] }
0x1ea4   :  { %v2973_v62 = vpop.eup %2972 }
0x1ea5   :  { %v1664_v63 = vadd.f32 1.0, %v2973_v62 }
0x1ea7   :  { %2974 = vrcp.f32 %v1664_v63 }
0x1eb4   :  { %v2975_v5 = vpop.eup %2974 }
0x1eb5   :  { %v1668_v23 = vmul.f32 %v2975_v5, %v3515_v11 }
0x1f15   :  { %v1671_v6 = vpop.permute.xlu0 %1670 }
0x1f16   :  { %v1673_v22 = vmul.f32 %v2975_v5, %v1671_v6 }
0x1f18   :  { %1675 = vrot.lane.b32.xlu1 %v1673_v22, %s3030_s7 }
0x1f8a   :  { %v1676_v24 = vpop.permute.xlu1 %1675 }
0x1f8b   :  { %v3642_v25 = vadd.f32 %v1676_v24, %v1668_v23 }
0x1f8d   :  { %2976 = vtanh.f32 %v3642_v25 }
0x1f9a   :  { %v2977_v38 = vpop.eup %2976 }
0x1f9b   :  { %1681 = vrot.lane.b32.xlu0 %v2977_v38, %s3030_s7 }
0x200d   :  { %v1682_v26 = vpop.permute.xlu0 %1681 }
0x200e   :  { %v1684_v27 = vmul.f32 %v2975_v5, %v1682_v26 }
0x2010   :  { %1686 = vrot.lane.b32.xlu1 %v1684_v27, %s3031_s24 }
0x2082   :  { %v1687_v7 = vpop.permute.xlu1 %1686 }
0x2083   :  { %2793 = vmatmul.mubr.msk.f32.vlgmr.msra.gmra.mxu0 %vm27_vm0, %v1687_v7 }
0x2084   :  { %2796 = vmatpush3.msra.mxu0 %v3524_v14  ;;  %2803 = vmatprep.mubr.msk.f32.mxu0 %vm3029_vm1, %v3028_v0 }
0x2085   :  { %2797 = vmatprep.subr.mxu0 %v3028_v0 }
0x2086   :  { %2798 = vmatpush3.msra.mxu0 %v3533_v17 }
0x2087   :  { %2799 = vmatprep.subr.mxu0 %v3028_v0 }
0x2088   :  { %2800 = vmatpush3.msra.mxu0 %v3540_v18 }
0x2089   :  { %2801 = vmatprep.subr.mxu0 %v3028_v0 }
0x208a   :  { %2802 = vmatpush3.msra.mxu0 %v3547_v20 }
0x208b   :  { %2804 = vmatmul.mubr.msk.f32.vlgmr.msra.gmra.mxu0 %vm27_vm0, %v1582_v42  ;;  %2825 = vmatprep.subr.mxu0 %v3028_v0 }
0x208c   :  { %2826 = vmatpush3.msra.mxu0 %v3662_v29  ;;  %2833 = vmatprep.mubr.msk.f32.mxu0 %vm3029_vm1, %v3028_v0 }
0x208d   :  { %2827 = vmatprep.subr.mxu0 %v3028_v0 }
0x208e   :  { %2828 = vmatpush3.msra.mxu0 %v3671_v8 }
0x208f   :  { %2829 = vmatprep.subr.mxu0 %v3028_v0 }
0x2090   :  { %2830 = vmatpush3.msra.mxu0 %v3678_v9 }
0x2091   :  { %2831 = vmatprep.subr.mxu0 %v3028_v0 }
0x2092   :  { %2832 = vmatpush3.msra.mxu0 %v3685_v31 }
0x2093   :  { %2836 = vmatprep.subr.mxu0 %v3028_v0 }
0x2143   :  { %v1756_v10 = vpop.f32.mrf.mxu0 }
0x2144   :  { %v1757_v11 = vadd.f32 %v3272_v61, %v1756_v10 }
0x2145   :  { %v2794_v12 = vpop.f32.mrf.mxu0 }
0x2146   :  { %2382 = vst [vmem:[%s3802_s6 + $0x28] sm:$0xff] %v1757_v11 }
0x214b   :  { %v1832_v15 = vpop.f32.mrf.mxu0 }
0x214c   :  { %v1836_v16 = vadd.f32 %v2383_v13, %v1832_v15 }
0x214d   :  { %v2805_v28 = vpop.f32.mrf.mxu0 }
0x214e   :  { %2978 = vtanh.f32 %v1836_v16  ;;  %v2385_v19 = vmul.f32 -1.442695, %v1836_v16 }
0x2150   :  { %2980 = vpow2.f32 %v2385_v19 }
0x215b   :  { %v2979_v53 = vpop.eup %2978 }
0x215c   :  { %1846 = vrot.lane.b32.xlu0 %v2979_v53, %s3030_s7 }
0x215d   :  { %v2981_v54 = vpop.eup %2980 }
0x215e   :  { %v1840_v61 = vadd.f32 1.0, %v2981_v54 }
0x2160   :  { %2982 = vrcp.f32 %v1840_v61 }
0x216d   :  { %v2983_v30 = vpop.eup %2982 }
0x216e   :  { %v1844_v33 = vmul.f32 %v2983_v30, %v3572_v41 }
0x21ce   :  { %v1847_v55 = vpop.permute.xlu0 %1846 }
0x21cf   :  { %v1849_v32 = vmul.f32 %v2983_v30, %v1847_v55 }
0x21d1   :  { %1851 = vrot.lane.b32.xlu1 %v1849_v32, %s3030_s7 }
0x2243   :  { %v1852_v56 = vpop.permute.xlu1 %1851 }
0x2244   :  { %v3699_v34 = vadd.f32 %v1852_v56, %v1844_v33 }
0x2246   :  { %2984 = vtanh.f32 %v3699_v34 }
0x2253   :  { %v2985_v21 = vpop.eup %2984 }
0x2254   :  { %1857 = vrot.lane.b32.xlu0 %v2985_v21, %s3030_s7 }
0x2258   :  { %1865 = vrot.lane.b32.xlu0 %v1684_v27, %s3032_s18 }
0x22c6   :  { %v1858_v35 = vpop.permute.xlu0 %1857 }
0x22c7   :  { %v1860_v36 = vmul.f32 %v2983_v30, %v1858_v35 }
0x22c9   :  { %1862 = vrot.lane.b32.xlu1 %v1860_v36, %s3031_s24 }
0x22ca   :  { %v1866_v37 = vpop.permute.xlu0 %1865 }
0x233b   :  { %v1863_v39 = vpop.permute.xlu1 %1862 }
0x233c   :  { %v1868_v40 = vsel %vm27_vm0, %v1863_v39, %v1866_v37 }
0x233d   :  { %2823 = vmatmul.mubr.msk.f32.vlgmr.msra.gmra.mxu1 %vm179_vm2, %v1868_v40 }
0x233e   :  { %2848 = vmatpush3.msra.mxu1 %v3583_v44  ;;  %2863 = vmatprep.mubr.msk.f32.mxu1 %vm3029_vm1, %v3028_v0 }
0x233f   :  { %2849 = vmatprep.subr.mxu1 %v3028_v0 }
0x2340   :  { %2850 = vmatpush3.msra.mxu1 %v3592_v45 }
0x2341   :  { %2851 = vmatprep.subr.mxu1 %v3028_v0 }
0x2342   :  { %2852 = vmatpush3.msra.mxu1 %v3599_v46 }
0x2343   :  { %2853 = vmatprep.subr.mxu1 %v3028_v0 }
0x2344   :  { %2854 = vmatpush3.msra.mxu1 %v3606_v47 }
0x2345   :  { %2855 = vmatprep.subr.mxu1 %v3028_v0 }
0x2346   :  { %2856 = vmatpush3.msra.mxu1 %v3613_v48 }
0x2347   :  { %2857 = vmatprep.subr.mxu1 %v3028_v0 }
0x2348   :  { %2858 = vmatpush3.msra.mxu1 %v3620_v49 }
0x2349   :  { %2859 = vmatprep.subr.mxu1 %v3028_v0 }
0x234a   :  { %2860 = vmatpush3.msra.mxu1 %v3627_v50 }
0x234b   :  { %2861 = vmatprep.subr.mxu1 %v3028_v0 }
0x234c   :  { %2862 = vmatpush3.msra.mxu1 %v3634_v51 }
0x23fd   :  { %v1938_v41 = vpop.f32.mrf.mxu1 }
0x23fe   :  { %v1939_v2 = vadd.f32 %v3727_v1, %v1938_v41 }
0x23ff   :  { %v2824_v3 = vpop.f32.mrf.mxu1 }
0x2400   :  { %2986 = vtanh.f32 %v1939_v2  ;;  %v2387_v42 = vmul.f32 -1.442695, %v1939_v2 }
0x2402   :  { %2988 = vpow2.f32 %v2387_v42 }
0x240d   :  { %v2987_v4 = vpop.eup %2986 }
0x240e   :  { %1951 = vrot.lane.b32.xlu1 %v2987_v4, %s3030_s7 }
0x240f   :  { %v2989_v43 = vpop.eup %2988 }
0x2410   :  { %v1945_v44 = vadd.f32 1.0, %v2989_v43 }
0x2412   :  { %2990 = vrcp.f32 %v1945_v44 }
0x241f   :  { %v2991_v45 = vpop.eup %2990 }
0x2420   :  { %v1949_v48 = vmul.f32 %v2991_v45, %v3642_v25 }
0x2480   :  { %v1952_v46 = vpop.permute.xlu1 %1951 }
0x2481   :  { %v1954_v47 = vmul.f32 %v2991_v45, %v1952_v46 }
0x2483   :  { %1956 = vrot.lane.b32.xlu0 %v1954_v47, %s3030_s7 }
0x24f5   :  { %v1957_v49 = vpop.permute.xlu0 %1956 }
0x24f6   :  { %v3733_v50 = vadd.f32 %v1957_v49, %v1949_v48 }
0x24f8   :  { %2992 = vtanh.f32 %v3733_v50 }
0x2505   :  { %v2993_v51 = vpop.eup %2992 }
0x2506   :  { %1962 = vrot.lane.b32.xlu1 %v2993_v51, %s3030_s7 }
0x2578   :  { %v1963_v52 = vpop.permute.xlu1 %1962 }
0x2579   :  { %v1965_v57 = vmul.f32 %v2991_v45, %v1963_v52 }
0x257b   :  { %1967 = vrot.lane.b32.xlu0 %v1965_v57, %s3031_s24 }
0x25ed   :  { %v1968_v58 = vpop.permute.xlu0 %1967 }
0x25ee   :  { %2834 = vmatmul.mubr.msk.f32.vlgmr.msra.gmra.mxu0 %vm27_vm0, %v1968_v58 }
0x25ef   :  { %2837 = vmatpush3.msra.mxu0 %v3524_v14  ;;  %2844 = vmatprep.mubr.msk.f32.mxu0 %vm3029_vm1, %v3028_v0 }
0x25f0   :  { %2838 = vmatprep.subr.mxu0 %v3028_v0 }
0x25f1   :  { %2839 = vmatpush3.msra.mxu0 %v3533_v17  ;;  %v3762_v17 = vld [vmem:[%s3801_s5] ss:$0 sm:$0xff] }
0x25f2   :  { %2840 = vmatprep.subr.mxu0 %v3028_v0 }
0x25f3   :  { %2841 = vmatpush3.msra.mxu0 %v3540_v18 }
0x25f4   :  { %2842 = vmatprep.subr.mxu0 %v3028_v0 }
0x25f5   :  { %2843 = vmatpush3.msra.mxu0 %v3547_v20 }
0x25f6   :  { %2845 = vmatmul.mubr.msk.f32.vlgmr.msra.gmra.mxu0 %vm27_vm0, %v1863_v39  ;;  %2866 = vmatprep.subr.mxu0 %v3028_v0 }
0x25f7   :  { %2867 = vmatpush3.msra.mxu0 %v3662_v29  ;;  %2874 = vmatprep.mubr.msk.f32.mxu0 %vm3029_vm1, %v3028_v0 }
0x25f8   :  { %2868 = vmatprep.subr.mxu0 %v3028_v0 }
0x25f9   :  { %2869 = vmatpush3.msra.mxu0 %v3671_v8 }
0x25fa   :  { %2870 = vmatprep.subr.mxu0 %v3028_v0 }
0x25fb   :  { %2871 = vmatpush3.msra.mxu0 %v3678_v9 }
0x25fc   :  { %2872 = vmatprep.subr.mxu0 %v3028_v0 }
0x25fd   :  { %2873 = vmatpush3.msra.mxu0 %v3685_v31 }
0x26ae   :  { %v2037_v14 = vpop.f32.mrf.mxu0 }
0x26af   :  { %v2038_v18 = vadd.f32 %v3762_v17, %v2037_v14 }
0x26b0   :  { %v2835_v20 = vpop.f32.mrf.mxu0 }
0x26b1   :  { %2389 = vst [vmem:[%s3802_s6 + $0x30] sm:$0xff] %v2038_v18 }
0x26b6   :  { %v2113_v0 = vpop.f32.mrf.mxu0 }
0x26b7   :  { %v2117_v60 = vadd.f32 %v2390_v59, %v2113_v0 }
0x26b8   :  { %v2846_v62 = vpop.f32.mrf.mxu0 }
0x26b9   :  { %2994 = vtanh.f32 %v2117_v60  ;;  %v2392_v5 = vmul.f32 -1.442695, %v2117_v60 }
0x26bb   :  { %2996 = vpow2.f32 %v2392_v5 }
0x26c6   :  { %v2995_v63 = vpop.eup %2994 }
0x26c7   :  { %2127 = vrot.lane.b32.xlu1 %v2995_v63, %s3030_s7 }
0x26c8   :  { %v2997_v6 = vpop.eup %2996 }
0x26c9   :  { %v2121_v22 = vadd.f32 1.0, %v2997_v6 }
0x26cb   :  { %2998 = vrcp.f32 %v2121_v22 }
0x26d8   :  { %v2999_v23 = vpop.eup %2998 }
0x26d9   :  { %v2125_v38 = vmul.f32 %v2999_v23, %v3699_v34 }
0x2739   :  { %v2128_v24 = vpop.permute.xlu1 %2127 }
0x273a   :  { %v2130_v25 = vmul.f32 %v2999_v23, %v2128_v24 }
0x273c   :  { %2132 = vrot.lane.b32.xlu0 %v2130_v25, %s3030_s7 }
0x27ae   :  { %v2133_v26 = vpop.permute.xlu0 %2132 }
0x27af   :  { %v2135_v27 = vadd.f32 %v2133_v26, %v2125_v38 }
0x27b1   :  { %3000 = vtanh.f32 %v2135_v27 }
0x27be   :  { %v3001_v7 = vpop.eup %3000 }
0x27bf   :  { %2138 = vrot.lane.b32.xlu1 %v3001_v7, %s3030_s7 }
0x27c3   :  { %2146 = vrot.lane.b32.xlu1 %v1965_v57, %s3032_s18 }
0x2831   :  { %v2139_v29 = vpop.permute.xlu1 %2138 }
0x2832   :  { %v2141_v8 = vmul.f32 %v2999_v23, %v2139_v29 }
0x2834   :  { %2143 = vrot.lane.b32.xlu0 %v2141_v8, %s3031_s24 }
0x2835   :  { %v2147_v9 = vpop.permute.xlu1 %2146 }
0x28a6   :  { %v2144_v31 = vpop.permute.xlu0 %2143 }
0x28a7   :  { %v2149_v10 = vsel %vm27_vm0, %v2144_v31, %v2147_v9  ;;  %2324 = vst.msk [vmem:[#allocation2] sm:$0xff] %vm27_vm0, %v2144_v31 }
0x28a8   :  { %2864 = vmatmul.mubr.msk.f32.vlgmr.msra.gmra.mxu1 %vm179_vm2, %v2149_v10 }
0x2968   :  { %v2219_v11 = vpop.f32.mrf.mxu1 }
0x2969   :  { %v2220_v12 = vadd.f32 %v3727_v1, %v2219_v11 }
0x296a   :  { %v2865_v13 = vpop.f32.mrf.mxu1 }
0x296b   :  { %3002 = vtanh.f32 %v2220_v12  ;;  %v2394_v16 = vmul.f32 -1.442695, %v2220_v12 }
0x296d   :  { %3004 = vpow2.f32 %v2394_v16 }
0x2978   :  { %v3003_v15 = vpop.eup %3002 }
0x2979   :  { %2232 = vrot.lane.b32.xlu0 %v3003_v15, %s3030_s7 }
0x297a   :  { %v3005_v28 = vpop.eup %3004 }
0x297b   :  { %v2226_v53 = vadd.f32 1.0, %v3005_v28 }
0x297d   :  { %3006 = vrcp.f32 %v2226_v53 }
0x298a   :  { %v3007_v19 = vpop.eup %3006 }
0x298b   :  { %v2230_v30 = vmul.f32 %v3007_v19, %v3733_v50 }
0x29eb   :  { %v2233_v54 = vpop.permute.xlu0 %2232 }
0x29ec   :  { %v2235_v61 = vmul.f32 %v3007_v19, %v2233_v54 }
0x29ee   :  { %2237 = vrot.lane.b32.xlu1 %v2235_v61, %s3030_s7 }
0x2a60   :  { %v2238_v55 = vpop.permute.xlu1 %2237 }
0x2a61   :  { %v2240_v32 = vadd.f32 %v2238_v55, %v2230_v30 }
0x2a63   :  { %3008 = vtanh.f32 %v2240_v32 }
0x2a70   :  { %v3009_v33 = vpop.eup %3008 }
0x2a71   :  { %2243 = vrot.lane.b32.xlu0 %v3009_v33, %s3030_s7 }
0x2a75   :  { %2326 = vrot.lane.b32.xlu0 %v2135_v27, %s3032_s18 }
0x2ae3   :  { %v2244_v56 = vpop.permute.xlu0 %2243 }
0x2ae4   :  { %v2246_v34 = vmul.f32 %v3007_v19, %v2244_v56 }
0x2ae6   :  { %2248 = vrot.lane.b32.xlu1 %v2246_v34, %s3031_s24 }
0x2ae7   :  { %v2327_v21 = vpop.permute.xlu0 %2326 }
0x2ae8   :  { %2329 = vst.msk [vmem:[#allocation3] sm:$0xff] %vm27_vm0, %v2327_v21 }
0x2aea   :  { %2333 = vrot.lane.b32.xlu1 %v2240_v32, %s3032_s18 }
0x2b58   :  { %v2249_v35 = vpop.permute.xlu1 %2248 }
0x2b59   :  { %2331 = vst.msk [vmem:[#allocation4] sm:$0xff] %vm27_vm0, %v2249_v35  ;;  %2875 = vmatmul.mubr.msk.f32.vlgmr.msra.gmra.mxu0 %vm27_vm0, %v2249_v35 }
0x2b5c   :  { %v2334_v36 = vpop.permute.xlu1 %2333 }
0x2b5d   :  { %2336 = vst.msk [vmem:[#allocation5] sm:$0xff] %vm27_vm0, %v2334_v36 }
0x2c19   :  { %v2318_v37 = vpop.f32.mrf.mxu0 }
0x2c1a   :  { %v2319_v39 = vadd.f32 %v3762_v17, %v2318_v37 }
0x2c1b   :  { %v2876_v40 = vpop.f32.mrf.mxu0 }
0x2c1c   :  { %2396 = vst [vmem:[%s3802_s6 + $0x38] sm:$0xff] %v2319_v39 }

</bundles_post_ra>
